<compile_context>
chip_gen: v6e
topology: v6e:2x2x1
jax: 0.10.0
libtpu: 0.0.40
codegen_flags: <defaults>
</compile_context>

<pallas_src>
import math
import numpy as np

import jax
import jax.numpy as jnp
from jax.experimental import pallas as pl


# ----------------------------------------------------------------------------
# Config (small, deterministic, consistent with the module's __init__)
# ----------------------------------------------------------------------------
CFG = dict(
    cmu_vocab_len=40,
    cmu_seq_len=16,
    cross_attention_dim=32,
    attention_head_dim=16,
    text_encoder_dropout=0.0,
    text_encoder_layers=2,
    sample_size=32,
    in_channels=4,
    out_channels=4,
    layers_per_block=1,
    block_out_channels=(8,),
    down_block_types=("CrossAttnDownBlock1D",),
    mid_block_type="UNetMidBlock1DCrossAttn",
    up_block_types=("CrossAttnUpBlock1D",),
)

_LAYER_KEYS = ("ln1_g", "ln1_b", "wq", "wk", "wv", "wo", "bo",
               "ln3_g", "ln3_b", "ff_w1", "ff_b1", "ff_w2", "ff_b2")
_UNET_KEYS = ("time_w1", "time_b1", "time_w2", "time_b2",
              "conv_in_w", "conv_in_b", "res_conv1_w", "res_conv1_b",
              "res_time_w", "res_time_b", "res_conv2_w", "res_conv2_b",
              "xa_ln_g", "xa_ln_b", "xa_wq", "xa_wk", "xa_wv", "xa_wo", "xa_bo",
              "conv_out_w", "conv_out_b")
_N_FIXED = 11  # ids, mask, self_blk, cross_blk, sdn, sup, bsel, word, pos, tsc, x


# ----------------------------------------------------------------------------
# PositionalEncodingPermute1D semantics (host-side numpy constant)
# ----------------------------------------------------------------------------
def _positional_encoding_permute_1d(S, D):
    # PositionalEncodingPermute1D(channels=seq_len) applied to (B, S, D):
    # permute -> (B, D, S); PositionalEncoding1D sees x-dim = D, channel-dim = S.
    ch = int(np.ceil(S / 2) * 2)
    inv_freq = 1.0 / (10000.0 ** (np.arange(0, ch, 2, dtype=np.float32) / ch))
    pos = np.arange(D, dtype=np.float32)
    sin_inp = np.einsum("i,j->ij", pos, inv_freq)                    # (D, ch/2)
    emb = np.stack([np.sin(sin_inp), np.cos(sin_inp)], -1).reshape(D, ch)
    return np.ascontiguousarray(emb[:, :S].T).astype(np.float32)     # (S, D)


# ----------------------------------------------------------------------------
# Parameters (deterministic, synthetic; matmul weights stored in bf16)
# ----------------------------------------------------------------------------
def init_params(key, cfg):
    D = cfg["cross_attention_dim"]
    V = cfg["cmu_vocab_len"]
    C0 = cfg["block_out_channels"][0]
    T = 4 * C0
    Cin = cfg["in_channels"]
    Cout = cfg["out_channels"]
    BF = jnp.bfloat16

    keys = iter(jax.random.split(key, 128))

    def w(shape, dtype=BF, scale=0.02):
        return (scale * jax.random.normal(next(keys), shape, jnp.float32)).astype(dtype)

    params = {"word_emb": w((V, D), dtype=jnp.float32)}   # f32: exact one-hot gather
    layers = []
    for _ in range(cfg["text_encoder_layers"]):
        layers.append(dict(
            ln1_g=jnp.ones((1, D), jnp.float32), ln1_b=jnp.zeros((1, D), jnp.float32),
            wq=w((D, D)), wk=w((D, D)), wv=w((D, D)),
            wo=w((D, D)), bo=jnp.zeros((1, D), jnp.float32),
            ln3_g=jnp.ones((1, D), jnp.float32), ln3_b=jnp.zeros((1, D), jnp.float32),
            ff_w1=w((D, 8 * D)), ff_b1=jnp.zeros((1, 8 * D), jnp.float32),
            ff_w2=w((4 * D, D)), ff_b2=jnp.zeros((1, D), jnp.float32),
        ))
    params["layers"] = layers

    params.update(
        time_w1=w((C0, T)), time_b1=jnp.zeros((1, T), jnp.float32),
        time_w2=w((T, T)), time_b2=jnp.zeros((1, T), jnp.float32),
        # conv weights stored pre-flattened for im2col: rows [k*Cin,(k+1)*Cin) = tap k
        conv_in_w=w((3 * Cin, C0)), conv_in_b=jnp.zeros((1, C0), jnp.float32),
        res_conv1_w=w((3 * C0, C0)), res_conv1_b=jnp.zeros((1, C0), jnp.float32),
        res_time_w=w((T, C0)), res_time_b=jnp.zeros((1, C0), jnp.float32),
        res_conv2_w=w((3 * C0, C0)), res_conv2_b=jnp.zeros((1, C0), jnp.float32),
        xa_ln_g=jnp.ones((1, C0), jnp.float32), xa_ln_b=jnp.zeros((1, C0), jnp.float32),
        xa_wq=w((C0, C0)), xa_wk=w((D, C0)), xa_wv=w((D, C0)),
        xa_wo=w((C0, C0)), xa_bo=jnp.zeros((1, C0), jnp.float32),
        conv_out_w=w((3 * C0, Cout)), conv_out_b=jnp.zeros((1, Cout), jnp.float32),
    )
    return params


# ----------------------------------------------------------------------------
# The single fused Pallas kernel
# ----------------------------------------------------------------------------
def _build_fused_kernel(cfg, B):
    S = cfg["cmu_seq_len"]
    D = cfg["cross_attention_dim"]
    V = cfg["cmu_vocab_len"]
    hd = cfg["attention_head_dim"]
    H = D // hd
    L = cfg["sample_size"]
    C0 = cfg["block_out_channels"][0]
    n_layers = cfg["text_encoder_layers"]
    BS, BL = B * S, B * L
    attn_scale = 1.0 / math.sqrt(hd)
    xa_scale = 1.0 / math.sqrt(C0)
    f32 = jnp.float32
    bf16 = jnp.bfloat16
    N_LAYER = len(_LAYER_KEYS)

    def kernel(*args):
        o_ref = args[-1]
        refs = args[:-1]
        (ids_ref, maskf_ref, selfblk_ref, crossblk_ref, sdn_ref, sup_ref,
         bsel_ref, word_ref, pos_ref, tsc_ref, x_ref) = refs[:_N_FIXED]
        layer_refs = [refs[_N_FIXED + i * N_LAYER: _N_FIXED + (i + 1) * N_LAYER]
                      for i in range(n_layers)]
        (tw1, tb1, tw2, tb2, cin_w, cin_b, rc1_w, rc1_b, rt_w, rt_b,
         rc2_w, rc2_b, xa_g, xa_b, xwq, xwk, xwv, xwo, xbo,
         cout_w, cout_b) = refs[_N_FIXED + n_layers * N_LAYER:]

        def bf(x):
            return x.astype(bf16)

        def layernorm(x, g_ref, b_ref):
            mu = jnp.mean(x, axis=-1, keepdims=True)
            var = jnp.mean((x - mu) ** 2, axis=-1, keepdims=True)
            return (x - mu) * jax.lax.rsqrt(var + 1e-5) * g_ref[...] + b_ref[...]

        def softmax(s):
            s = s - jnp.max(s, axis=-1, keepdims=True)
            p = jnp.exp(s)
            return p * pl.reciprocal(jnp.sum(p, axis=-1, keepdims=True), approx=True)

        # ------------------------- text encoder -------------------------
        # word embedding as one-hot matmul (exact gather, stays in f32)
        onehot = (ids_ref[...] ==
                  jax.lax.broadcasted_iota(jnp.int32, (BS, V), 1)).astype(f32)
        h = jnp.dot(onehot, word_ref[...], preferred_element_type=f32) + pos_ref[...]

        # block-diagonal (per-batch) self-attention bias + key-padding bias
        keep = selfblk_ref[...] * maskf_ref[...]                      # (BS, BS)
        self_bias = (keep - 1.0) * 10000.0

        for lw in layer_refs:
            (ln1g, ln1b, wq, wk, wv, wo, bo,
             ln3g, ln3b, w1, b1, w2, b2) = lw

            # --- self attention (pre-LN) ---
            x = layernorm(h, ln1g, ln1b)
            x16 = bf(x)
            q = jnp.dot(x16, wq[...], preferred_element_type=f32)
            k = jnp.dot(x16, wk[...], preferred_element_type=f32)
            v = jnp.dot(x16, wv[...], preferred_element_type=f32)
            wo_full = wo[...]                                         # (D, D) bf16
            attn = None
            for hh in range(H):                                       # static unroll
                sl = slice(hh * hd, (hh + 1) * hd)
                s = jax.lax.dot_general(
                    bf(q[:, sl]), bf(k[:, sl]),
                    (((1,), (1,)), ((), ())),
                    preferred_element_type=f32) * attn_scale
                p = softmax(s + self_bias)
                oh = jnp.dot(bf(p), bf(v[:, sl]), preferred_element_type=f32)
                contrib = jnp.dot(bf(oh), wo_full[sl, :],
                                  preferred_element_type=f32)
                attn = contrib if attn is None else attn + contrib
            h = h + attn + bo[...]

            # --- GEGLU feed-forward (pre-LN) ---
            x = layernorm(h, ln3g, ln3b)
            y = jnp.dot(bf(x), w1[...], preferred_element_type=f32) + b1[...]
            a, g = y[:, :4 * D], y[:, 4 * D:]
            ff = a * jax.nn.gelu(g, approximate=True)
            h = h + jnp.dot(bf(ff), w2[...], preferred_element_type=f32) + b2[...]

        enc16 = bf(h)                                                 # (BS, D)

        # ----------------------------- UNet -----------------------------
        # timestep MLP (sinusoidal features computed in the wrapper)
        temb = jax.nn.silu(jnp.dot(bf(tsc_ref[...]), tw1[...],
                                   preferred_element_type=f32) + tb1[...])
        temb = jnp.dot(bf(temb), tw2[...], preferred_element_type=f32) + tb2[...]
        tproj = jnp.dot(bf(jax.nn.silu(temb)), rt_w[...],
                        preferred_element_type=f32) + rt_b[...]       # (B, C0)
        # broadcast per-batch time vector to all positions via static selector
        tproj_rows = jnp.dot(bsel_ref[...], tproj,
                             preferred_element_type=f32)              # (BL, C0)

        sdn = sdn_ref[...]   # (BL, BL) static 0/1: previous sample (0 at batch start)
        sup = sup_ref[...]   # (BL, BL) static 0/1: next sample (0 at batch end)

        def conv1d(xs, w_ref, b_ref, silu_in):
            # k=3 / pad=1 "same" conv, channels-last, batch folded into rows.
            # Row shifts are static matrices so everything stays on the MXU
            # (no in-kernel pad / sublane concat / roll needed).
            if silu_in:
                xs = jax.nn.silu(xs)                                  # silu(0)=0
            t_prev = jnp.dot(sdn, xs, preferred_element_type=f32)
            t_next = jnp.dot(sup, xs, preferred_element_type=f32)
            cat = jnp.concatenate([t_prev, xs, t_next], axis=-1)      # (BL, 3*Cin)
            return jnp.dot(bf(cat), w_ref[...],
                           preferred_element_type=f32) + b_ref[...]

        h0 = conv1d(x_ref[...], cin_w, cin_b, False)                  # conv_in
        r = conv1d(h0, rc1_w, rc1_b, True)                            # resnet conv1
        r = r + tproj_rows
        r = conv1d(r, rc2_w, rc2_b, True)                             # resnet conv2
        hu = h0 + r

        # cross-attention over the text embedding (single head of width C0)
        xq = layernorm(hu, xa_g, xa_b)
        q = jnp.dot(bf(xq), xwq[...], preferred_element_type=f32)     # (BL, C0)
        k = jnp.dot(enc16, xwk[...], preferred_element_type=f32)      # (BS, C0)
        v = jnp.dot(enc16, xwv[...], preferred_element_type=f32)
        s = jax.lax.dot_general(bf(q), bf(k), (((1,), (1,)), ((), ())),
                                preferred_element_type=f32) * xa_scale
        keep_x = crossblk_ref[...] * maskf_ref[...]                   # (BL, BS)
        p = softmax(s + (keep_x - 1.0) * 10000.0)
        o = jnp.dot(bf(p), bf(v), preferred_element_type=f32)
        o = jnp.dot(bf(o), xwo[...], preferred_element_type=f32) + xbo[...]
        hu = hu + o

        o_ref[...] = conv1d(hu, cout_w, cout_b, True)                 # conv_out

    return kernel


# ----------------------------------------------------------------------------
# Wrapper: host constants + glue (jit'ed), one pallas_call per forward
# ----------------------------------------------------------------------------
def build_forward(cfg, B):
    S = cfg["cmu_seq_len"]
    D = cfg["cross_attention_dim"]
    L = cfg["sample_size"]
    Cin = cfg["in_channels"]
    Cout = cfg["out_channels"]
    C0 = cfg["block_out_channels"][0]
    BS, BL = B * S, B * L

    # ---- shape-only constants, built once with numpy ----
    pos = _positional_encoding_permute_1d(S, D)                       # (S, D)
    pos_tiled = jnp.asarray(np.tile(pos, (B, 1)), jnp.float32)        # (BS, D)

    qb = np.arange(BS)[:, None] // S
    kb = np.arange(BS)[None, :] // S
    self_blk = jnp.asarray((qb == kb).astype(np.float32))             # (BS, BS)
    qb2 = np.arange(BL)[:, None] // L
    cross_blk = jnp.asarray((qb2 == kb).astype(np.float32))           # (BL, BS)

    sdn_np = np.zeros((BL, BL), np.float32)
    sup_np = np.zeros((BL, BL), np.float32)
    for i in range(BL):
        if i % L != 0:
            sdn_np[i, i - 1] = 1.0
        if i % L != L - 1:
            sup_np[i, i + 1] = 1.0
    sdn = jnp.asarray(sdn_np)
    sup = jnp.asarray(sup_np)

    bsel = jnp.asarray(
        (np.arange(BL)[:, None] // L == np.arange(B)[None, :]).astype(np.float32))

    kernel = _build_fused_kernel(cfg, B)
    n_inputs = _N_FIXED + cfg["text_encoder_layers"] * len(_LAYER_KEYS) + len(_UNET_KEYS)

    def _flat_weights(params):
        flat = []
        for lp in params["layers"]:
            flat += [lp[k] for k in _LAYER_KEYS]
        flat += [params[k] for k in _UNET_KEYS]
        return flat

    @jax.jit
    def forward(params, sample, timestep, text_seq_ids, attention_mask):
        ids_col = text_seq_ids.astype(jnp.int32).reshape(BS, 1)
        maskf = attention_mask.astype(jnp.float32).reshape(1, BS)
        x_flat = jnp.transpose(sample.astype(jnp.float32), (0, 2, 1)).reshape(BL, Cin)

        # sinusoidal timestep features (tiny + data dependent -> plain XLA)
        t = jnp.asarray(timestep, jnp.float32).reshape(-1)
        if t.shape[0] == 1:
            t = jnp.broadcast_to(t, (B,))
        half = C0 // 2
        freqs = jnp.exp(-math.log(10000.0) *
                        jnp.arange(half, dtype=jnp.float32) / half)
        ang = t[:, None] * freqs[None, :]
        tsc = jnp.concatenate([jnp.cos(ang), jnp.sin(ang)], axis=-1)  # (B, C0)

        inputs = [ids_col, maskf, self_blk, cross_blk, sdn, sup, bsel,
                  params["word_emb"], pos_tiled, tsc, x_flat] + _flat_weights(params)
        assert len(inputs) == n_inputs

        out_flat = pl.pallas_call(
            kernel,
            out_shape=jax.ShapeDtypeStruct((BL, Cout), jnp.float32),
        )(*inputs)

        # (B*L, Cout) -> (B, Cout, L)  (NCL, matching the PyTorch module)
        return jnp.transpose(out_flat.reshape(B, L, Cout), (0, 2, 1))

    return forward


# ----------------------------------------------------------------------------
# Main
# ----------------------------------------------------------------------------
if __name__ == "__main__":
    key = jax.random.PRNGKey(0)
    k_par, k_samp, k_ids = jax.random.split(key, 3)

    params = init_params(k_par, CFG)

    B = 2
    sample = jax.random.normal(
        k_samp, (B, CFG["in_channels"], CFG["sample_size"]), jnp.float32)
    timestep = jnp.asarray(10, jnp.int32)
    text_seq_ids = jax.random.randint(
        k_ids, (B, CFG["cmu_seq_len"]), 0, CFG["cmu_vocab_len"], jnp.int32)
    # mask: first 12 tokens valid, rest padding
    attention_mask = (jnp.arange(CFG["cmu_seq_len"])[None, :] < 12).astype(jnp.int32)
    attention_mask = jnp.broadcast_to(attention_mask, (B, CFG["cmu_seq_len"]))

    forward = build_forward(CFG, B)
    out = forward(params, sample, timestep, text_seq_ids, attention_mask)
    out = jax.block_until_ready(out)

    assert out.shape == (B, CFG["out_channels"], CFG["sample_size"]), out.shape
    assert bool(jnp.all(jnp.isfinite(out)))
    print("KERNEL_OK")
</pallas_src>

<mosaic_0001>
module attributes {stable_mosaic.version = 11 : i64} {
  func.func @kernel(%arg0: memref<32x1xi32, #tpu.memory_space<vmem>>, %arg1: memref<1x32xf32, #tpu.memory_space<vmem>>, %arg2: memref<32x32xf32, #tpu.memory_space<vmem>>, %arg3: memref<64x32xf32, #tpu.memory_space<vmem>>, %arg4: memref<64x64xf32, #tpu.memory_space<vmem>>, %arg5: memref<64x64xf32, #tpu.memory_space<vmem>>, %arg6: memref<64x2xf32, #tpu.memory_space<vmem>>, %arg7: memref<40x32xf32, #tpu.memory_space<vmem>>, %arg8: memref<32x32xf32, #tpu.memory_space<vmem>>, %arg9: memref<2x8xf32, #tpu.memory_space<vmem>>, %arg10: memref<64x4xf32, #tpu.memory_space<vmem>>, %arg11: memref<1x32xf32, #tpu.memory_space<vmem>>, %arg12: memref<1x32xf32, #tpu.memory_space<vmem>>, %arg13: memref<32x32xbf16, #tpu.memory_space<vmem>>, %arg14: memref<32x32xbf16, #tpu.memory_space<vmem>>, %arg15: memref<32x32xbf16, #tpu.memory_space<vmem>>, %arg16: memref<32x32xbf16, #tpu.memory_space<vmem>>, %arg17: memref<1x32xf32, #tpu.memory_space<vmem>>, %arg18: memref<1x32xf32, #tpu.memory_space<vmem>>, %arg19: memref<1x32xf32, #tpu.memory_space<vmem>>, %arg20: memref<32x256xbf16, #tpu.memory_space<vmem>>, %arg21: memref<1x256xf32, #tpu.memory_space<vmem>>, %arg22: memref<128x32xbf16, #tpu.memory_space<vmem>>, %arg23: memref<1x32xf32, #tpu.memory_space<vmem>>, %arg24: memref<1x32xf32, #tpu.memory_space<vmem>>, %arg25: memref<1x32xf32, #tpu.memory_space<vmem>>, %arg26: memref<32x32xbf16, #tpu.memory_space<vmem>>, %arg27: memref<32x32xbf16, #tpu.memory_space<vmem>>, %arg28: memref<32x32xbf16, #tpu.memory_space<vmem>>, %arg29: memref<32x32xbf16, #tpu.memory_space<vmem>>, %arg30: memref<1x32xf32, #tpu.memory_space<vmem>>, %arg31: memref<1x32xf32, #tpu.memory_space<vmem>>, %arg32: memref<1x32xf32, #tpu.memory_space<vmem>>, %arg33: memref<32x256xbf16, #tpu.memory_space<vmem>>, %arg34: memref<1x256xf32, #tpu.memory_space<vmem>>, %arg35: memref<128x32xbf16, #tpu.memory_space<vmem>>, %arg36: memref<1x32xf32, #tpu.memory_space<vmem>>, %arg37: memref<8x32xbf16, #tpu.memory_space<vmem>>, %arg38: memref<1x32xf32, #tpu.memory_space<vmem>>, %arg39: memref<32x32xbf16, #tpu.memory_space<vmem>>, %arg40: memref<1x32xf32, #tpu.memory_space<vmem>>, %arg41: memref<12x8xbf16, #tpu.memory_space<vmem>>, %arg42: memref<1x8xf32, #tpu.memory_space<vmem>>, %arg43: memref<24x8xbf16, #tpu.memory_space<vmem>>, %arg44: memref<1x8xf32, #tpu.memory_space<vmem>>, %arg45: memref<32x8xbf16, #tpu.memory_space<vmem>>, %arg46: memref<1x8xf32, #tpu.memory_space<vmem>>, %arg47: memref<24x8xbf16, #tpu.memory_space<vmem>>, %arg48: memref<1x8xf32, #tpu.memory_space<vmem>>, %arg49: memref<1x8xf32, #tpu.memory_space<vmem>>, %arg50: memref<1x8xf32, #tpu.memory_space<vmem>>, %arg51: memref<8x8xbf16, #tpu.memory_space<vmem>>, %arg52: memref<32x8xbf16, #tpu.memory_space<vmem>>, %arg53: memref<32x8xbf16, #tpu.memory_space<vmem>>, %arg54: memref<8x8xbf16, #tpu.memory_space<vmem>>, %arg55: memref<1x8xf32, #tpu.memory_space<vmem>>, %arg56: memref<24x4xbf16, #tpu.memory_space<vmem>>, %arg57: memref<1x4xf32, #tpu.memory_space<vmem>>, %arg58: memref<64x4xf32, #tpu.memory_space<vmem>>) attributes {dimension_semantics = [], scalar_prefetch = 0 : i64, scratch_operands = 0 : i64, tpu.core_type = #tpu.core_type<tc>} {
    %c0 = arith.constant 0 : index
    %c0_0 = arith.constant 0 : index
    %0 = vector.load %arg0[%c0, %c0_0] : memref<32x1xi32, #tpu.memory_space<vmem>>, vector<32x1xi32>
    %1 = tpu.iota {dimensions = array<i32: 1>} : vector<32x40xi32>
    %2 = vector.broadcast %0 : vector<32x1xi32> to vector<32x40xi32>
    %3 = arith.cmpi eq, %2, %1 : vector<32x40xi32>
    %4 = arith.extui %3 : vector<32x40xi1> to vector<32x40xi32>
    %5 = arith.sitofp %4 : vector<32x40xi32> to vector<32x40xf32>
    %c0_1 = arith.constant 0 : index
    %c0_2 = arith.constant 0 : index
    %6 = vector.load %arg7[%c0_1, %c0_2] : memref<40x32xf32, #tpu.memory_space<vmem>>, vector<40x32xf32>
    %cst = arith.constant dense<0.000000e+00> : vector<32x32xf32>
    %7 = tpu.matmul %5, %6, %cst {dimension_numbers = #tpu.dot_dimension_numbers<[1], [0], [0], [1], [0, 0, 1, 1], [], []>} : vector<32x40xf32>, vector<40x32xf32>, vector<32x32xf32> -> vector<32x32xf32>
    %c0_3 = arith.constant 0 : index
    %c0_4 = arith.constant 0 : index
    %8 = vector.load %arg8[%c0_3, %c0_4] : memref<32x32xf32, #tpu.memory_space<vmem>>, vector<32x32xf32>
    %9 = arith.addf %7, %8 : vector<32x32xf32>
    %c0_5 = arith.constant 0 : index
    %c0_6 = arith.constant 0 : index
    %10 = vector.load %arg2[%c0_5, %c0_6] : memref<32x32xf32, #tpu.memory_space<vmem>>, vector<32x32xf32>
    %c0_7 = arith.constant 0 : index
    %c0_8 = arith.constant 0 : index
    %11 = vector.load %arg1[%c0_7, %c0_8] : memref<1x32xf32, #tpu.memory_space<vmem>>, vector<1x32xf32>
    %12 = vector.broadcast %11 : vector<1x32xf32> to vector<32x32xf32>
    %13 = arith.mulf %10, %12 : vector<32x32xf32>
    %cst_9 = arith.constant 1.000000e+00 : f32
    %14 = vector.broadcast %cst_9 : f32 to vector<32x32xf32>
    %15 = arith.subf %13, %14 : vector<32x32xf32>
    %cst_10 = arith.constant 1.000000e+04 : f32
    %16 = vector.broadcast %cst_10 : f32 to vector<32x32xf32>
    %17 = arith.mulf %15, %16 : vector<32x32xf32>
    %cst_11 = arith.constant dense<0.000000e+00> : vector<32xf32>
    %18 = vector.multi_reduction <add>, %9, %cst_11 [1] : vector<32x32xf32> to vector<32xf32>
    %19 = vector.shape_cast %18 : vector<32xf32> to vector<32x1xf32>
    %cst_12 = arith.constant 3.200000e+01 : f32
    %20 = vector.broadcast %cst_12 : f32 to vector<32x1xf32>
    %21 = arith.divf %19, %20 : vector<32x1xf32>
    %22 = vector.broadcast %21 : vector<32x1xf32> to vector<32x32xf32>
    %23 = arith.subf %9, %22 : vector<32x32xf32>
    %24 = arith.mulf %23, %23 : vector<32x32xf32>
    %cst_13 = arith.constant dense<0.000000e+00> : vector<32xf32>
    %25 = vector.multi_reduction <add>, %24, %cst_13 [1] : vector<32x32xf32> to vector<32xf32>
    %26 = vector.shape_cast %25 : vector<32xf32> to vector<32x1xf32>
    %cst_14 = arith.constant 3.200000e+01 : f32
    %27 = vector.broadcast %cst_14 : f32 to vector<32x1xf32>
    %28 = arith.divf %26, %27 : vector<32x1xf32>
    %29 = vector.broadcast %21 : vector<32x1xf32> to vector<32x32xf32>
    %30 = arith.subf %9, %29 : vector<32x32xf32>
    %cst_15 = arith.constant 9.99999974E-6 : f32
    %31 = vector.broadcast %cst_15 : f32 to vector<32x1xf32>
    %32 = arith.addf %28, %31 : vector<32x1xf32>
    %33 = math.rsqrt %32 : vector<32x1xf32>
    %34 = vector.broadcast %33 : vector<32x1xf32> to vector<32x32xf32>
    %35 = arith.mulf %30, %34 : vector<32x32xf32>
    %c0_16 = arith.constant 0 : index
    %c0_17 = arith.constant 0 : index
    %36 = vector.load %arg11[%c0_16, %c0_17] : memref<1x32xf32, #tpu.memory_space<vmem>>, vector<1x32xf32>
    %37 = vector.broadcast %36 : vector<1x32xf32> to vector<32x32xf32>
    %38 = arith.mulf %35, %37 : vector<32x32xf32>
    %c0_18 = arith.constant 0 : index
    %c0_19 = arith.constant 0 : index
    %39 = vector.load %arg12[%c0_18, %c0_19] : memref<1x32xf32, #tpu.memory_space<vmem>>, vector<1x32xf32>
    %40 = vector.broadcast %39 : vector<1x32xf32> to vector<32x32xf32>
    %41 = arith.addf %38, %40 : vector<32x32xf32>
    %42 = arith.truncf %41 : vector<32x32xf32> to vector<32x32xbf16>
    %c0_20 = arith.constant 0 : index
    %c0_21 = arith.constant 0 : index
    %43 = vector.load %arg13[%c0_20, %c0_21] : memref<32x32xbf16, #tpu.memory_space<vmem>>, vector<32x32xbf16>
    %cst_22 = arith.constant dense<0.000000e+00> : vector<32x32xf32>
    %44 = tpu.matmul %42, %43, %cst_22 {dimension_numbers = #tpu.dot_dimension_numbers<[1], [0], [0], [1], [0, 0, 1, 1], [], []>} : vector<32x32xbf16>, vector<32x32xbf16>, vector<32x32xf32> -> vector<32x32xf32>
    %c0_23 = arith.constant 0 : index
    %c0_24 = arith.constant 0 : index
    %45 = vector.load %arg14[%c0_23, %c0_24] : memref<32x32xbf16, #tpu.memory_space<vmem>>, vector<32x32xbf16>
    %cst_25 = arith.constant dense<0.000000e+00> : vector<32x32xf32>
    %46 = tpu.matmul %42, %45, %cst_25 {dimension_numbers = #tpu.dot_dimension_numbers<[1], [0], [0], [1], [0, 0, 1, 1], [], []>} : vector<32x32xbf16>, vector<32x32xbf16>, vector<32x32xf32> -> vector<32x32xf32>
    %c0_26 = arith.constant 0 : index
    %c0_27 = arith.constant 0 : index
    %47 = vector.load %arg15[%c0_26, %c0_27] : memref<32x32xbf16, #tpu.memory_space<vmem>>, vector<32x32xbf16>
    %cst_28 = arith.constant dense<0.000000e+00> : vector<32x32xf32>
    %48 = tpu.matmul %42, %47, %cst_28 {dimension_numbers = #tpu.dot_dimension_numbers<[1], [0], [0], [1], [0, 0, 1, 1], [], []>} : vector<32x32xbf16>, vector<32x32xbf16>, vector<32x32xf32> -> vector<32x32xf32>
    %c0_29 = arith.constant 0 : index
    %c0_30 = arith.constant 0 : index
    %49 = vector.load %arg16[%c0_29, %c0_30] : memref<32x32xbf16, #tpu.memory_space<vmem>>, vector<32x32xbf16>
    %50 = vector.extract_strided_slice %44 {offsets = [0, 0], sizes = [32, 16], strides = [1, 1]} : vector<32x32xf32> to vector<32x16xf32>
    %51 = arith.truncf %50 : vector<32x16xf32> to vector<32x16xbf16>
    %52 = vector.extract_strided_slice %46 {offsets = [0, 0], sizes = [32, 16], strides = [1, 1]} : vector<32x32xf32> to vector<32x16xf32>
    %53 = arith.truncf %52 : vector<32x16xf32> to vector<32x16xbf16>
    %cst_31 = arith.constant dense<0.000000e+00> : vector<32x32xf32>
    %54 = tpu.matmul %51, %53, %cst_31 {dimension_numbers = #tpu.dot_dimension_numbers<[1], [1], [0], [0], [0, 0, 1, 0], [], []>} : vector<32x16xbf16>, vector<32x16xbf16>, vector<32x32xf32> -> vector<32x32xf32>
    %cst_32 = arith.constant 2.500000e-01 : f32
    %55 = vector.broadcast %cst_32 : f32 to vector<32x32xf32>
    %56 = arith.mulf %54, %55 : vector<32x32xf32>
    %57 = arith.addf %56, %17 : vector<32x32xf32>
    %cst_33 = arith.constant dense<0xFF800000> : vector<32xf32>
    %58 = vector.multi_reduction <maximumf>, %57, %cst_33 [1] : vector<32x32xf32> to vector<32xf32>
    %59 = vector.shape_cast %58 : vector<32xf32> to vector<32x1xf32>
    %60 = vector.broadcast %59 : vector<32x1xf32> to vector<32x32xf32>
    %61 = arith.subf %57, %60 : vector<32x32xf32>
    %62 = math.exp %61 : vector<32x32xf32>
    %cst_34 = arith.constant dense<0.000000e+00> : vector<32xf32>
    %63 = vector.multi_reduction <add>, %62, %cst_34 [1] : vector<32x32xf32> to vector<32xf32>
    %64 = vector.shape_cast %63 : vector<32xf32> to vector<32x1xf32>
    %65 = tpu.reciprocal %64 {approx = true} : vector<32x1xf32> -> vector<32x1xf32>
    %66 = vector.broadcast %65 : vector<32x1xf32> to vector<32x32xf32>
    %67 = arith.mulf %62, %66 : vector<32x32xf32>
    %68 = arith.truncf %67 : vector<32x32xf32> to vector<32x32xbf16>
    %69 = vector.extract_strided_slice %48 {offsets = [0, 0], sizes = [32, 16], strides = [1, 1]} : vector<32x32xf32> to vector<32x16xf32>
    %70 = arith.truncf %69 : vector<32x16xf32> to vector<32x16xbf16>
    %cst_35 = arith.constant dense<0.000000e+00> : vector<32x16xf32>
    %71 = tpu.matmul %68, %70, %cst_35 {dimension_numbers = #tpu.dot_dimension_numbers<[1], [0], [0], [1], [0, 0, 1, 1], [], []>} : vector<32x32xbf16>, vector<32x16xbf16>, vector<32x16xf32> -> vector<32x16xf32>
    %72 = arith.truncf %71 : vector<32x16xf32> to vector<32x16xbf16>
    %73 = vector.extract_strided_slice %49 {offsets = [0, 0], sizes = [16, 32], strides = [1, 1]} : vector<32x32xbf16> to vector<16x32xbf16>
    %cst_36 = arith.constant dense<0.000000e+00> : vector<32x32xf32>
    %74 = tpu.matmul %72, %73, %cst_36 {dimension_numbers = #tpu.dot_dimension_numbers<[1], [0], [0], [1], [0, 0, 1, 1], [], []>} : vector<32x16xbf16>, vector<16x32xbf16>, vector<32x32xf32> -> vector<32x32xf32>
    %75 = vector.extract_strided_slice %44 {offsets = [0, 16], sizes = [32, 16], strides = [1, 1]} : vector<32x32xf32> to vector<32x16xf32>
    %76 = arith.truncf %75 : vector<32x16xf32> to vector<32x16xbf16>
    %77 = vector.extract_strided_slice %46 {offsets = [0, 16], sizes = [32, 16], strides = [1, 1]} : vector<32x32xf32> to vector<32x16xf32>
    %78 = arith.truncf %77 : vector<32x16xf32> to vector<32x16xbf16>
    %cst_37 = arith.constant dense<0.000000e+00> : vector<32x32xf32>
    %79 = tpu.matmul %76, %78, %cst_37 {dimension_numbers = #tpu.dot_dimension_numbers<[1], [1], [0], [0], [0, 0, 1, 0], [], []>} : vector<32x16xbf16>, vector<32x16xbf16>, vector<32x32xf32> -> vector<32x32xf32>
    %cst_38 = arith.constant 2.500000e-01 : f32
    %80 = vector.broadcast %cst_38 : f32 to vector<32x32xf32>
    %81 = arith.mulf %79, %80 : vector<32x32xf32>
    %82 = arith.addf %81, %17 : vector<32x32xf32>
    %cst_39 = arith.constant dense<0xFF800000> : vector<32xf32>
    %83 = vector.multi_reduction <maximumf>, %82, %cst_39 [1] : vector<32x32xf32> to vector<32xf32>
    %84 = vector.shape_cast %83 : vector<32xf32> to vector<32x1xf32>
    %85 = vector.broadcast %84 : vector<32x1xf32> to vector<32x32xf32>
    %86 = arith.subf %82, %85 : vector<32x32xf32>
    %87 = math.exp %86 : vector<32x32xf32>
    %cst_40 = arith.constant dense<0.000000e+00> : vector<32xf32>
    %88 = vector.multi_reduction <add>, %87, %cst_40 [1] : vector<32x32xf32> to vector<32xf32>
    %89 = vector.shape_cast %88 : vector<32xf32> to vector<32x1xf32>
    %90 = tpu.reciprocal %89 {approx = true} : vector<32x1xf32> -> vector<32x1xf32>
    %91 = vector.broadcast %90 : vector<32x1xf32> to vector<32x32xf32>
    %92 = arith.mulf %87, %91 : vector<32x32xf32>
    %93 = arith.truncf %92 : vector<32x32xf32> to vector<32x32xbf16>
    %94 = vector.extract_strided_slice %48 {offsets = [0, 16], sizes = [32, 16], strides = [1, 1]} : vector<32x32xf32> to vector<32x16xf32>
    %95 = arith.truncf %94 : vector<32x16xf32> to vector<32x16xbf16>
    %cst_41 = arith.constant dense<0.000000e+00> : vector<32x16xf32>
    %96 = tpu.matmul %93, %95, %cst_41 {dimension_numbers = #tpu.dot_dimension_numbers<[1], [0], [0], [1], [0, 0, 1, 1], [], []>} : vector<32x32xbf16>, vector<32x16xbf16>, vector<32x16xf32> -> vector<32x16xf32>
    %97 = arith.truncf %96 : vector<32x16xf32> to vector<32x16xbf16>
    %98 = vector.extract_strided_slice %49 {offsets = [16, 0], sizes = [16, 32], strides = [1, 1]} : vector<32x32xbf16> to vector<16x32xbf16>
    %cst_42 = arith.constant dense<0.000000e+00> : vector<32x32xf32>
    %99 = tpu.matmul %97, %98, %cst_42 {dimension_numbers = #tpu.dot_dimension_numbers<[1], [0], [0], [1], [0, 0, 1, 1], [], []>} : vector<32x16xbf16>, vector<16x32xbf16>, vector<32x32xf32> -> vector<32x32xf32>
    %100 = arith.addf %74, %99 : vector<32x32xf32>
    %101 = arith.addf %9, %100 : vector<32x32xf32>
    %c0_43 = arith.constant 0 : index
    %c0_44 = arith.constant 0 : index
    %102 = vector.load %arg17[%c0_43, %c0_44] : memref<1x32xf32, #tpu.memory_space<vmem>>, vector<1x32xf32>
    %103 = vector.broadcast %102 : vector<1x32xf32> to vector<32x32xf32>
    %104 = arith.addf %101, %103 : vector<32x32xf32>
    %cst_45 = arith.constant dense<0.000000e+00> : vector<32xf32>
    %105 = vector.multi_reduction <add>, %104, %cst_45 [1] : vector<32x32xf32> to vector<32xf32>
    %106 = vector.shape_cast %105 : vector<32xf32> to vector<32x1xf32>
    %cst_46 = arith.constant 3.200000e+01 : f32
    %107 = vector.broadcast %cst_46 : f32 to vector<32x1xf32>
    %108 = arith.divf %106, %107 : vector<32x1xf32>
    %109 = vector.broadcast %108 : vector<32x1xf32> to vector<32x32xf32>
    %110 = arith.subf %104, %109 : vector<32x32xf32>
    %111 = arith.mulf %110, %110 : vector<32x32xf32>
    %cst_47 = arith.constant dense<0.000000e+00> : vector<32xf32>
    %112 = vector.multi_reduction <add>, %111, %cst_47 [1] : vector<32x32xf32> to vector<32xf32>
    %113 = vector.shape_cast %112 : vector<32xf32> to vector<32x1xf32>
    %cst_48 = arith.constant 3.200000e+01 : f32
    %114 = vector.broadcast %cst_48 : f32 to vector<32x1xf32>
    %115 = arith.divf %113, %114 : vector<32x1xf32>
    %116 = vector.broadcast %108 : vector<32x1xf32> to vector<32x32xf32>
    %117 = arith.subf %104, %116 : vector<32x32xf32>
    %cst_49 = arith.constant 9.99999974E-6 : f32
    %118 = vector.broadcast %cst_49 : f32 to vector<32x1xf32>
    %119 = arith.addf %115, %118 : vector<32x1xf32>
    %120 = math.rsqrt %119 : vector<32x1xf32>
    %121 = vector.broadcast %120 : vector<32x1xf32> to vector<32x32xf32>
    %122 = arith.mulf %117, %121 : vector<32x32xf32>
    %c0_50 = arith.constant 0 : index
    %c0_51 = arith.constant 0 : index
    %123 = vector.load %arg18[%c0_50, %c0_51] : memref<1x32xf32, #tpu.memory_space<vmem>>, vector<1x32xf32>
    %124 = vector.broadcast %123 : vector<1x32xf32> to vector<32x32xf32>
    %125 = arith.mulf %122, %124 : vector<32x32xf32>
    %c0_52 = arith.constant 0 : index
    %c0_53 = arith.constant 0 : index
    %126 = vector.load %arg19[%c0_52, %c0_53] : memref<1x32xf32, #tpu.memory_space<vmem>>, vector<1x32xf32>
    %127 = vector.broadcast %126 : vector<1x32xf32> to vector<32x32xf32>
    %128 = arith.addf %125, %127 : vector<32x32xf32>
    %129 = arith.truncf %128 : vector<32x32xf32> to vector<32x32xbf16>
    %c0_54 = arith.constant 0 : index
    %c0_55 = arith.constant 0 : index
    %130 = vector.load %arg20[%c0_54, %c0_55] : memref<32x256xbf16, #tpu.memory_space<vmem>>, vector<32x256xbf16>
    %cst_56 = arith.constant dense<0.000000e+00> : vector<32x256xf32>
    %131 = tpu.matmul %129, %130, %cst_56 {dimension_numbers = #tpu.dot_dimension_numbers<[1], [0], [0], [1], [0, 0, 1, 1], [], []>} : vector<32x32xbf16>, vector<32x256xbf16>, vector<32x256xf32> -> vector<32x256xf32>
    %c0_57 = arith.constant 0 : index
    %c0_58 = arith.constant 0 : index
    %132 = vector.load %arg21[%c0_57, %c0_58] : memref<1x256xf32, #tpu.memory_space<vmem>>, vector<1x256xf32>
    %133 = vector.broadcast %132 : vector<1x256xf32> to vector<32x256xf32>
    %134 = arith.addf %131, %133 : vector<32x256xf32>
    %135 = vector.extract_strided_slice %134 {offsets = [0, 0], sizes = [32, 128], strides = [1, 1]} : vector<32x256xf32> to vector<32x128xf32>
    %136 = vector.extract_strided_slice %134 {offsets = [0, 128], sizes = [32, 128], strides = [1, 1]} : vector<32x256xf32> to vector<32x128xf32>
    %137 = arith.mulf %136, %136 : vector<32x128xf32>
    %138 = arith.mulf %136, %137 : vector<32x128xf32>
    %cst_59 = arith.constant 4.471500e-02 : f32
    %139 = vector.broadcast %cst_59 : f32 to vector<32x128xf32>
    %140 = arith.mulf %139, %138 : vector<32x128xf32>
    %141 = arith.addf %136, %140 : vector<32x128xf32>
    %cst_60 = arith.constant 0.797884583 : f32
    %142 = vector.broadcast %cst_60 : f32 to vector<32x128xf32>
    %143 = arith.mulf %142, %141 : vector<32x128xf32>
    %144 = math.tanh %143 : vector<32x128xf32>
    %cst_61 = arith.constant 1.000000e+00 : f32
    %145 = vector.broadcast %cst_61 : f32 to vector<32x128xf32>
    %146 = arith.addf %145, %144 : vector<32x128xf32>
    %cst_62 = arith.constant 5.000000e-01 : f32
    %147 = vector.broadcast %cst_62 : f32 to vector<32x128xf32>
    %148 = arith.mulf %147, %146 : vector<32x128xf32>
    %149 = arith.mulf %136, %148 : vector<32x128xf32>
    %150 = arith.mulf %135, %149 : vector<32x128xf32>
    %151 = arith.truncf %150 : vector<32x128xf32> to vector<32x128xbf16>
    %c0_63 = arith.constant 0 : index
    %c0_64 = arith.constant 0 : index
    %152 = vector.load %arg22[%c0_63, %c0_64] : memref<128x32xbf16, #tpu.memory_space<vmem>>, vector<128x32xbf16>
    %cst_65 = arith.constant dense<0.000000e+00> : vector<32x32xf32>
    %153 = tpu.matmul %151, %152, %cst_65 {dimension_numbers = #tpu.dot_dimension_numbers<[1], [0], [0], [1], [0, 0, 1, 1], [], []>} : vector<32x128xbf16>, vector<128x32xbf16>, vector<32x32xf32> -> vector<32x32xf32>
    %154 = arith.addf %104, %153 : vector<32x32xf32>
    %c0_66 = arith.constant 0 : index
    %c0_67 = arith.constant 0 : index
    %155 = vector.load %arg23[%c0_66, %c0_67] : memref<1x32xf32, #tpu.memory_space<vmem>>, vector<1x32xf32>
    %156 = vector.broadcast %155 : vector<1x32xf32> to vector<32x32xf32>
    %157 = arith.addf %154, %156 : vector<32x32xf32>
    %cst_68 = arith.constant dense<0.000000e+00> : vector<32xf32>
    %158 = vector.multi_reduction <add>, %157, %cst_68 [1] : vector<32x32xf32> to vector<32xf32>
    %159 = vector.shape_cast %158 : vector<32xf32> to vector<32x1xf32>
    %cst_69 = arith.constant 3.200000e+01 : f32
    %160 = vector.broadcast %cst_69 : f32 to vector<32x1xf32>
    %161 = arith.divf %159, %160 : vector<32x1xf32>
    %162 = vector.broadcast %161 : vector<32x1xf32> to vector<32x32xf32>
    %163 = arith.subf %157, %162 : vector<32x32xf32>
    %164 = arith.mulf %163, %163 : vector<32x32xf32>
    %cst_70 = arith.constant dense<0.000000e+00> : vector<32xf32>
    %165 = vector.multi_reduction <add>, %164, %cst_70 [1] : vector<32x32xf32> to vector<32xf32>
    %166 = vector.shape_cast %165 : vector<32xf32> to vector<32x1xf32>
    %cst_71 = arith.constant 3.200000e+01 : f32
    %167 = vector.broadcast %cst_71 : f32 to vector<32x1xf32>
    %168 = arith.divf %166, %167 : vector<32x1xf32>
    %169 = vector.broadcast %161 : vector<32x1xf32> to vector<32x32xf32>
    %170 = arith.subf %157, %169 : vector<32x32xf32>
    %cst_72 = arith.constant 9.99999974E-6 : f32
    %171 = vector.broadcast %cst_72 : f32 to vector<32x1xf32>
    %172 = arith.addf %168, %171 : vector<32x1xf32>
    %173 = math.rsqrt %172 : vector<32x1xf32>
    %174 = vector.broadcast %173 : vector<32x1xf32> to vector<32x32xf32>
    %175 = arith.mulf %170, %174 : vector<32x32xf32>
    %c0_73 = arith.constant 0 : index
    %c0_74 = arith.constant 0 : index
    %176 = vector.load %arg24[%c0_73, %c0_74] : memref<1x32xf32, #tpu.memory_space<vmem>>, vector<1x32xf32>
    %177 = vector.broadcast %176 : vector<1x32xf32> to vector<32x32xf32>
    %178 = arith.mulf %175, %177 : vector<32x32xf32>
    %c0_75 = arith.constant 0 : index
    %c0_76 = arith.constant 0 : index
    %179 = vector.load %arg25[%c0_75, %c0_76] : memref<1x32xf32, #tpu.memory_space<vmem>>, vector<1x32xf32>
    %180 = vector.broadcast %179 : vector<1x32xf32> to vector<32x32xf32>
    %181 = arith.addf %178, %180 : vector<32x32xf32>
    %182 = arith.truncf %181 : vector<32x32xf32> to vector<32x32xbf16>
    %c0_77 = arith.constant 0 : index
    %c0_78 = arith.constant 0 : index
    %183 = vector.load %arg26[%c0_77, %c0_78] : memref<32x32xbf16, #tpu.memory_space<vmem>>, vector<32x32xbf16>
    %cst_79 = arith.constant dense<0.000000e+00> : vector<32x32xf32>
    %184 = tpu.matmul %182, %183, %cst_79 {dimension_numbers = #tpu.dot_dimension_numbers<[1], [0], [0], [1], [0, 0, 1, 1], [], []>} : vector<32x32xbf16>, vector<32x32xbf16>, vector<32x32xf32> -> vector<32x32xf32>
    %c0_80 = arith.constant 0 : index
    %c0_81 = arith.constant 0 : index
    %185 = vector.load %arg27[%c0_80, %c0_81] : memref<32x32xbf16, #tpu.memory_space<vmem>>, vector<32x32xbf16>
    %cst_82 = arith.constant dense<0.000000e+00> : vector<32x32xf32>
    %186 = tpu.matmul %182, %185, %cst_82 {dimension_numbers = #tpu.dot_dimension_numbers<[1], [0], [0], [1], [0, 0, 1, 1], [], []>} : vector<32x32xbf16>, vector<32x32xbf16>, vector<32x32xf32> -> vector<32x32xf32>
    %c0_83 = arith.constant 0 : index
    %c0_84 = arith.constant 0 : index
    %187 = vector.load %arg28[%c0_83, %c0_84] : memref<32x32xbf16, #tpu.memory_space<vmem>>, vector<32x32xbf16>
    %cst_85 = arith.constant dense<0.000000e+00> : vector<32x32xf32>
    %188 = tpu.matmul %182, %187, %cst_85 {dimension_numbers = #tpu.dot_dimension_numbers<[1], [0], [0], [1], [0, 0, 1, 1], [], []>} : vector<32x32xbf16>, vector<32x32xbf16>, vector<32x32xf32> -> vector<32x32xf32>
    %c0_86 = arith.constant 0 : index
    %c0_87 = arith.constant 0 : index
    %189 = vector.load %arg29[%c0_86, %c0_87] : memref<32x32xbf16, #tpu.memory_space<vmem>>, vector<32x32xbf16>
    %190 = vector.extract_strided_slice %184 {offsets = [0, 0], sizes = [32, 16], strides = [1, 1]} : vector<32x32xf32> to vector<32x16xf32>
    %191 = arith.truncf %190 : vector<32x16xf32> to vector<32x16xbf16>
    %192 = vector.extract_strided_slice %186 {offsets = [0, 0], sizes = [32, 16], strides = [1, 1]} : vector<32x32xf32> to vector<32x16xf32>
    %193 = arith.truncf %192 : vector<32x16xf32> to vector<32x16xbf16>
    %cst_88 = arith.constant dense<0.000000e+00> : vector<32x32xf32>
    %194 = tpu.matmul %191, %193, %cst_88 {dimension_numbers = #tpu.dot_dimension_numbers<[1], [1], [0], [0], [0, 0, 1, 0], [], []>} : vector<32x16xbf16>, vector<32x16xbf16>, vector<32x32xf32> -> vector<32x32xf32>
    %cst_89 = arith.constant 2.500000e-01 : f32
    %195 = vector.broadcast %cst_89 : f32 to vector<32x32xf32>
    %196 = arith.mulf %194, %195 : vector<32x32xf32>
    %197 = arith.addf %196, %17 : vector<32x32xf32>
    %cst_90 = arith.constant dense<0xFF800000> : vector<32xf32>
    %198 = vector.multi_reduction <maximumf>, %197, %cst_90 [1] : vector<32x32xf32> to vector<32xf32>
    %199 = vector.shape_cast %198 : vector<32xf32> to vector<32x1xf32>
    %200 = vector.broadcast %199 : vector<32x1xf32> to vector<32x32xf32>
    %201 = arith.subf %197, %200 : vector<32x32xf32>
    %202 = math.exp %201 : vector<32x32xf32>
    %cst_91 = arith.constant dense<0.000000e+00> : vector<32xf32>
    %203 = vector.multi_reduction <add>, %202, %cst_91 [1] : vector<32x32xf32> to vector<32xf32>
    %204 = vector.shape_cast %203 : vector<32xf32> to vector<32x1xf32>
    %205 = tpu.reciprocal %204 {approx = true} : vector<32x1xf32> -> vector<32x1xf32>
    %206 = vector.broadcast %205 : vector<32x1xf32> to vector<32x32xf32>
    %207 = arith.mulf %202, %206 : vector<32x32xf32>
    %208 = arith.truncf %207 : vector<32x32xf32> to vector<32x32xbf16>
    %209 = vector.extract_strided_slice %188 {offsets = [0, 0], sizes = [32, 16], strides = [1, 1]} : vector<32x32xf32> to vector<32x16xf32>
    %210 = arith.truncf %209 : vector<32x16xf32> to vector<32x16xbf16>
    %cst_92 = arith.constant dense<0.000000e+00> : vector<32x16xf32>
    %211 = tpu.matmul %208, %210, %cst_92 {dimension_numbers = #tpu.dot_dimension_numbers<[1], [0], [0], [1], [0, 0, 1, 1], [], []>} : vector<32x32xbf16>, vector<32x16xbf16>, vector<32x16xf32> -> vector<32x16xf32>
    %212 = arith.truncf %211 : vector<32x16xf32> to vector<32x16xbf16>
    %213 = vector.extract_strided_slice %189 {offsets = [0, 0], sizes = [16, 32], strides = [1, 1]} : vector<32x32xbf16> to vector<16x32xbf16>
    %cst_93 = arith.constant dense<0.000000e+00> : vector<32x32xf32>
    %214 = tpu.matmul %212, %213, %cst_93 {dimension_numbers = #tpu.dot_dimension_numbers<[1], [0], [0], [1], [0, 0, 1, 1], [], []>} : vector<32x16xbf16>, vector<16x32xbf16>, vector<32x32xf32> -> vector<32x32xf32>
    %215 = vector.extract_strided_slice %184 {offsets = [0, 16], sizes = [32, 16], strides = [1, 1]} : vector<32x32xf32> to vector<32x16xf32>
    %216 = arith.truncf %215 : vector<32x16xf32> to vector<32x16xbf16>
    %217 = vector.extract_strided_slice %186 {offsets = [0, 16], sizes = [32, 16], strides = [1, 1]} : vector<32x32xf32> to vector<32x16xf32>
    %218 = arith.truncf %217 : vector<32x16xf32> to vector<32x16xbf16>
    %cst_94 = arith.constant dense<0.000000e+00> : vector<32x32xf32>
    %219 = tpu.matmul %216, %218, %cst_94 {dimension_numbers = #tpu.dot_dimension_numbers<[1], [1], [0], [0], [0, 0, 1, 0], [], []>} : vector<32x16xbf16>, vector<32x16xbf16>, vector<32x32xf32> -> vector<32x32xf32>
    %cst_95 = arith.constant 2.500000e-01 : f32
    %220 = vector.broadcast %cst_95 : f32 to vector<32x32xf32>
    %221 = arith.mulf %219, %220 : vector<32x32xf32>
    %222 = arith.addf %221, %17 : vector<32x32xf32>
    %cst_96 = arith.constant dense<0xFF800000> : vector<32xf32>
    %223 = vector.multi_reduction <maximumf>, %222, %cst_96 [1] : vector<32x32xf32> to vector<32xf32>
    %224 = vector.shape_cast %223 : vector<32xf32> to vector<32x1xf32>
    %225 = vector.broadcast %224 : vector<32x1xf32> to vector<32x32xf32>
    %226 = arith.subf %222, %225 : vector<32x32xf32>
    %227 = math.exp %226 : vector<32x32xf32>
    %cst_97 = arith.constant dense<0.000000e+00> : vector<32xf32>
    %228 = vector.multi_reduction <add>, %227, %cst_97 [1] : vector<32x32xf32> to vector<32xf32>
    %229 = vector.shape_cast %228 : vector<32xf32> to vector<32x1xf32>
    %230 = tpu.reciprocal %229 {approx = true} : vector<32x1xf32> -> vector<32x1xf32>
    %231 = vector.broadcast %230 : vector<32x1xf32> to vector<32x32xf32>
    %232 = arith.mulf %227, %231 : vector<32x32xf32>
    %233 = arith.truncf %232 : vector<32x32xf32> to vector<32x32xbf16>
    %234 = vector.extract_strided_slice %188 {offsets = [0, 16], sizes = [32, 16], strides = [1, 1]} : vector<32x32xf32> to vector<32x16xf32>
    %235 = arith.truncf %234 : vector<32x16xf32> to vector<32x16xbf16>
    %cst_98 = arith.constant dense<0.000000e+00> : vector<32x16xf32>
    %236 = tpu.matmul %233, %235, %cst_98 {dimension_numbers = #tpu.dot_dimension_numbers<[1], [0], [0], [1], [0, 0, 1, 1], [], []>} : vector<32x32xbf16>, vector<32x16xbf16>, vector<32x16xf32> -> vector<32x16xf32>
    %237 = arith.truncf %236 : vector<32x16xf32> to vector<32x16xbf16>
    %238 = vector.extract_strided_slice %189 {offsets = [16, 0], sizes = [16, 32], strides = [1, 1]} : vector<32x32xbf16> to vector<16x32xbf16>
    %cst_99 = arith.constant dense<0.000000e+00> : vector<32x32xf32>
    %239 = tpu.matmul %237, %238, %cst_99 {dimension_numbers = #tpu.dot_dimension_numbers<[1], [0], [0], [1], [0, 0, 1, 1], [], []>} : vector<32x16xbf16>, vector<16x32xbf16>, vector<32x32xf32> -> vector<32x32xf32>
    %240 = arith.addf %214, %239 : vector<32x32xf32>
    %241 = arith.addf %157, %240 : vector<32x32xf32>
    %c0_100 = arith.constant 0 : index
    %c0_101 = arith.constant 0 : index
    %242 = vector.load %arg30[%c0_100, %c0_101] : memref<1x32xf32, #tpu.memory_space<vmem>>, vector<1x32xf32>
    %243 = vector.broadcast %242 : vector<1x32xf32> to vector<32x32xf32>
    %244 = arith.addf %241, %243 : vector<32x32xf32>
    %cst_102 = arith.constant dense<0.000000e+00> : vector<32xf32>
    %245 = vector.multi_reduction <add>, %244, %cst_102 [1] : vector<32x32xf32> to vector<32xf32>
    %246 = vector.shape_cast %245 : vector<32xf32> to vector<32x1xf32>
    %cst_103 = arith.constant 3.200000e+01 : f32
    %247 = vector.broadcast %cst_103 : f32 to vector<32x1xf32>
    %248 = arith.divf %246, %247 : vector<32x1xf32>
    %249 = vector.broadcast %248 : vector<32x1xf32> to vector<32x32xf32>
    %250 = arith.subf %244, %249 : vector<32x32xf32>
    %251 = arith.mulf %250, %250 : vector<32x32xf32>
    %cst_104 = arith.constant dense<0.000000e+00> : vector<32xf32>
    %252 = vector.multi_reduction <add>, %251, %cst_104 [1] : vector<32x32xf32> to vector<32xf32>
    %253 = vector.shape_cast %252 : vector<32xf32> to vector<32x1xf32>
    %cst_105 = arith.constant 3.200000e+01 : f32
    %254 = vector.broadcast %cst_105 : f32 to vector<32x1xf32>
    %255 = arith.divf %253, %254 : vector<32x1xf32>
    %256 = vector.broadcast %248 : vector<32x1xf32> to vector<32x32xf32>
    %257 = arith.subf %244, %256 : vector<32x32xf32>
    %cst_106 = arith.constant 9.99999974E-6 : f32
    %258 = vector.broadcast %cst_106 : f32 to vector<32x1xf32>
    %259 = arith.addf %255, %258 : vector<32x1xf32>
    %260 = math.rsqrt %259 : vector<32x1xf32>
    %261 = vector.broadcast %260 : vector<32x1xf32> to vector<32x32xf32>
    %262 = arith.mulf %257, %261 : vector<32x32xf32>
    %c0_107 = arith.constant 0 : index
    %c0_108 = arith.constant 0 : index
    %263 = vector.load %arg31[%c0_107, %c0_108] : memref<1x32xf32, #tpu.memory_space<vmem>>, vector<1x32xf32>
    %264 = vector.broadcast %263 : vector<1x32xf32> to vector<32x32xf32>
    %265 = arith.mulf %262, %264 : vector<32x32xf32>
    %c0_109 = arith.constant 0 : index
    %c0_110 = arith.constant 0 : index
    %266 = vector.load %arg32[%c0_109, %c0_110] : memref<1x32xf32, #tpu.memory_space<vmem>>, vector<1x32xf32>
    %267 = vector.broadcast %266 : vector<1x32xf32> to vector<32x32xf32>
    %268 = arith.addf %265, %267 : vector<32x32xf32>
    %269 = arith.truncf %268 : vector<32x32xf32> to vector<32x32xbf16>
    %c0_111 = arith.constant 0 : index
    %c0_112 = arith.constant 0 : index
    %270 = vector.load %arg33[%c0_111, %c0_112] : memref<32x256xbf16, #tpu.memory_space<vmem>>, vector<32x256xbf16>
    %cst_113 = arith.constant dense<0.000000e+00> : vector<32x256xf32>
    %271 = tpu.matmul %269, %270, %cst_113 {dimension_numbers = #tpu.dot_dimension_numbers<[1], [0], [0], [1], [0, 0, 1, 1], [], []>} : vector<32x32xbf16>, vector<32x256xbf16>, vector<32x256xf32> -> vector<32x256xf32>
    %c0_114 = arith.constant 0 : index
    %c0_115 = arith.constant 0 : index
    %272 = vector.load %arg34[%c0_114, %c0_115] : memref<1x256xf32, #tpu.memory_space<vmem>>, vector<1x256xf32>
    %273 = vector.broadcast %272 : vector<1x256xf32> to vector<32x256xf32>
    %274 = arith.addf %271, %273 : vector<32x256xf32>
    %275 = vector.extract_strided_slice %274 {offsets = [0, 0], sizes = [32, 128], strides = [1, 1]} : vector<32x256xf32> to vector<32x128xf32>
    %276 = vector.extract_strided_slice %274 {offsets = [0, 128], sizes = [32, 128], strides = [1, 1]} : vector<32x256xf32> to vector<32x128xf32>
    %277 = arith.mulf %276, %276 : vector<32x128xf32>
    %278 = arith.mulf %276, %277 : vector<32x128xf32>
    %cst_116 = arith.constant 4.471500e-02 : f32
    %279 = vector.broadcast %cst_116 : f32 to vector<32x128xf32>
    %280 = arith.mulf %279, %278 : vector<32x128xf32>
    %281 = arith.addf %276, %280 : vector<32x128xf32>
    %cst_117 = arith.constant 0.797884583 : f32
    %282 = vector.broadcast %cst_117 : f32 to vector<32x128xf32>
    %283 = arith.mulf %282, %281 : vector<32x128xf32>
    %284 = math.tanh %283 : vector<32x128xf32>
    %cst_118 = arith.constant 1.000000e+00 : f32
    %285 = vector.broadcast %cst_118 : f32 to vector<32x128xf32>
    %286 = arith.addf %285, %284 : vector<32x128xf32>
    %cst_119 = arith.constant 5.000000e-01 : f32
    %287 = vector.broadcast %cst_119 : f32 to vector<32x128xf32>
    %288 = arith.mulf %287, %286 : vector<32x128xf32>
    %289 = arith.mulf %276, %288 : vector<32x128xf32>
    %290 = arith.mulf %275, %289 : vector<32x128xf32>
    %291 = arith.truncf %290 : vector<32x128xf32> to vector<32x128xbf16>
    %c0_120 = arith.constant 0 : index
    %c0_121 = arith.constant 0 : index
    %292 = vector.load %arg35[%c0_120, %c0_121] : memref<128x32xbf16, #tpu.memory_space<vmem>>, vector<128x32xbf16>
    %cst_122 = arith.constant dense<0.000000e+00> : vector<32x32xf32>
    %293 = tpu.matmul %291, %292, %cst_122 {dimension_numbers = #tpu.dot_dimension_numbers<[1], [0], [0], [1], [0, 0, 1, 1], [], []>} : vector<32x128xbf16>, vector<128x32xbf16>, vector<32x32xf32> -> vector<32x32xf32>
    %294 = arith.addf %244, %293 : vector<32x32xf32>
    %c0_123 = arith.constant 0 : index
    %c0_124 = arith.constant 0 : index
    %295 = vector.load %arg36[%c0_123, %c0_124] : memref<1x32xf32, #tpu.memory_space<vmem>>, vector<1x32xf32>
    %296 = vector.broadcast %295 : vector<1x32xf32> to vector<32x32xf32>
    %297 = arith.addf %294, %296 : vector<32x32xf32>
    %298 = arith.truncf %297 : vector<32x32xf32> to vector<32x32xbf16>
    %c0_125 = arith.constant 0 : index
    %c0_126 = arith.constant 0 : index
    %299 = vector.load %arg9[%c0_125, %c0_126] : memref<2x8xf32, #tpu.memory_space<vmem>>, vector<2x8xf32>
    %300 = arith.truncf %299 : vector<2x8xf32> to vector<2x8xbf16>
    %c0_127 = arith.constant 0 : index
    %c0_128 = arith.constant 0 : index
    %301 = vector.load %arg37[%c0_127, %c0_128] : memref<8x32xbf16, #tpu.memory_space<vmem>>, vector<8x32xbf16>
    %cst_129 = arith.constant dense<0.000000e+00> : vector<2x32xf32>
    %302 = tpu.matmul %300, %301, %cst_129 {dimension_numbers = #tpu.dot_dimension_numbers<[1], [0], [0], [1], [0, 0, 1, 1], [], []>} : vector<2x8xbf16>, vector<8x32xbf16>, vector<2x32xf32> -> vector<2x32xf32>
    %c0_130 = arith.constant 0 : index
    %c0_131 = arith.constant 0 : index
    %303 = vector.load %arg38[%c0_130, %c0_131] : memref<1x32xf32, #tpu.memory_space<vmem>>, vector<1x32xf32>
    %304 = vector.broadcast %303 : vector<1x32xf32> to vector<2x32xf32>
    %305 = arith.addf %302, %304 : vector<2x32xf32>
    %306 = arith.negf %305 : vector<2x32xf32>
    %307 = math.exp %306 : vector<2x32xf32>
    %cst_132 = arith.constant 1.000000e+00 : f32
    %308 = vector.broadcast %cst_132 : f32 to vector<2x32xf32>
    %309 = arith.addf %308, %307 : vector<2x32xf32>
    %310 = arith.divf %308, %309 : vector<2x32xf32>
    %311 = arith.mulf %305, %310 : vector<2x32xf32>
    %312 = arith.truncf %311 : vector<2x32xf32> to vector<2x32xbf16>
    %c0_133 = arith.constant 0 : index
    %c0_134 = arith.constant 0 : index
    %313 = vector.load %arg39[%c0_133, %c0_134] : memref<32x32xbf16, #tpu.memory_space<vmem>>, vector<32x32xbf16>
    %cst_135 = arith.constant dense<0.000000e+00> : vector<2x32xf32>
    %314 = tpu.matmul %312, %313, %cst_135 {dimension_numbers = #tpu.dot_dimension_numbers<[1], [0], [0], [1], [0, 0, 1, 1], [], []>} : vector<2x32xbf16>, vector<32x32xbf16>, vector<2x32xf32> -> vector<2x32xf32>
    %c0_136 = arith.constant 0 : index
    %c0_137 = arith.constant 0 : index
    %315 = vector.load %arg40[%c0_136, %c0_137] : memref<1x32xf32, #tpu.memory_space<vmem>>, vector<1x32xf32>
    %316 = vector.broadcast %315 : vector<1x32xf32> to vector<2x32xf32>
    %317 = arith.addf %314, %316 : vector<2x32xf32>
    %318 = arith.negf %317 : vector<2x32xf32>
    %319 = math.exp %318 : vector<2x32xf32>
    %cst_138 = arith.constant 1.000000e+00 : f32
    %320 = vector.broadcast %cst_138 : f32 to vector<2x32xf32>
    %321 = arith.addf %320, %319 : vector<2x32xf32>
    %322 = arith.divf %320, %321 : vector<2x32xf32>
    %323 = arith.mulf %317, %322 : vector<2x32xf32>
    %324 = arith.truncf %323 : vector<2x32xf32> to vector<2x32xbf16>
    %c0_139 = arith.constant 0 : index
    %c0_140 = arith.constant 0 : index
    %325 = vector.load %arg45[%c0_139, %c0_140] : memref<32x8xbf16, #tpu.memory_space<vmem>>, vector<32x8xbf16>
    %cst_141 = arith.constant dense<0.000000e+00> : vector<2x8xf32>
    %326 = tpu.matmul %324, %325, %cst_141 {dimension_numbers = #tpu.dot_dimension_numbers<[1], [0], [0], [1], [0, 0, 1, 1], [], []>} : vector<2x32xbf16>, vector<32x8xbf16>, vector<2x8xf32> -> vector<2x8xf32>
    %c0_142 = arith.constant 0 : index
    %c0_143 = arith.constant 0 : index
    %327 = vector.load %arg46[%c0_142, %c0_143] : memref<1x8xf32, #tpu.memory_space<vmem>>, vector<1x8xf32>
    %328 = vector.broadcast %327 : vector<1x8xf32> to vector<2x8xf32>
    %329 = arith.addf %326, %328 : vector<2x8xf32>
    %c0_144 = arith.constant 0 : index
    %c0_145 = arith.constant 0 : index
    %330 = vector.load %arg6[%c0_144, %c0_145] : memref<64x2xf32, #tpu.memory_space<vmem>>, vector<64x2xf32>
    %cst_146 = arith.constant dense<0.000000e+00> : vector<64x8xf32>
    %331 = tpu.matmul %330, %329, %cst_146 {dimension_numbers = #tpu.dot_dimension_numbers<[1], [0], [0], [1], [0, 0, 1, 1], [], []>} : vector<64x2xf32>, vector<2x8xf32>, vector<64x8xf32> -> vector<64x8xf32>
    %c0_147 = arith.constant 0 : index
    %c0_148 = arith.constant 0 : index
    %332 = vector.load %arg4[%c0_147, %c0_148] : memref<64x64xf32, #tpu.memory_space<vmem>>, vector<64x64xf32>
    %c0_149 = arith.constant 0 : index
    %c0_150 = arith.constant 0 : index
    %333 = vector.load %arg5[%c0_149, %c0_150] : memref<64x64xf32, #tpu.memory_space<vmem>>, vector<64x64xf32>
    %c0_151 = arith.constant 0 : index
    %c0_152 = arith.constant 0 : index
    %334 = vector.load %arg10[%c0_151, %c0_152] : memref<64x4xf32, #tpu.memory_space<vmem>>, vector<64x4xf32>
    %cst_153 = arith.constant dense<0.000000e+00> : vector<64x4xf32>
    %335 = tpu.matmul %332, %334, %cst_153 {dimension_numbers = #tpu.dot_dimension_numbers<[1], [0], [0], [1], [0, 0, 1, 1], [], []>} : vector<64x64xf32>, vector<64x4xf32>, vector<64x4xf32> -> vector<64x4xf32>
    %cst_154 = arith.constant dense<0.000000e+00> : vector<64x4xf32>
    %336 = tpu.matmul %333, %334, %cst_154 {dimension_numbers = #tpu.dot_dimension_numbers<[1], [0], [0], [1], [0, 0, 1, 1], [], []>} : vector<64x64xf32>, vector<64x4xf32>, vector<64x4xf32> -> vector<64x4xf32>
    %337 = tpu.concatenate %335, %334, %336 in 1 : vector<64x4xf32>, vector<64x4xf32>, vector<64x4xf32> -> vector<64x12xf32>
    %338 = arith.truncf %337 : vector<64x12xf32> to vector<64x12xbf16>
    %c0_155 = arith.constant 0 : index
    %c0_156 = arith.constant 0 : index
    %339 = vector.load %arg41[%c0_155, %c0_156] : memref<12x8xbf16, #tpu.memory_space<vmem>>, vector<12x8xbf16>
    %cst_157 = arith.constant dense<0.000000e+00> : vector<64x8xf32>
    %340 = tpu.matmul %338, %339, %cst_157 {dimension_numbers = #tpu.dot_dimension_numbers<[1], [0], [0], [1], [0, 0, 1, 1], [], []>} : vector<64x12xbf16>, vector<12x8xbf16>, vector<64x8xf32> -> vector<64x8xf32>
    %c0_158 = arith.constant 0 : index
    %c0_159 = arith.constant 0 : index
    %341 = vector.load %arg42[%c0_158, %c0_159] : memref<1x8xf32, #tpu.memory_space<vmem>>, vector<1x8xf32>
    %342 = vector.broadcast %341 : vector<1x8xf32> to vector<64x8xf32>
    %343 = arith.addf %340, %342 : vector<64x8xf32>
    %344 = arith.negf %343 : vector<64x8xf32>
    %345 = math.exp %344 : vector<64x8xf32>
    %cst_160 = arith.constant 1.000000e+00 : f32
    %346 = vector.broadcast %cst_160 : f32 to vector<64x8xf32>
    %347 = arith.addf %346, %345 : vector<64x8xf32>
    %348 = arith.divf %346, %347 : vector<64x8xf32>
    %349 = arith.mulf %343, %348 : vector<64x8xf32>
    %cst_161 = arith.constant dense<0.000000e+00> : vector<64x8xf32>
    %350 = tpu.matmul %332, %349, %cst_161 {dimension_numbers = #tpu.dot_dimension_numbers<[1], [0], [0], [1], [0, 0, 1, 1], [], []>} : vector<64x64xf32>, vector<64x8xf32>, vector<64x8xf32> -> vector<64x8xf32>
    %cst_162 = arith.constant dense<0.000000e+00> : vector<64x8xf32>
    %351 = tpu.matmul %333, %349, %cst_162 {dimension_numbers = #tpu.dot_dimension_numbers<[1], [0], [0], [1], [0, 0, 1, 1], [], []>} : vector<64x64xf32>, vector<64x8xf32>, vector<64x8xf32> -> vector<64x8xf32>
    %352 = tpu.concatenate %350, %349, %351 in 1 : vector<64x8xf32>, vector<64x8xf32>, vector<64x8xf32> -> vector<64x24xf32>
    %353 = arith.truncf %352 : vector<64x24xf32> to vector<64x24xbf16>
    %c0_163 = arith.constant 0 : index
    %c0_164 = arith.constant 0 : index
    %354 = vector.load %arg43[%c0_163, %c0_164] : memref<24x8xbf16, #tpu.memory_space<vmem>>, vector<24x8xbf16>
    %cst_165 = arith.constant dense<0.000000e+00> : vector<64x8xf32>
    %355 = tpu.matmul %353, %354, %cst_165 {dimension_numbers = #tpu.dot_dimension_numbers<[1], [0], [0], [1], [0, 0, 1, 1], [], []>} : vector<64x24xbf16>, vector<24x8xbf16>, vector<64x8xf32> -> vector<64x8xf32>
    %c0_166 = arith.constant 0 : index
    %c0_167 = arith.constant 0 : index
    %356 = vector.load %arg44[%c0_166, %c0_167] : memref<1x8xf32, #tpu.memory_space<vmem>>, vector<1x8xf32>
    %357 = vector.broadcast %356 : vector<1x8xf32> to vector<64x8xf32>
    %358 = arith.addf %355, %357 : vector<64x8xf32>
    %359 = arith.addf %358, %331 : vector<64x8xf32>
    %360 = arith.negf %359 : vector<64x8xf32>
    %361 = math.exp %360 : vector<64x8xf32>
    %cst_168 = arith.constant 1.000000e+00 : f32
    %362 = vector.broadcast %cst_168 : f32 to vector<64x8xf32>
    %363 = arith.addf %362, %361 : vector<64x8xf32>
    %364 = arith.divf %362, %363 : vector<64x8xf32>
    %365 = arith.mulf %359, %364 : vector<64x8xf32>
    %cst_169 = arith.constant dense<0.000000e+00> : vector<64x8xf32>
    %366 = tpu.matmul %332, %365, %cst_169 {dimension_numbers = #tpu.dot_dimension_numbers<[1], [0], [0], [1], [0, 0, 1, 1], [], []>} : vector<64x64xf32>, vector<64x8xf32>, vector<64x8xf32> -> vector<64x8xf32>
    %cst_170 = arith.constant dense<0.000000e+00> : vector<64x8xf32>
    %367 = tpu.matmul %333, %365, %cst_170 {dimension_numbers = #tpu.dot_dimension_numbers<[1], [0], [0], [1], [0, 0, 1, 1], [], []>} : vector<64x64xf32>, vector<64x8xf32>, vector<64x8xf32> -> vector<64x8xf32>
    %368 = tpu.concatenate %366, %365, %367 in 1 : vector<64x8xf32>, vector<64x8xf32>, vector<64x8xf32> -> vector<64x24xf32>
    %369 = arith.truncf %368 : vector<64x24xf32> to vector<64x24xbf16>
    %c0_171 = arith.constant 0 : index
    %c0_172 = arith.constant 0 : index
    %370 = vector.load %arg47[%c0_171, %c0_172] : memref<24x8xbf16, #tpu.memory_space<vmem>>, vector<24x8xbf16>
    %cst_173 = arith.constant dense<0.000000e+00> : vector<64x8xf32>
    %371 = tpu.matmul %369, %370, %cst_173 {dimension_numbers = #tpu.dot_dimension_numbers<[1], [0], [0], [1], [0, 0, 1, 1], [], []>} : vector<64x24xbf16>, vector<24x8xbf16>, vector<64x8xf32> -> vector<64x8xf32>
    %c0_174 = arith.constant 0 : index
    %c0_175 = arith.constant 0 : index
    %372 = vector.load %arg48[%c0_174, %c0_175] : memref<1x8xf32, #tpu.memory_space<vmem>>, vector<1x8xf32>
    %373 = vector.broadcast %372 : vector<1x8xf32> to vector<64x8xf32>
    %374 = arith.addf %371, %373 : vector<64x8xf32>
    %375 = arith.addf %343, %374 : vector<64x8xf32>
    %cst_176 = arith.constant dense<0.000000e+00> : vector<64xf32>
    %376 = vector.multi_reduction <add>, %375, %cst_176 [1] : vector<64x8xf32> to vector<64xf32>
    %377 = vector.shape_cast %376 : vector<64xf32> to vector<64x1xf32>
    %cst_177 = arith.constant 8.000000e+00 : f32
    %378 = vector.broadcast %cst_177 : f32 to vector<64x1xf32>
    %379 = arith.divf %377, %378 : vector<64x1xf32>
    %380 = vector.broadcast %379 : vector<64x1xf32> to vector<64x8xf32>
    %381 = arith.subf %375, %380 : vector<64x8xf32>
    %382 = arith.mulf %381, %381 : vector<64x8xf32>
    %cst_178 = arith.constant dense<0.000000e+00> : vector<64xf32>
    %383 = vector.multi_reduction <add>, %382, %cst_178 [1] : vector<64x8xf32> to vector<64xf32>
    %384 = vector.shape_cast %383 : vector<64xf32> to vector<64x1xf32>
    %cst_179 = arith.constant 8.000000e+00 : f32
    %385 = vector.broadcast %cst_179 : f32 to vector<64x1xf32>
    %386 = arith.divf %384, %385 : vector<64x1xf32>
    %387 = vector.broadcast %379 : vector<64x1xf32> to vector<64x8xf32>
    %388 = arith.subf %375, %387 : vector<64x8xf32>
    %cst_180 = arith.constant 9.99999974E-6 : f32
    %389 = vector.broadcast %cst_180 : f32 to vector<64x1xf32>
    %390 = arith.addf %386, %389 : vector<64x1xf32>
    %391 = math.rsqrt %390 : vector<64x1xf32>
    %392 = vector.broadcast %391 : vector<64x1xf32> to vector<64x8xf32>
    %393 = arith.mulf %388, %392 : vector<64x8xf32>
    %c0_181 = arith.constant 0 : index
    %c0_182 = arith.constant 0 : index
    %394 = vector.load %arg49[%c0_181, %c0_182] : memref<1x8xf32, #tpu.memory_space<vmem>>, vector<1x8xf32>
    %395 = vector.broadcast %394 : vector<1x8xf32> to vector<64x8xf32>
    %396 = arith.mulf %393, %395 : vector<64x8xf32>
    %c0_183 = arith.constant 0 : index
    %c0_184 = arith.constant 0 : index
    %397 = vector.load %arg50[%c0_183, %c0_184] : memref<1x8xf32, #tpu.memory_space<vmem>>, vector<1x8xf32>
    %398 = vector.broadcast %397 : vector<1x8xf32> to vector<64x8xf32>
    %399 = arith.addf %396, %398 : vector<64x8xf32>
    %400 = arith.truncf %399 : vector<64x8xf32> to vector<64x8xbf16>
    %c0_185 = arith.constant 0 : index
    %c0_186 = arith.constant 0 : index
    %401 = vector.load %arg51[%c0_185, %c0_186] : memref<8x8xbf16, #tpu.memory_space<vmem>>, vector<8x8xbf16>
    %cst_187 = arith.constant dense<0.000000e+00> : vector<64x8xf32>
    %402 = tpu.matmul %400, %401, %cst_187 {dimension_numbers = #tpu.dot_dimension_numbers<[1], [0], [0], [1], [0, 0, 1, 1], [], []>} : vector<64x8xbf16>, vector<8x8xbf16>, vector<64x8xf32> -> vector<64x8xf32>
    %c0_188 = arith.constant 0 : index
    %c0_189 = arith.constant 0 : index
    %403 = vector.load %arg52[%c0_188, %c0_189] : memref<32x8xbf16, #tpu.memory_space<vmem>>, vector<32x8xbf16>
    %cst_190 = arith.constant dense<0.000000e+00> : vector<32x8xf32>
    %404 = tpu.matmul %298, %403, %cst_190 {dimension_numbers = #tpu.dot_dimension_numbers<[1], [0], [0], [1], [0, 0, 1, 1], [], []>} : vector<32x32xbf16>, vector<32x8xbf16>, vector<32x8xf32> -> vector<32x8xf32>
    %c0_191 = arith.constant 0 : index
    %c0_192 = arith.constant 0 : index
    %405 = vector.load %arg53[%c0_191, %c0_192] : memref<32x8xbf16, #tpu.memory_space<vmem>>, vector<32x8xbf16>
    %cst_193 = arith.constant dense<0.000000e+00> : vector<32x8xf32>
    %406 = tpu.matmul %298, %405, %cst_193 {dimension_numbers = #tpu.dot_dimension_numbers<[1], [0], [0], [1], [0, 0, 1, 1], [], []>} : vector<32x32xbf16>, vector<32x8xbf16>, vector<32x8xf32> -> vector<32x8xf32>
    %407 = arith.truncf %402 : vector<64x8xf32> to vector<64x8xbf16>
    %408 = arith.truncf %404 : vector<32x8xf32> to vector<32x8xbf16>
    %cst_194 = arith.constant dense<0.000000e+00> : vector<64x32xf32>
    %409 = tpu.matmul %407, %408, %cst_194 {dimension_numbers = #tpu.dot_dimension_numbers<[1], [1], [0], [0], [0, 0, 1, 0], [], []>} : vector<64x8xbf16>, vector<32x8xbf16>, vector<64x32xf32> -> vector<64x32xf32>
    %cst_195 = arith.constant 0.353553385 : f32
    %410 = vector.broadcast %cst_195 : f32 to vector<64x32xf32>
    %411 = arith.mulf %409, %410 : vector<64x32xf32>
    %c0_196 = arith.constant 0 : index
    %c0_197 = arith.constant 0 : index
    %412 = vector.load %arg3[%c0_196, %c0_197] : memref<64x32xf32, #tpu.memory_space<vmem>>, vector<64x32xf32>
    %c0_198 = arith.constant 0 : index
    %c0_199 = arith.constant 0 : index
    %413 = vector.load %arg1[%c0_198, %c0_199] : memref<1x32xf32, #tpu.memory_space<vmem>>, vector<1x32xf32>
    %414 = vector.broadcast %413 : vector<1x32xf32> to vector<64x32xf32>
    %415 = arith.mulf %412, %414 : vector<64x32xf32>
    %cst_200 = arith.constant 1.000000e+00 : f32
    %416 = vector.broadcast %cst_200 : f32 to vector<64x32xf32>
    %417 = arith.subf %415, %416 : vector<64x32xf32>
    %cst_201 = arith.constant 1.000000e+04 : f32
    %418 = vector.broadcast %cst_201 : f32 to vector<64x32xf32>
    %419 = arith.mulf %417, %418 : vector<64x32xf32>
    %420 = arith.addf %411, %419 : vector<64x32xf32>
    %cst_202 = arith.constant dense<0xFF800000> : vector<64xf32>
    %421 = vector.multi_reduction <maximumf>, %420, %cst_202 [1] : vector<64x32xf32> to vector<64xf32>
    %422 = vector.shape_cast %421 : vector<64xf32> to vector<64x1xf32>
    %423 = vector.broadcast %422 : vector<64x1xf32> to vector<64x32xf32>
    %424 = arith.subf %420, %423 : vector<64x32xf32>
    %425 = math.exp %424 : vector<64x32xf32>
    %cst_203 = arith.constant dense<0.000000e+00> : vector<64xf32>
    %426 = vector.multi_reduction <add>, %425, %cst_203 [1] : vector<64x32xf32> to vector<64xf32>
    %427 = vector.shape_cast %426 : vector<64xf32> to vector<64x1xf32>
    %428 = tpu.reciprocal %427 {approx = true} : vector<64x1xf32> -> vector<64x1xf32>
    %429 = vector.broadcast %428 : vector<64x1xf32> to vector<64x32xf32>
    %430 = arith.mulf %425, %429 : vector<64x32xf32>
    %431 = arith.truncf %430 : vector<64x32xf32> to vector<64x32xbf16>
    %432 = arith.truncf %406 : vector<32x8xf32> to vector<32x8xbf16>
    %cst_204 = arith.constant dense<0.000000e+00> : vector<64x8xf32>
    %433 = tpu.matmul %431, %432, %cst_204 {dimension_numbers = #tpu.dot_dimension_numbers<[1], [0], [0], [1], [0, 0, 1, 1], [], []>} : vector<64x32xbf16>, vector<32x8xbf16>, vector<64x8xf32> -> vector<64x8xf32>
    %434 = arith.truncf %433 : vector<64x8xf32> to vector<64x8xbf16>
    %c0_205 = arith.constant 0 : index
    %c0_206 = arith.constant 0 : index
    %435 = vector.load %arg54[%c0_205, %c0_206] : memref<8x8xbf16, #tpu.memory_space<vmem>>, vector<8x8xbf16>
    %cst_207 = arith.constant dense<0.000000e+00> : vector<64x8xf32>
    %436 = tpu.matmul %434, %435, %cst_207 {dimension_numbers = #tpu.dot_dimension_numbers<[1], [0], [0], [1], [0, 0, 1, 1], [], []>} : vector<64x8xbf16>, vector<8x8xbf16>, vector<64x8xf32> -> vector<64x8xf32>
    %c0_208 = arith.constant 0 : index
    %c0_209 = arith.constant 0 : index
    %437 = vector.load %arg55[%c0_208, %c0_209] : memref<1x8xf32, #tpu.memory_space<vmem>>, vector<1x8xf32>
    %438 = vector.broadcast %437 : vector<1x8xf32> to vector<64x8xf32>
    %439 = arith.addf %436, %438 : vector<64x8xf32>
    %440 = arith.addf %375, %439 : vector<64x8xf32>
    %441 = arith.negf %440 : vector<64x8xf32>
    %442 = math.exp %441 : vector<64x8xf32>
    %cst_210 = arith.constant 1.000000e+00 : f32
    %443 = vector.broadcast %cst_210 : f32 to vector<64x8xf32>
    %444 = arith.addf %443, %442 : vector<64x8xf32>
    %445 = arith.divf %443, %444 : vector<64x8xf32>
    %446 = arith.mulf %440, %445 : vector<64x8xf32>
    %cst_211 = arith.constant dense<0.000000e+00> : vector<64x8xf32>
    %447 = tpu.matmul %332, %446, %cst_211 {dimension_numbers = #tpu.dot_dimension_numbers<[1], [0], [0], [1], [0, 0, 1, 1], [], []>} : vector<64x64xf32>, vector<64x8xf32>, vector<64x8xf32> -> vector<64x8xf32>
    %cst_212 = arith.constant dense<0.000000e+00> : vector<64x8xf32>
    %448 = tpu.matmul %333, %446, %cst_212 {dimension_numbers = #tpu.dot_dimension_numbers<[1], [0], [0], [1], [0, 0, 1, 1], [], []>} : vector<64x64xf32>, vector<64x8xf32>, vector<64x8xf32> -> vector<64x8xf32>
    %449 = tpu.concatenate %447, %446, %448 in 1 : vector<64x8xf32>, vector<64x8xf32>, vector<64x8xf32> -> vector<64x24xf32>
    %450 = arith.truncf %449 : vector<64x24xf32> to vector<64x24xbf16>
    %c0_213 = arith.constant 0 : index
    %c0_214 = arith.constant 0 : index
    %451 = vector.load %arg56[%c0_213, %c0_214] : memref<24x4xbf16, #tpu.memory_space<vmem>>, vector<24x4xbf16>
    %cst_215 = arith.constant dense<0.000000e+00> : vector<64x4xf32>
    %452 = tpu.matmul %450, %451, %cst_215 {dimension_numbers = #tpu.dot_dimension_numbers<[1], [0], [0], [1], [0, 0, 1, 1], [], []>} : vector<64x24xbf16>, vector<24x4xbf16>, vector<64x4xf32> -> vector<64x4xf32>
    %c0_216 = arith.constant 0 : index
    %c0_217 = arith.constant 0 : index
    %453 = vector.load %arg57[%c0_216, %c0_217] : memref<1x4xf32, #tpu.memory_space<vmem>>, vector<1x4xf32>
    %454 = vector.broadcast %453 : vector<1x4xf32> to vector<64x4xf32>
    %455 = arith.addf %452, %454 : vector<64x4xf32>
    %c0_218 = arith.constant 0 : index
    %c0_219 = arith.constant 0 : index
    %456 = vector.load %arg58[%c0_218, %c0_219] : memref<64x4xf32, #tpu.memory_space<vmem>>, vector<64x4xf32>
    tpu.vector_store %arg58[%c0_218, %c0_219], %455 {strides = array<i32>} : memref<64x4xf32, #tpu.memory_space<vmem>>, vector<64x4xf32>,
    return
  }
}

</mosaic_0001>

<bundles_post_ra>
// kernel: forward.1
= control target key start
LH: loop header
LB: loop body
LE: loop exit
PB: predicated region body
PF: predicated region fallthrough
CT: control target
= control target key end

     0   :  { %s8416_s6 = smov 1   ;;  %s8417_s10 = smov 2   ;;  %s9962_s0 = inlined_call_operand.smem [shape: u32[59], index: -1, kind: input, shape index: {}] }
   0x1   :  { %s8520_s5 = sld [smem:[%s9962_s0]]   ;;  %s8418_s14 = smov 3  }
   0x2   :  { %s8525_s9 = sld [smem:[%s9962_s0 + %s8416_s6]]   ;;  %s8419_s18 = smov 4  }
   0x3   :  { %s8530_s13 = sld [smem:[%s9962_s0 + %s8417_s10]]   ;;  %s8420_s22 = smov 5  }
   0x4   :  { %s8535_s17 = sld [smem:[%s9962_s0 + %s8418_s14]]   ;;  %s8421_s26 = smov 6  }
   0x5   :  { %s8540_s21 = sld [smem:[%s9962_s0 + %s8419_s18]]   ;;  %s8422_s30 = smov 7  }
   0x6   :  { %s8545_s25 = sld [smem:[%s9962_s0 + %s8420_s22]]   ;;  %s8423_s4 = smov 8  }
   0x7   :  { %9988 = sst [smem:[#allocation64_spill]] %s8520_s5  ;;  %s8424_s10 = smov 9  }
   0x8   :  { %9989 = sst [smem:[#allocation65_spill]] %s8525_s9  ;;  %s8425_s15 = smov 10  }
   0x9   :  { %9990 = sst [smem:[#allocation66_spill]] %s8530_s13  ;;  %s8426_s20 = smov 11  }
   0xa   :  { %9991 = sst [smem:[#allocation67_spill]] %s8535_s17  ;;  %s8428_s1 = smov 13  }
   0xb   :  { %9992 = sst [smem:[#allocation68_spill]] %s8540_s21  ;;  %s8429_s7 = smov 14  }
   0xc   :  { %9993 = sst [smem:[#allocation69_spill]] %s8545_s25  ;;  %s8431_s22 = smov 16  }
   0xd   :  { %s8550_s29 = sld [smem:[%s9962_s0 + %s8421_s26]]   ;;  %s8427_s26 = smov 12  }
   0xe   :  { %s8555_s3 = sld [smem:[%s9962_s0 + %s8422_s30]]   ;;  %s8432_s28 = smov 17  }
   0xf   :  { %s8560_s8 = sld [smem:[%s9962_s0 + %s8423_s4]]  }
  0x10   :  { %s8565_s14 = sld [smem:[%s9962_s0 + %s8424_s10]]  }
  0x11   :  { %s8570_s19 = sld [smem:[%s9962_s0 + %s8425_s15]]   ;;  %s8430_s15 = smov 15  }
  0x12   :  { %s8575_s24 = sld [smem:[%s9962_s0 + %s8426_s20]]  }
  0x13   :  { %9994 = sst [smem:[#allocation70_spill]] %s8550_s29 }
  0x14   :  { %9995 = sst [smem:[#allocation71_spill]] %s8555_s3 }
  0x15   :  { %9996 = sst [smem:[#allocation72_spill]] %s8560_s8 }
  0x16   :  { %9997 = sst [smem:[#allocation73_spill]] %s8565_s14 }
  0x17   :  { %9998 = sst [smem:[#allocation74_spill]] %s8570_s19 }
  0x18   :  { %9999 = sst [smem:[#allocation75_spill]] %s8575_s24 }
  0x19   :  { %s8580_s30 = sld [smem:[%s9962_s0 + %s8427_s26]]  }
  0x1a   :  { %s8585_s6 = sld [smem:[%s9962_s0 + %s8428_s1]]  }
  0x1b   :  { %s8590_s12 = sld [smem:[%s9962_s0 + %s8429_s7]]   ;;  %s8433_s7 = smov 18  }
  0x1c   :  { %s8595_s20 = sld [smem:[%s9962_s0 + %s8430_s15]]   ;;  %s8434_s15 = smov 19  }
  0x1d   :  { %s8600_s27 = sld [smem:[%s9962_s0 + %s8431_s22]]   ;;  %s8435_s22 = smov 20  }
  0x1e   :  { %s8605_s4 = sld [smem:[%s9962_s0 + %s8432_s28]]   ;;  %s8436_s28 = smov 21  }
  0x1f   :  { %s8610_s17 = sld [smem:[%s9962_s0 + %s8433_s7]]   ;;  %s8437_s7 = smov 22  }
  0x20   :  { %10000 = sst [smem:[#allocation76_spill]] %s8585_s6 }
  0x21   :  { %10001 = sst [smem:[#allocation77_spill]] %s8590_s12 }
  0x22   :  { %10002 = sst [smem:[#allocation78_spill]] %s8595_s20 }
  0x23   :  { %10003 = sst [smem:[#allocation79_spill]] %s8600_s27 }
  0x24   :  { %s8615_s25 = sld [smem:[%s9962_s0 + %s8434_s15]]   ;;  %s8438_s15 = smov 23  }
  0x25   :  { %10004 = sst [smem:[#allocation80_spill]] %s8610_s17 }
  0x26   :  { %s8620_s21 = sld [smem:[%s9962_s0 + %s8435_s22]]   ;;  %s8439_s22 = smov 24  }
  0x27   :  { %s8625_s19 = sld [smem:[%s9962_s0 + %s8436_s28]]   ;;  %s8440_s28 = smov 25  }
  0x28   :  { %s8630_s29 = sld [smem:[%s9962_s0 + %s8437_s7]]   ;;  %s8441_s7 = smov 26  }
  0x29   :  { %s8635_s14 = sld [smem:[%s9962_s0 + %s8438_s15]]   ;;  %s8442_s15 = smov 27  }
  0x2a   :  { %s8645_s9 = sld [smem:[%s9962_s0 + %s8440_s28]]   ;;  %s8444_s28 = smov 29  }
  0x2b   :  { %s8655_s13 = sld [smem:[%s9962_s0 + %s8442_s15]]   ;;  %s8446_s15 = smov 31  }
  0x2c   :  { %10005 = sst [smem:[#allocation81_spill]] %s8620_s21 }
  0x2d   :  { %10006 = sst [smem:[#allocation82_spill]] %s8625_s19 }
  0x2e   :  { %10007 = sst [smem:[#allocation83_spill]] %s8630_s29 }
  0x2f   :  { %s8640_s21 = sld [smem:[%s9962_s0 + %s8439_s22]]   ;;  %s8443_s22 = smov 28  }
  0x30   :  { %s8650_s29 = sld [smem:[%s9962_s0 + %s8441_s7]]   ;;  %s8445_s7 = smov 30  }
  0x31   :  { %10010 = sst [smem:[#allocation86_spill]] %s8655_s13 }
  0x32   :  { %s8660_s12 = sld [smem:[%s9962_s0 + %s8443_s22]]   ;;  %s8447_s22 = smov 32  }
  0x33   :  { %s8665_s20 = sld [smem:[%s9962_s0 + %s8444_s28]]   ;;  %s8448_s28 = smov 33  }
  0x34   :  { %s8675_s6 = sld [smem:[%s9962_s0 + %s8446_s15]]   ;;  %s8450_s15 = smov 35  }
  0x35   :  { %10008 = sst [smem:[#allocation84_spill]] %s8640_s21 }
  0x36   :  { %10009 = sst [smem:[#allocation85_spill]] %s8650_s29 }
  0x37   :  { %s8670_s29 = sld [smem:[%s9962_s0 + %s8445_s7]]   ;;  %s8449_s7 = smov 34  }
  0x38   :  { %10011 = sst [smem:[#allocation87_spill]] %s8660_s12 }
  0x39   :  { %s8680_s12 = sld [smem:[%s9962_s0 + %s8447_s22]]   ;;  %s8451_s22 = smov 36  }
  0x3a   :  { %s8685_s8 = sld [smem:[%s9962_s0 + %s8448_s28]]   ;;  %s8452_s28 = smov 37  }
  0x3b   :  { %s8690_s3 = sld [smem:[%s9962_s0 + %s8449_s7]]   ;;  %s8453_s7 = smov 38  }
  0x3c   :  { %s8695_s5 = sld [smem:[%s9962_s0 + %s8450_s15]]   ;;  %s8454_s15 = smov 39  }
  0x3d   :  { %10012 = sst [smem:[#allocation88_spill]] %s8670_s29 }
  0x3e   :  { %s8710_s29 = sld [smem:[%s9962_s0 + %s8453_s7]]   ;;  %s8457_s7 = smov 42  }
  0x3f   :  { %10013 = sst [smem:[#allocation89_spill]] %s8680_s12 }
  0x40   :  { %10014 = sst [smem:[#allocation90_spill]] %s8685_s8 }
  0x41   :  { %s8700_s12 = sld [smem:[%s9962_s0 + %s8451_s22]]   ;;  %s8455_s22 = smov 40  }
  0x42   :  { %10015 = sst [smem:[#allocation91_spill]] %s8695_s5 }
  0x43   :  { %s8705_s8 = sld [smem:[%s9962_s0 + %s8452_s28]]   ;;  %s8456_s28 = smov 41  }
  0x44   :  { %10017 = sst [smem:[#allocation93_spill]] %s8710_s29 }
  0x45   :  { %s8715_s5 = sld [smem:[%s9962_s0 + %s8454_s15]]   ;;  %s8458_s15 = smov 43  }
  0x46   :  { %s8725_s13 = sld [smem:[%s9962_s0 + %s8456_s28]]   ;;  %s8460_s28 = smov 45  }
  0x47   :  { %10016 = sst [smem:[#allocation92_spill]] %s8700_s12 }
  0x48   :  { %s8720_s12 = sld [smem:[%s9962_s0 + %s8455_s22]]   ;;  %s8459_s22 = smov 44  }
  0x49   :  { %s8730_s29 = sld [smem:[%s9962_s0 + %s8457_s7]]   ;;  %s8461_s7 = smov 46  }
  0x4a   :  { %s8740_s21 = sld [smem:[%s9962_s0 + %s8459_s22]]   ;;  %s8463_s22 = smov 48  }
  0x4b   :  { %10018 = sst [smem:[#allocation94_spill]] %s8715_s5 }
  0x4c   :  { %10019 = sst [smem:[#allocation95_spill]] %s8725_s13 }
  0x4d   :  { %s8735_s5 = sld [smem:[%s9962_s0 + %s8458_s15]]   ;;  %s8462_s15 = smov 47  }
  0x4e   :  { %s8745_s13 = sld [smem:[%s9962_s0 + %s8460_s28]]   ;;  %s8464_s28 = smov 49  }
  0x4f   :  { %10020 = sst [smem:[#allocation96_spill]] %s8730_s29 }
  0x50   :  { %s8750_s29 = sld [smem:[%s9962_s0 + %s8461_s7]]   ;;  %s8465_s7 = smov 50  }
  0x51   :  { %s8760_s19 = sld [smem:[%s9962_s0 + %s8463_s22]]   ;;  %s8467_s22 = smov 52  }
  0x52   :  { %s8780_s17 = sld [smem:[%s9962_s0 + %s8467_s22]]   ;;  %s8471_s22 = smov 56  }
  0x53   :  { %10021 = sst [smem:[#allocation97_spill]] %s8735_s5 }
  0x54   :  { %10022 = sst [smem:[#allocation98_spill]] %s8745_s13 }
  0x55   :  { %s8755_s5 = sld [smem:[%s9962_s0 + %s8462_s15]]   ;;  %s8466_s15 = smov 51  }
  0x56   :  { %10023 = sst [smem:[#allocation99_spill]] %s8750_s29 }
  0x57   :  { %s8765_s13 = sld [smem:[%s9962_s0 + %s8464_s28]]   ;;  %s8468_s28 = smov 53  }
  0x58   :  { %s8770_s29 = sld [smem:[%s9962_s0 + %s8465_s7]]   ;;  %s8469_s7 = smov 54  }
  0x59   :  { %10027 = sst [smem:[#allocation103_spill]] %s8780_s17 }
  0x5a   :  { %s8790_s27 = sld [smem:[%s9962_s0 + %s8469_s7]]   ;;  %s8473_s7 = smov 58  }
  0x5b   :  { %10024 = sst [smem:[#allocation100_spill]] %s8755_s5 }
  0x5c   :  { %s8775_s5 = sld [smem:[%s9962_s0 + %s8466_s15]]   ;;  %s8470_s15 = smov 55  }
  0x5d   :  { %10025 = sst [smem:[#allocation101_spill]] %s8765_s13 }
  0x5e   :  { %s8785_s13 = sld [smem:[%s9962_s0 + %s8468_s28]]   ;;  %s8472_s28 = smov 57  }
  0x5f   :  { %s8800_s17 = sld [smem:[%s9962_s0 + %s8471_s22]]  }
  0x60   :  { %s8810_s24 = sld [smem:[%s9962_s0 + %s8473_s7]]  }
  0x62   :  { %10026 = sst [smem:[#allocation102_spill]] %s8775_s5 }
  0x63   :  { %s8795_s5 = sld [smem:[%s9962_s0 + %s8470_s15]]  }
  0x64   :  { %10028 = sst [smem:[#allocation104_spill]] %s8785_s13 }
  0x65   :  { %s8805_s13 = sld [smem:[%s9962_s0 + %s8472_s28]]  }
  0x66   :  { %122 = vsyncpa [#allocation3], 0 }
  0x67   :  { %123 = vsyncpa [#allocation5], 0 }
  0x68   :  { %124 = vsyncpa [#allocation8], 0 }
  0x69   :  { %125 = vsyncpa [#allocation11], 0 }
  0x6a   :  { %126 = vsyncpa [#allocation14], 0 }
  0x6b   :  { %127 = vsyncpa [#allocation17], 0 }
  0x6c   :  { %128 = vsyncpa [#allocation20], 0 }
  0x6d   :  { %129 = vsyncpa [#allocation23], 0 }
  0x6e   :  { %130 = vsyncpa [#allocation26], 0 }
  0x6f   :  { %131 = vsyncpa [#allocation29], 0 }
  0x70   :  { %132 = vsyncpa [#allocation32], 0 }
  0x71   :  { %133 = vsyncpa [#allocation35], 0 }
  0x72   :  { %134 = vsyncpa [#allocation38], 0 }
  0x73   :  { %135 = vsyncpa [#allocation41], 0 }
  0x74   :  { %136 = vsyncpa [#allocation44], 0 }
  0x75   :  { %137 = vsyncpa [#allocation47], 0  ;;  %s8474_s15 = smov [#allocation4]   ;;  %s8475_s0 = smov [#allocation7]  }
  0x76   :  { %s176_s16 = sshll.u32 %s8474_s15, 4  ;;  %s204_s18 = sshll.u32 %s8475_s0, 4  ;;  %s177_s16 = int_to_ptr.vmem [resolvable:$true] %s176_s16  ;;  %s205_s18 = int_to_ptr.vmem [resolvable:$true] %s204_s18 }
  0x77   :  { %s7792_s22 = scalar_lea.vmem %s177_s16, 16  ;;  %s7796_s23 = scalar_lea.vmem %s177_s16, 32 }
  0x78   :  { %p7793_p0 = scmp.ne.s32.totalorder %s177_s16, %s7792_s22  ;;  %p7797_p1 = scmp.lt.s32.totalorder %s177_s16, %s177_s16 }
  0x79   :  { %p7798_p2 = scmp.lt.s32.totalorder %s7796_s23, %s7792_s22 }
  0x7b   :  { %p7799_p3 = por %p7798_p2, %p7797_p1 }
  0x7d   :  { %p7800_p4 = pnand %p7799_p3, %p7793_p0 }
  0x7f   :  { %7803 = shalt.err (!%p7800_p4)
}
  0x80   :  { %179 = dma.hbm_to_vmem [thread:$0]  %s8580_s30, 16, %s177_s16, [#allocation5]  }
  0x81   :  { %s7812_s26 = scalar_lea.vmem %s205_s18, 16  ;;  %s7816_s28 = scalar_lea.vmem %s205_s18, 32 }
  0x82   :  { %p7813_p5 = scmp.ne.s32.totalorder %s205_s18, %s7812_s26  ;;  %p7817_p6 = scmp.lt.s32.totalorder %s205_s18, %s205_s18 }
  0x83   :  { %p7818_p7 = scmp.lt.s32.totalorder %s7816_s28, %s7812_s26 }
  0x85   :  { %p7819_p8 = por %p7818_p7, %p7817_p6 }
  0x87   :  { %p7820_p9 = pnand %p7819_p8, %p7813_p5 }
  0x89   :  { %7823 = shalt.err (!%p7820_p9)
}
  0x8a   :  { %207 = dma.hbm_to_vmem [thread:$0]  %s8605_s4, 16, %s205_s18, [#allocation8]  }
  0x8b   :  { %s8476_s1 = smov [#allocation10]   ;;  %s8477_s7 = smov [#allocation13]  }
  0x8c   :  { %s224_s2 = sshll.u32 %s8476_s1, 4  ;;  %s248_s10 = sshll.u32 %s8477_s7, 4  ;;  %s225_s2 = int_to_ptr.vmem [resolvable:$true] %s224_s2  ;;  %s249_s10 = int_to_ptr.vmem [resolvable:$true] %s248_s10 }
  0x8d   :  { %s7832_s11 = scalar_lea.vmem %s225_s2, 16  ;;  %s7836_s15 = scalar_lea.vmem %s225_s2, 32 }
  0x8e   :  { %p7833_p10 = scmp.ne.s32.totalorder %s225_s2, %s7832_s11  ;;  %p7837_p11 = scmp.lt.s32.totalorder %s225_s2, %s225_s2 }
  0x8f   :  { %p7838_p12 = scmp.lt.s32.totalorder %s7836_s15, %s7832_s11 }
  0x91   :  { %p7839_p13 = por %p7838_p12, %p7837_p11 }
  0x93   :  { %p7840_p0 = pnand %p7839_p13, %p7833_p10 }
  0x95   :  { %7843 = shalt.err (!%p7840_p0)
}
  0x96   :  { %227 = dma.hbm_to_vmem [thread:$0]  %s8615_s25, 16, %s225_s2, [#allocation11]  }
  0x97   :  { %s7852_s30 = scalar_lea.vmem %s249_s10, 16  ;;  %s7856_s16 = scalar_lea.vmem %s249_s10, 32 }
  0x98   :  { %p7853_p1 = scmp.ne.s32.totalorder %s249_s10, %s7852_s30  ;;  %p7857_p2 = scmp.lt.s32.totalorder %s249_s10, %s249_s10 }
  0x99   :  { %p7858_p3 = scmp.lt.s32.totalorder %s7856_s16, %s7852_s30 }
  0x9b   :  { %p7859_p4 = por %p7858_p3, %p7857_p2 }
  0x9d   :  { %p7860_p5 = pnand %p7859_p4, %p7853_p1 }
  0x9f   :  { %7863 = shalt.err (!%p7860_p5)
}
  0xa0   :  { %251 = dma.hbm_to_vmem [thread:$0]  %s8635_s14, 16, %s249_s10, [#allocation14]  }
  0xa1   :  { %s8478_s4 = smov [#allocation16]  }
  0xa2   :  { %s268_s0 = sshll.u32 %s8478_s4, 4  ;;  %s269_s0 = int_to_ptr.vmem [resolvable:$true] %s268_s0 }
  0xa3   :  { %s7872_s18 = scalar_lea.vmem %s269_s0, 16  ;;  %s7876_s22 = scalar_lea.vmem %s269_s0, 32 }
  0xa4   :  { %p7873_p6 = scmp.ne.s32.totalorder %s269_s0, %s7872_s18  ;;  %p7877_p7 = scmp.lt.s32.totalorder %s269_s0, %s269_s0 }
  0xa5   :  { %p7878_p8 = scmp.lt.s32.totalorder %s7876_s22, %s7872_s18 }
  0xa7   :  { %p7879_p9 = por %p7878_p8, %p7877_p7 }
  0xa9   :  { %p7880_p10 = pnand %p7879_p9, %p7873_p6 }
  0xab   :  { %7883 = shalt.err (!%p7880_p10)
}
  0xac   :  { %271 = dma.hbm_to_vmem [thread:$0]  %s8645_s9, 16, %s269_s0, [#allocation17]  }
  0xad   :  { %s8479_s25 = smov [#allocation19]   ;;  %s8480_s26 = smov [#allocation22]  }
  0xae   :  { %s293_s23 = sshll.u32 %s8479_s25, 4  ;;  %s316_s28 = sshll.u32 %s8480_s26, 4  ;;  %s294_s23 = int_to_ptr.vmem [resolvable:$true] %s293_s23  ;;  %s317_s28 = int_to_ptr.vmem [resolvable:$true] %s316_s28 }
  0xaf   :  { %s7892_s1 = scalar_lea.vmem %s294_s23, 256  ;;  %p7897_p12 = scmp.lt.s32.totalorder %s294_s23, %s294_s23 }
  0xb0   :  { %p7893_p11 = scmp.ne.s32.totalorder %s294_s23, %s7892_s1  ;;  %p7898_p13 = scmp.lt.s32.totalorder %s7892_s1, %s7892_s1 }
  0xb2   :  { %p7899_p0 = por %p7898_p13, %p7897_p12 }
  0xb4   :  { %p7900_p1 = pnand %p7899_p0, %p7893_p11 }
  0xb6   :  { %7903 = shalt.err (!%p7900_p1)
}
  0xb7   :  { %s8481_s14 = smov 64   ;;  %s8482_s2 = smov 4  }
  0xb8   :  { %299 = dma.hbm_to_vmem [thread:$0]  %s8665_s20, 256, %s294_s23, [#allocation20], %s8481_s14, %s8481_s14, %s8482_s2  }
  0xb9   :  { %s7912_s9 = scalar_lea.vmem %s317_s28, 16  ;;  %s7916_s7 = scalar_lea.vmem %s317_s28, 32 }
  0xba   :  { %p7913_p2 = scmp.ne.s32.totalorder %s317_s28, %s7912_s9  ;;  %p7917_p3 = scmp.lt.s32.totalorder %s317_s28, %s317_s28 }
  0xbb   :  { %p7918_p4 = scmp.lt.s32.totalorder %s7916_s7, %s7912_s9 }
  0xbd   :  { %p7919_p5 = por %p7918_p4, %p7917_p3 }
  0xbf   :  { %p7920_p6 = pnand %p7919_p5, %p7913_p2 }
  0xc1   :  { %7923 = shalt.err (!%p7920_p6)
}
  0xc2   :  { %319 = dma.hbm_to_vmem [thread:$0]  %s8675_s6, 16, %s317_s28, [#allocation23]  }
  0xc3   :  { %s8483_s10 = smov [#allocation25]   ;;  %s8484_s15 = smov [#allocation28]  }
  0xc4   :  { %s338_s11 = sshll.u32 %s8483_s10, 4  ;;  %s360_s30 = sshll.u32 %s8484_s15, 4  ;;  %s339_s11 = int_to_ptr.vmem [resolvable:$true] %s338_s11  ;;  %s361_s30 = int_to_ptr.vmem [resolvable:$true] %s360_s30 }
  0xc5   :  { %s7932_s16 = scalar_lea.vmem %s339_s11, 32  ;;  %p7937_p8 = scmp.lt.s32.totalorder %s339_s11, %s339_s11 }
  0xc6   :  { %p7933_p7 = scmp.ne.s32.totalorder %s339_s11, %s7932_s16  ;;  %p7938_p9 = scmp.lt.s32.totalorder %s7932_s16, %s7932_s16 }
  0xc8   :  { %p7939_p10 = por %p7938_p9, %p7937_p8 }
  0xca   :  { %p7940_p11 = pnand %p7939_p10, %p7933_p7 }
  0xcc   :  { %7943 = shalt.err (!%p7940_p11)
}
  0xcd   :  { %341 = dma.hbm_to_vmem [thread:$0]  %s8690_s3, 32, %s339_s11, [#allocation26]  }
  0xce   :  { %s7952_s20 = scalar_lea.vmem %s361_s30, 64  ;;  %p7957_p13 = scmp.lt.s32.totalorder %s361_s30, %s361_s30 }
  0xcf   :  { %p7953_p12 = scmp.ne.s32.totalorder %s361_s30, %s7952_s20  ;;  %p7958_p0 = scmp.lt.s32.totalorder %s7952_s20, %s7952_s20 }
  0xd1   :  { %p7959_p1 = por %p7958_p0, %p7957_p13 }
  0xd3   :  { %p7960_p2 = pnand %p7959_p1, %p7953_p12 }
  0xd5   :  { %7963 = shalt.err (!%p7960_p2)
}
  0xd6   :  { %363 = dma.hbm_to_vmem [thread:$0]  %s8705_s8, 64, %s361_s30, [#allocation29]  }
  0xd7   :  { %s8485_s6 = smov [#allocation31]   ;;  %s8486_s0 = smov [#allocation34]  }
  0xd8   :  { %s382_s4 = sshll.u32 %s8485_s6, 4  ;;  %s406_s18 = sshll.u32 %s8486_s0, 4  ;;  %s383_s4 = int_to_ptr.vmem [resolvable:$true] %s382_s4  ;;  %s407_s18 = int_to_ptr.vmem [resolvable:$true] %s406_s18 }
  0xd9   :  { %s7972_s22 = scalar_lea.vmem %s383_s4, 16  ;;  %s7976_s25 = scalar_lea.vmem %s383_s4, 32 }
  0xda   :  { %p7973_p3 = scmp.ne.s32.totalorder %s383_s4, %s7972_s22  ;;  %p7977_p4 = scmp.lt.s32.totalorder %s383_s4, %s383_s4 }
  0xdb   :  { %p7978_p5 = scmp.lt.s32.totalorder %s7976_s25, %s7972_s22 }
  0xdd   :  { %p7979_p6 = por %p7978_p5, %p7977_p4 }
  0xdf   :  { %p7980_p7 = pnand %p7979_p6, %p7973_p3 }
  0xe1   :  { %7983 = shalt.err (!%p7980_p7)
}
  0xe2   :  { %385 = dma.hbm_to_vmem [thread:$0]  %s8720_s12, 16, %s383_s4, [#allocation32]  }
  0xe3   :  { %s7992_s3 = scalar_lea.vmem %s407_s18, 16  ;;  %s7996_s23 = scalar_lea.vmem %s407_s18, 32 }
  0xe4   :  { %p7993_p8 = scmp.ne.s32.totalorder %s407_s18, %s7992_s3  ;;  %p7997_p9 = scmp.lt.s32.totalorder %s407_s18, %s407_s18 }
  0xe5   :  { %p7998_p10 = scmp.lt.s32.totalorder %s7996_s23, %s7992_s3 }
  0xe7   :  { %p7999_p11 = por %p7998_p10, %p7997_p9 }
  0xe9   :  { %p8000_p12 = pnand %p7999_p11, %p7993_p8 }
  0xeb   :  { %8003 = shalt.err (!%p8000_p12)
}
  0xec   :  { %409 = dma.hbm_to_vmem [thread:$0]  %s8740_s21, 16, %s407_s18, [#allocation35]  }
  0xed   :  { %s8487_s8 = smov [#allocation37]   ;;  %s8488_s28 = smov [#allocation40]  }
  0xee   :  { %s430_s26 = sshll.u32 %s8487_s8, 4  ;;  %s450_s1 = sshll.u32 %s8488_s28, 4  ;;  %s431_s26 = int_to_ptr.vmem [resolvable:$true] %s430_s26  ;;  %s451_s1 = int_to_ptr.vmem [resolvable:$true] %s450_s1 }
  0xef   :  { %s8012_s9 = scalar_lea.vmem %s431_s26, 16  ;;  %s8016_s7 = scalar_lea.vmem %s431_s26, 32 }
  0xf0   :  { %p8013_p13 = scmp.ne.s32.totalorder %s431_s26, %s8012_s9  ;;  %p8017_p0 = scmp.lt.s32.totalorder %s431_s26, %s431_s26 }
  0xf1   :  { %p8018_p1 = scmp.lt.s32.totalorder %s8016_s7, %s8012_s9 }
  0xf3   :  { %p8019_p2 = por %p8018_p1, %p8017_p0 }
  0xf5   :  { %p8020_p3 = pnand %p8019_p2, %p8013_p13 }
  0xf7   :  { %8023 = shalt.err (!%p8020_p3)
}
  0xf8   :  { %433 = dma.hbm_to_vmem [thread:$0]  %s8760_s19, 16, %s431_s26, [#allocation38]  }
  0xf9   :  { %s8032_s12 = scalar_lea.vmem %s451_s1, 16  ;;  %s8036_s10 = scalar_lea.vmem %s451_s1, 32 }
  0xfa   :  { %p8033_p4 = scmp.ne.s32.totalorder %s451_s1, %s8032_s12  ;;  %p8037_p5 = scmp.lt.s32.totalorder %s451_s1, %s451_s1 }
  0xfb   :  { %p8038_p6 = scmp.lt.s32.totalorder %s8036_s10, %s8032_s12 }
  0xfd   :  { %p8039_p7 = por %p8038_p6, %p8037_p5 }
  0xff   :  { %p8040_p8 = pnand %p8039_p7, %p8033_p4 }
 0x101   :  { %8043 = shalt.err (!%p8040_p8)
}
 0x102   :  { %453 = dma.hbm_to_vmem [thread:$0]  %s8770_s29, 16, %s451_s1, [#allocation41]  }
 0x103   :  { %s8489_s21 = smov [#allocation43]   ;;  %s8490_s15 = smov [#allocation2]  }
 0x104   :  { %s474_s11 = sshll.u32 %s8489_s21, 4  ;;  %s166_s30 = sshll.u32 %s8490_s15, 4  ;;  %s475_s11 = int_to_ptr.vmem [resolvable:$true] %s474_s11  ;;  %s167_s30 = int_to_ptr.vmem [resolvable:$true] %s166_s30 }
 0x105   :  { %s8052_s16 = scalar_lea.vmem %s475_s11, 64  ;;  %p8057_p10 = scmp.lt.s32.totalorder %s475_s11, %s475_s11 }
 0x106   :  { %p8053_p9 = scmp.ne.s32.totalorder %s475_s11, %s8052_s16  ;;  %p8058_p11 = scmp.lt.s32.totalorder %s8052_s16, %s8052_s16 }
 0x108   :  { %p8059_p12 = por %p8058_p11, %p8057_p10 }
 0x10a   :  { %p8060_p13 = pnand %p8059_p12, %p8053_p9 }
 0x10c   :  { %8063 = shalt.err (!%p8060_p13)
}
 0x10d   :  { %477 = dma.hbm_to_vmem [thread:$0]  %s8790_s27, 64, %s475_s11, [#allocation44]  }
 0x10e   :  { %s8072_s19 = scalar_lea.vmem %s167_s30, 16  ;;  %s8076_s20 = scalar_lea.vmem %s167_s30, 32 }
 0x10f   :  { %p8073_p0 = scmp.ne.s32.totalorder %s167_s30, %s8072_s19  ;;  %p8077_p1 = scmp.lt.s32.totalorder %s167_s30, %s167_s30 }
 0x110   :  { %p8078_p2 = scmp.lt.s32.totalorder %s8076_s20, %s8072_s19 }
 0x112   :  { %p8079_p3 = por %p8078_p2, %p8077_p1 }
 0x114   :  { %p8080_p4 = pnand %p8079_p3, %p8073_p0 }
 0x116   :  { %8083 = shalt.err (!%p8080_p4)
}
 0x117   :  { %s10029_s29 = sld [smem:[#allocation75_spill]]  ;;  %s8491_s6 = smov [#allocation6]  }
 0x118   :  { %s191_s4 = sshll.u32 %s8491_s6, 4  ;;  %s8492_s0 = smov [#allocation9]   ;;  %s192_s4 = int_to_ptr.vmem [resolvable:$true] %s191_s4 }
 0x119   :  { %s214_s18 = sshll.u32 %s8492_s0, 4  ;;  %s8092_s22 = scalar_lea.vmem %s192_s4, 256  ;;  %s215_s18 = int_to_ptr.vmem [resolvable:$true] %s214_s18 }
 0x11a   :  { %p8093_p5 = scmp.ne.s32.totalorder %s192_s4, %s8092_s22  ;;  %p8097_p6 = scmp.lt.s32.totalorder %s192_s4, %s192_s4 }
 0x11b   :  { %p8098_p7 = scmp.lt.s32.totalorder %s8092_s22, %s8092_s22 }
 0x11d   :  { %169 = dma.hbm_to_vmem [thread:$0]  %s10029_s29, 16, %s167_s30, [#allocation3]  }
 0x11e   :  { %p8099_p8 = por %p8098_p7, %p8097_p6 }
 0x120   :  { %p8100_p9 = pnand %p8099_p8, %p8093_p5 }
 0x122   :  { %8103 = shalt.err (!%p8100_p9)
}
 0x123   :  { %s10030_s27 = sld [smem:[#allocation79_spill]]  ;;  %s8112_s25 = scalar_lea.vmem %s215_s18, 16 }
 0x124   :  { %p8113_p10 = scmp.ne.s32.totalorder %s215_s18, %s8112_s25  ;;  %s8116_s3 = scalar_lea.vmem %s215_s18, 32 }
 0x125   :  { %p8117_p11 = scmp.lt.s32.totalorder %s215_s18, %s215_s18  ;;  %p8118_p12 = scmp.lt.s32.totalorder %s8116_s3, %s8112_s25 }
 0x127   :  { %p8119_p13 = por %p8118_p12, %p8117_p11 }
 0x129   :  { %197 = dma.hbm_to_vmem [thread:$0]  %s10030_s27, 256, %s192_s4, [#allocation5], %s8481_s14, %s8481_s14, %s8482_s2  }
 0x12a   :  { %p8120_p0 = pnand %p8119_p13, %p8113_p10 }
 0x12c   :  { %8123 = shalt.err (!%p8120_p0)
}
 0x12d   :  { %s10031_s23 = sld [smem:[#allocation80_spill]]  ;;  %s8493_s8 = smov [#allocation12]  }
 0x12e   :  { %s236_s26 = sshll.u32 %s8493_s8, 4  ;;  %s8494_s28 = smov [#allocation15]   ;;  %s237_s26 = int_to_ptr.vmem [resolvable:$true] %s236_s26 }
 0x12f   :  { %s258_s1 = sshll.u32 %s8494_s28, 4  ;;  %s8132_s9 = scalar_lea.vmem %s237_s26, 32  ;;  %s259_s1 = int_to_ptr.vmem [resolvable:$true] %s258_s1 }
 0x130   :  { %p8133_p1 = scmp.ne.s32.totalorder %s237_s26, %s8132_s9  ;;  %p8137_p2 = scmp.lt.s32.totalorder %s237_s26, %s237_s26 }
 0x131   :  { %p8138_p3 = scmp.lt.s32.totalorder %s8132_s9, %s8132_s9 }
 0x133   :  { %217 = dma.hbm_to_vmem [thread:$0]  %s10031_s23, 16, %s215_s18, [#allocation8]  }
 0x134   :  { %p8139_p4 = por %p8138_p3, %p8137_p2 }
 0x136   :  { %p8140_p5 = pnand %p8139_p4, %p8133_p1 }
 0x138   :  { %8143 = shalt.err (!%p8140_p5)
}
 0x139   :  { %s10032_s7 = sld [smem:[#allocation82_spill]]  ;;  %s8152_s12 = scalar_lea.vmem %s259_s1, 16 }
 0x13a   :  { %p8153_p6 = scmp.ne.s32.totalorder %s259_s1, %s8152_s12  ;;  %s8156_s10 = scalar_lea.vmem %s259_s1, 32 }
 0x13b   :  { %p8157_p7 = scmp.lt.s32.totalorder %s259_s1, %s259_s1  ;;  %p8158_p8 = scmp.lt.s32.totalorder %s8156_s10, %s8152_s12 }
 0x13d   :  { %p8159_p9 = por %p8158_p8, %p8157_p7 }
 0x13f   :  { %239 = dma.hbm_to_vmem [thread:$0]  %s10032_s7, 32, %s237_s26, [#allocation11]  }
 0x140   :  { %p8160_p10 = pnand %p8159_p9, %p8153_p6 }
 0x142   :  { %8163 = shalt.err (!%p8160_p10)
}
 0x143   :  { %s10033_s21 = sld [smem:[#allocation84_spill]]  ;;  %s8495_s11 = smov [#allocation18]  }
 0x144   :  { %s279_s15 = sshll.u32 %s8495_s11, 4  ;;  %s8496_s30 = smov [#allocation21]   ;;  %s280_s15 = int_to_ptr.vmem [resolvable:$true] %s279_s15 }
 0x145   :  { %s306_s16 = sshll.u32 %s8496_s30, 4  ;;  %s8172_s19 = scalar_lea.vmem %s280_s15, 256  ;;  %s307_s16 = int_to_ptr.vmem [resolvable:$true] %s306_s16 }
 0x146   :  { %p8173_p11 = scmp.ne.s32.totalorder %s280_s15, %s8172_s19  ;;  %p8177_p12 = scmp.lt.s32.totalorder %s280_s15, %s280_s15 }
 0x147   :  { %p8178_p13 = scmp.lt.s32.totalorder %s8172_s19, %s8172_s19 }
 0x149   :  { %261 = dma.hbm_to_vmem [thread:$0]  %s10033_s21, 16, %s259_s1, [#allocation14]  }
 0x14a   :  { %p8179_p0 = por %p8178_p13, %p8177_p12 }
 0x14c   :  { %p8180_p1 = pnand %p8179_p0, %p8173_p11 }
 0x14e   :  { %8183 = shalt.err (!%p8180_p1)
}
 0x14f   :  { %s10034_s20 = sld [smem:[#allocation86_spill]]  ;;  %s8192_s29 = scalar_lea.vmem %s307_s16, 16 }
 0x150   :  { %p8193_p2 = scmp.ne.s32.totalorder %s307_s16, %s8192_s29  ;;  %s8196_s6 = scalar_lea.vmem %s307_s16, 32 }
 0x151   :  { %p8197_p3 = scmp.lt.s32.totalorder %s307_s16, %s307_s16  ;;  %p8198_p4 = scmp.lt.s32.totalorder %s8196_s6, %s8192_s29 }
 0x153   :  { %p8199_p5 = por %p8198_p4, %p8197_p3 }
 0x155   :  { %285 = dma.hbm_to_vmem [thread:$0]  %s10034_s20, 256, %s280_s15, [#allocation17], %s8481_s14, %s8481_s14, %s8482_s2  }
 0x156   :  { %p8200_p6 = pnand %p8199_p5, %p8193_p2 }
 0x158   :  { %8203 = shalt.err (!%p8200_p6)
}
 0x159   :  { %s10035_s4 = sld [smem:[#allocation88_spill]]  ;;  %s8497_s0 = smov [#allocation24]  }
 0x15a   :  { %s326_s18 = sshll.u32 %s8497_s0, 4  ;;  %s8498_s22 = smov [#allocation27]   ;;  %s327_s18 = int_to_ptr.vmem [resolvable:$true] %s326_s18 }
 0x15b   :  { %s350_s27 = sshll.u32 %s8498_s22, 4  ;;  %s8212_s25 = scalar_lea.vmem %s327_s18, 16  ;;  %s351_s27 = int_to_ptr.vmem [resolvable:$true] %s350_s27 }
 0x15c   :  { %p8213_p7 = scmp.ne.s32.totalorder %s327_s18, %s8212_s25  ;;  %s8216_s3 = scalar_lea.vmem %s327_s18, 32 }
 0x15d   :  { %p8217_p8 = scmp.lt.s32.totalorder %s327_s18, %s327_s18  ;;  %p8218_p9 = scmp.lt.s32.totalorder %s8216_s3, %s8212_s25 }
 0x15f   :  { %309 = dma.hbm_to_vmem [thread:$0]  %s10035_s4, 16, %s307_s16, [#allocation20]  }
 0x160   :  { %p8219_p10 = por %p8218_p9, %p8217_p8 }
 0x162   :  { %p8220_p11 = pnand %p8219_p10, %p8213_p7 }
 0x164   :  { %8223 = shalt.err (!%p8220_p11)
}
 0x165   :  { %s10036_s14 = sld [smem:[#allocation89_spill]]  ;;  %s8232_s23 = scalar_lea.vmem %s351_s27, 16 }
 0x166   :  { %p8233_p12 = scmp.ne.s32.totalorder %s351_s27, %s8232_s23  ;;  %s8236_s8 = scalar_lea.vmem %s351_s27, 32 }
 0x167   :  { %p8237_p13 = scmp.lt.s32.totalorder %s351_s27, %s351_s27  ;;  %p8238_p0 = scmp.lt.s32.totalorder %s8236_s8, %s8232_s23 }
 0x169   :  { %p8239_p1 = por %p8238_p0, %p8237_p13 }
 0x16b   :  { %329 = dma.hbm_to_vmem [thread:$0]  %s10036_s14, 16, %s327_s18, [#allocation23]  }
 0x16c   :  { %p8240_p2 = pnand %p8239_p1, %p8233_p12 }
 0x16e   :  { %8243 = shalt.err (!%p8240_p2)
}
 0x16f   :  { %s10037_s26 = sld [smem:[#allocation92_spill]]  ;;  %s8499_s28 = smov [#allocation30]  }
 0x170   :  { %s370_s1 = sshll.u32 %s8499_s28, 4  ;;  %s8500_s9 = smov [#allocation33]   ;;  %s371_s1 = int_to_ptr.vmem [resolvable:$true] %s370_s1 }
 0x171   :  { %s394_s7 = sshll.u32 %s8500_s9, 4  ;;  %s8252_s12 = scalar_lea.vmem %s371_s1, 16  ;;  %s395_s7 = int_to_ptr.vmem [resolvable:$true] %s394_s7 }
 0x172   :  { %p8253_p3 = scmp.ne.s32.totalorder %s371_s1, %s8252_s12  ;;  %s8256_s10 = scalar_lea.vmem %s371_s1, 32 }
 0x173   :  { %p8257_p4 = scmp.lt.s32.totalorder %s371_s1, %s371_s1  ;;  %p8258_p5 = scmp.lt.s32.totalorder %s8256_s10, %s8252_s12 }
 0x175   :  { %353 = dma.hbm_to_vmem [thread:$0]  %s10037_s26, 16, %s351_s27, [#allocation26]  }
 0x176   :  { %p8259_p6 = por %p8258_p5, %p8257_p4 }
 0x178   :  { %p8260_p7 = pnand %p8259_p6, %p8253_p3 }
 0x17a   :  { %8263 = shalt.err (!%p8260_p7)
}
 0x17b   :  { %s10038_s21 = sld [smem:[#allocation93_spill]]  ;;  %s8272_s11 = scalar_lea.vmem %s395_s7, 16 }
 0x17c   :  { %p8273_p8 = scmp.ne.s32.totalorder %s395_s7, %s8272_s11  ;;  %s8276_s15 = scalar_lea.vmem %s395_s7, 32 }
 0x17d   :  { %p8277_p9 = scmp.lt.s32.totalorder %s395_s7, %s395_s7  ;;  %p8278_p10 = scmp.lt.s32.totalorder %s8276_s15, %s8272_s11 }
 0x17f   :  { %p8279_p11 = por %p8278_p10, %p8277_p9 }
 0x181   :  { %373 = dma.hbm_to_vmem [thread:$0]  %s10038_s21, 16, %s371_s1, [#allocation29]  }
 0x182   :  { %p8280_p12 = pnand %p8279_p11, %p8273_p8 }
 0x184   :  { %8283 = shalt.err (!%p8280_p12)
}
 0x185   :  { %s10039_s30 = sld [smem:[#allocation96_spill]]  ;;  %s8501_s16 = smov [#allocation36]  }
 0x186   :  { %s418_s19 = sshll.u32 %s8501_s16, 4  ;;  %s8502_s20 = smov [#allocation39]   ;;  %s419_s19 = int_to_ptr.vmem [resolvable:$true] %s418_s19 }
 0x187   :  { %s440_s29 = sshll.u32 %s8502_s20, 4  ;;  %s8292_s6 = scalar_lea.vmem %s419_s19, 16  ;;  %s441_s29 = int_to_ptr.vmem [resolvable:$true] %s440_s29 }
 0x188   :  { %p8293_p13 = scmp.ne.s32.totalorder %s419_s19, %s8292_s6  ;;  %s8296_s4 = scalar_lea.vmem %s419_s19, 32 }
 0x189   :  { %p8297_p0 = scmp.lt.s32.totalorder %s419_s19, %s419_s19  ;;  %p8298_p1 = scmp.lt.s32.totalorder %s8296_s4, %s8292_s6 }
 0x18b   :  { %397 = dma.hbm_to_vmem [thread:$0]  %s10039_s30, 16, %s395_s7, [#allocation32]  }
 0x18c   :  { %p8299_p2 = por %p8298_p1, %p8297_p0 }
 0x18e   :  { %p8300_p3 = pnand %p8299_p2, %p8293_p13 }
 0x190   :  { %8303 = shalt.err (!%p8300_p3)
}
 0x191   :  { %s10040_s0 = sld [smem:[#allocation99_spill]]  ;;  %s8312_s18 = scalar_lea.vmem %s441_s29, 16 }
 0x192   :  { %p8313_p4 = scmp.ne.s32.totalorder %s441_s29, %s8312_s18  ;;  %s8316_s22 = scalar_lea.vmem %s441_s29, 32 }
 0x193   :  { %p8317_p5 = scmp.lt.s32.totalorder %s441_s29, %s441_s29  ;;  %p8318_p6 = scmp.lt.s32.totalorder %s8316_s22, %s8312_s18 }
 0x195   :  { %p8319_p7 = por %p8318_p6, %p8317_p5 }
 0x197   :  { %421 = dma.hbm_to_vmem [thread:$0]  %s10040_s0, 16, %s419_s19, [#allocation35]  }
 0x198   :  { %p8320_p8 = pnand %p8319_p7, %p8313_p4 }
 0x19a   :  { %8323 = shalt.err (!%p8320_p8)
}
 0x19b   :  { %s10041_s27 = sld [smem:[#allocation101_spill]]  ;;  %s8503_s25 = smov [#allocation42]  }
 0x19c   :  { %s460_s3 = sshll.u32 %s8503_s25, 4  ;;  %s8504_s14 = smov [#allocation45]   ;;  %s461_s3 = int_to_ptr.vmem [resolvable:$true] %s460_s3 }
 0x19d   :  { %s484_s23 = sshll.u32 %s8504_s14, 4  ;;  %s8332_s8 = scalar_lea.vmem %s461_s3, 64  ;;  %s485_s23 = int_to_ptr.vmem [resolvable:$true] %s484_s23 }
 0x19e   :  { %p8333_p9 = scmp.ne.s32.totalorder %s461_s3, %s8332_s8  ;;  %p8337_p10 = scmp.lt.s32.totalorder %s461_s3, %s461_s3 }
 0x19f   :  { %p8338_p11 = scmp.lt.s32.totalorder %s8332_s8, %s8332_s8 }
 0x1a1   :  { %443 = dma.hbm_to_vmem [thread:$0]  %s10041_s27, 16, %s441_s29, [#allocation38]  }
 0x1a2   :  { %p8339_p12 = por %p8338_p11, %p8337_p10 }
 0x1a4   :  { %p8340_p13 = pnand %p8339_p12, %p8333_p9 }
 0x1a6   :  { %8343 = shalt.err (!%p8340_p13)
}
 0x1a7   :  { %s10042_s26 = sld [smem:[#allocation102_spill]]  ;;  %s8352_s28 = scalar_lea.vmem %s485_s23, 16 }
 0x1a8   :  { %p8353_p0 = scmp.ne.s32.totalorder %s485_s23, %s8352_s28  ;;  %s8356_s1 = scalar_lea.vmem %s485_s23, 32 }
 0x1a9   :  { %p8357_p1 = scmp.lt.s32.totalorder %s485_s23, %s485_s23  ;;  %p8358_p2 = scmp.lt.s32.totalorder %s8356_s1, %s8352_s28 }
 0x1ab   :  { %p8359_p3 = por %p8358_p2, %p8357_p1 }
 0x1ad   :  { %463 = dma.hbm_to_vmem [thread:$0]  %s10042_s26, 64, %s461_s3, [#allocation41]  }
 0x1ae   :  { %p8360_p4 = pnand %p8359_p3, %p8353_p0 }
 0x1b0   :  { %8363 = shalt.err (!%p8360_p4)
}
 0x1b1   :  { %487 = dma.hbm_to_vmem [thread:$0]  %s8795_s5, 16, %s485_s23, [#allocation44]  }
 0x1b2   :  { %s8505_s9 = smov [#allocation46]  }
 0x1b3   :  { %s496_s7 = sshll.u32 %s8505_s9, 4  ;;  %s497_s7 = int_to_ptr.vmem [resolvable:$true] %s496_s7 }
 0x1b4   :  { %s8372_s12 = scalar_lea.vmem %s497_s7, 16  ;;  %s8376_s10 = scalar_lea.vmem %s497_s7, 32 }
 0x1b5   :  { %p8373_p5 = scmp.ne.s32.totalorder %s497_s7, %s8372_s12  ;;  %p8377_p6 = scmp.lt.s32.totalorder %s497_s7, %s497_s7 }
 0x1b6   :  { %p8378_p7 = scmp.lt.s32.totalorder %s8376_s10, %s8372_s12 }
 0x1b8   :  { %p8379_p8 = por %p8378_p7, %p8377_p6 }
 0x1ba   :  { %p8380_p9 = pnand %p8379_p8, %p8373_p5 }
 0x1bc   :  { %8383 = shalt.err (!%p8380_p9)
}
 0x1bd   :  { %499 = dma.hbm_to_vmem [thread:$0]  %s8805_s13, 16, %s497_s7, [#allocation47]  }
 0x1be   :  { %8384 = dma.done.wait [#allocation3], 16  }
 0x1bf   :  { %8385 = vsyncadd [#allocation3], 4294967280 }
 0x1c0   :  { %8386 = dma.done.wait [#allocation5], 272  }
 0x1c1   :  { %8387 = vsyncadd [#allocation5], 4294967024 }
 0x1c2   :  { %8388 = dma.done.wait [#allocation8], 32  }
 0x1c3   :  { %8389 = vsyncadd [#allocation8], 4294967264 }
 0x1c4   :  { %8390 = dma.done.wait [#allocation11], 48  }
 0x1c5   :  { %8391 = vsyncadd [#allocation11], 4294967248 }
 0x1c6   :  { %8392 = dma.done.wait [#allocation14], 32  }
 0x1c7   :  { %8393 = vsyncadd [#allocation14], 4294967264 }
 0x1c8   :  { %8394 = dma.done.wait [#allocation17], 272  }
 0x1c9   :  { %8395 = vsyncadd [#allocation17], 4294967024 }
 0x1ca   :  { %8396 = dma.done.wait [#allocation20], 272  }
 0x1cb   :  { %8397 = vsyncadd [#allocation20], 4294967024 }
 0x1cc   :  { %8398 = dma.done.wait [#allocation23], 32  }
 0x1cd   :  { %8399 = vsyncadd [#allocation23], 4294967264 }
 0x1ce   :  { %8400 = dma.done.wait [#allocation26], 48  }
 0x1cf   :  { %8401 = vsyncadd [#allocation26], 4294967248 }
 0x1d0   :  { %8402 = dma.done.wait [#allocation29], 80  }
 0x1d1   :  { %8403 = vsyncadd [#allocation29], 4294967216 }
 0x1d2   :  { %8404 = dma.done.wait [#allocation32], 32  }
 0x1d3   :  { %8405 = vsyncadd [#allocation32], 4294967264 }
 0x1d4   :  { %8406 = dma.done.wait [#allocation35], 32  }
 0x1d5   :  { %8407 = vsyncadd [#allocation35], 4294967264 }
 0x1d6   :  { %8408 = dma.done.wait [#allocation38], 32  }
 0x1d7   :  { %8409 = vsyncadd [#allocation38], 4294967264 }
 0x1d8   :  { %8410 = dma.done.wait [#allocation41], 80  }
 0x1d9   :  { %8411 = vsyncadd [#allocation41], 4294967216 }
 0x1da   :  { %8412 = dma.done.wait [#allocation44], 80  }
 0x1db   :  { %8413 = vsyncadd [#allocation44], 4294967216 }
 0x1dc   :  { %8414 = dma.done.wait [#allocation47], 16  }
 0x1dd   :  { %8415 = vsyncadd [#allocation47], 4294967280  ;;  %s10043_s5 = sld [smem:[#allocation64_spill]]  ;;  %v8506_v0 = vmov 0   ;;  %v595_v10 = vlaneseq  ;;  %vm630_vm0 = vcmask 326656   ;;  %v8507_v14 = vmov 0.0  }
 0x1de   :  { %s10044_s13 = sld [smem:[#allocation71_spill]]  ;;  %7282 = vset.pattern.permute.xlu1 %v8506_v0  ;;  %7281 = vset.pattern.permute.xlu0 %v8506_v0  ;;  %vm751_vm5 = vcmask 261120   ;;  %vm1038_vm6 = vcmask 130048   ;;  %s8508_s20 = smov 112   ;;  %vm3028_vm7 = vcmask 1043456   ;;  %vm8509_vm8 = vmmov 0  }
 0x1df   :  { %v596_v11 = vand.u32 127, %v595_v10  ;;  %s10045_s21 = sld [smem:[#allocation72_spill]]  ;;  %vm3024_vm9 = vcmask 64512   ;;  %vm3228_vm10 = vcmask 15360   ;;  %vm3386_vm11 = vcmask 523264   ;;  %s8510_s1 = smov 8  }
 0x1e0   :  { %s10046_s11 = sld [smem:[#allocation76_spill]]  ;;  %vm3253_vm12 = vcmask 1041408   ;;  %vm3757_vm13 = vcmask 1045504   ;;  %vm3709_vm14 = vcmask 31744   ;;  %vm3744_vm15 = vcmask 97280   ;;  %s8511_s9 = smov 16  }
 0x1e1   :  { %s10047_s15 = sld [smem:[#allocation78_spill]] }
 0x1e2   :  { %s10048_s30 = sld [smem:[#allocation77_spill]] }
 0x1e3   :  { %v593_v1 = vld [vmem:[%s10043_s5 + $0x10] sm:$0xff]  ;;  %v591_v2 = vld [vmem:[%s10043_s5] sm:$0xff]  ;;  %v594_v5 = vld [vmem:[%s10043_s5 + $0x18] sm:$0xff]  ;;  %s10049_s16 = sld [smem:[#allocation66_spill]] }
 0x1e4   :  { %604 = vperm.xlu1 %7282, %v593_v1   ;;  %598 = vperm.xlu0 %7281, %v591_v2   ;;  %v625_v3 = vld [vmem:[%s10044_s13 + $0x20] sm:$0xff]  ;;  %v624_v4 = vld [vmem:[%s10044_s13 + $0x18] sm:$0xff]  ;;  %v592_v6 = vld [vmem:[%s10043_s5 + $0x8] sm:$0xff]  ;;  %s10050_s19 = sld [smem:[#allocation65_spill]] }
 0x1e5   :  { %6611 = vmatprep.subr.mxu0 %v625_v3  ;;  %v623_v7 = vld [vmem:[%s10044_s13 + $0x10] sm:$0xff]  ;;  %v622_v8 = vld [vmem:[%s10044_s13 + $0x8] sm:$0xff]  ;;  %v621_v9 = vld [vmem:[%s10044_s13] sm:$0xff]  ;;  %s10051_s29 = sld [smem:[#allocation81_spill]] }
 0x1e6   :  { %6612 = vmatpush3.msra.mxu0 %v625_v3  ;;  %v627_v21 = vld [vmem:[%s10045_s21 + $0x8] sm:$0xff]  ;;  %v626_v23 = vld [vmem:[%s10045_s21] sm:$0xff]  ;;  %v628_v29 = vld [vmem:[%s10045_s21 + $0x10] sm:$0xff]  ;;  %s10052_s6 = sld [smem:[#allocation83_spill]] }
 0x1e7   :  { %6613 = vmatprep.subr.mxu0 %v624_v4  ;;  %v629_v31 = vld [vmem:[%s10045_s21 + $0x18] sm:$0xff]  ;;  %v7443_v57 = vld [vmem:[%s10046_s11 + $0x8] sm:$0xff]   ;;  %v7445_v59 = vld [vmem:[%s10046_s11] sm:$0xff]   ;;  %s10053_s4 = sld [smem:[#allocation85_spill]] }
 0x1e8   :  { %607 = vperm.xlu1 %7282, %v594_v5   ;;  %601 = vperm.xlu0 %7281, %v592_v6   ;;  %v7444_v58 = vld [vmem:[%s10047_s15 + $0x8] sm:$0xff]   ;;  %v7446_v60 = vld [vmem:[%s10047_s15] sm:$0xff]   ;;  %s10054_s0 = sld [smem:[#allocation87_spill]] }
 0x1e9   :  { %6614 = vmatpush3.msra.mxu0 %v624_v4  ;;  %6627 = vmatprep.subr.bf16.mxu1 %v7443_v57  ;;  %v7447_v61 = vld [vmem:[%s10048_s30 + $0x8] sm:$0xff]   ;;  %s10055_s18 = sld [smem:[#allocation90_spill]] }
 0x1ea   :  { %6615 = vmatprep.subr.mxu0 %v623_v7  ;;  %6628 = vmatpush3.bf16.msra.mxu1 %v7443_v57  ;;  %s10056_s22 = sld [smem:[#allocation73_spill]] }
 0x1eb   :  { %6616 = vmatpush3.msra.mxu0 %v623_v7  ;;  %6629 = vmatprep.subr.bf16.mxu1 %v7445_v59  ;;  %s10057_s27 = sld [smem:[#allocation91_spill]] }
 0x1ec   :  { %6617 = vmatprep.subr.mxu0 %v622_v8  ;;  %s10058_s25 = sld [smem:[#allocation94_spill]] }
 0x1ed   :  { %6618 = vmatpush3.msra.mxu0 %v622_v8  ;;  %s10059_s3 = sld [smem:[#allocation98_spill]] }
 0x1ee   :  { %6619 = vmatprep.subr.mxu0 %v621_v9  ;;  %6630 = vmatpush3.bf16.msra.mxu1 %v7445_v59  ;;  %v6048_v59 = vld [vmem:[%s10050_s19] ss:$0 sm:$0xff]  ;;  %s10060_s14 = sld [smem:[#allocation70_spill]] }
 0x1ef   :  { %6620 = vmatpush3.msra.mxu0 %v621_v9  ;;  %6635 = vmatprep.subr.bf16.mxu1 %v7447_v61  ;;  %s10061_s23 = sld [smem:[#allocation74_spill]] }
 0x1f0   :  { %6643 = vmatprep.subr.bf16.mxu0 %v7444_v58  ;;  %s10062_s8 = sld [smem:[#allocation68_spill]] }
 0x1f1   :  { %s10063_s26 = sld [smem:[#allocation69_spill]] }
 0x1f2   :  { %s10064_s28 = sld [smem:[#allocation95_spill]] }
 0x1f3   :  { %s10066_s7 = sld [smem:[#allocation100_spill]] }
 0x1f4   :  { %s10067_s12 = sld [smem:[#allocation103_spill]] }
 0x1f5   :  { %s10068_s10 = sld [smem:[#allocation104_spill]] }
 0x1f6   :  { %s10069_s5 = sld [smem:[#allocation67_spill]] }
 0x25f   :  { %v605_v12 = vpop.permute.xlu1 %604  ;;  %v599_v13 = vpop.permute.xlu0 %598 }
 0x260   :  { %vm609_vm1 = vcmp.eq.s32.totalorder %v599_v13, %v596_v11  ;;  %vm611_vm2 = vcmp.eq.s32.totalorder %v605_v12, %v596_v11  ;;  %v6053_v13 = vld [vmem:[#allocation2] ss:$0 sm:$0xff] }
 0x261   :  { %v6040_v15 = vsel %vm609_vm1, 1.0, %v8507_v14  ;;  %v6042_v18 = vsel %vm611_vm2, 1.0, %v8507_v14 }
 0x262   :  { %6621 = vmatprep.mubr.msk.f32.mxu0 %vm630_vm0, %v6040_v15 }
 0x263   :  { %v608_v16 = vpop.permute.xlu1 %607  ;;  %v602_v17 = vpop.permute.xlu0 %601 }
 0x264   :  { %vm610_vm3 = vcmp.eq.s32.totalorder %v602_v17, %v596_v11  ;;  %vm612_vm4 = vcmp.eq.s32.totalorder %v608_v16, %v596_v11 }
 0x265   :  { %v6041_v19 = vsel %vm610_vm3, 1.0, %v8507_v14  ;;  %v6043_v20 = vsel %vm612_vm4, 1.0, %v8507_v14 }
 0x266   :  { %6622 = vmatmul.mubr.msk.f32.vlgmr.msra.gmra.mxu0 %vm630_vm0, %v6041_v19  ;;  %v6054_v19 = vld [vmem:[#allocation4] ss:$0 sm:$0xff] }
 0x267   :  { %6624 = vmatprep.mubr.msk.f32.mxu0 %vm630_vm0, %v6042_v18  ;;  %6644 = vmatpush3.bf16.msra.mxu0 %v7444_v58  ;;  %v728_v58 = vld [vmem:[%s10049_s16] sm:$0xff] }
 0x268   :  { %6645 = vmatprep.subr.bf16.mxu0 %v7446_v60 }
 0x26a   :  { %6625 = vmatmul.mubr.msk.f32.gmra.mxu0 %vm630_vm0, %v6043_v20  ;;  %vm4195_vm0 = vcmask 195584  }
 0x26b   :  { %6646 = vmatpush3.bf16.msra.mxu0 %v7446_v60  ;;  %v730_v60 = vld [vmem:[%s10049_s16 + $0x10] sm:$0xff] }
 0x326   :  { %v6623_v22 = vpop.f32.mrf.mxu0 }
 0x327   :  { %v8869_v24 = vadd.f32 %v6623_v22, %v627_v21 }
 0x328   :  { %v709_v25 = vpop.f32.mrf.mxu0 }
 0x329   :  { %v8871_v26 = vadd.f32 %v709_v25, %v626_v23  ;;  %v755_v27 = vsel %vm751_vm5, %v8869_v24, 0.0 }
 0x32a   :  { %756 = vadd.xlane.f32.xlu1 %v755_v27  ;;  %v6626_v28 = vpop.f32.mrf.mxu0 }
 0x32b   :  { %v752_v30 = vsel %vm751_vm5, %v8871_v26, 0.0  ;;  %v8881_v34 = vadd.f32 %v6626_v28, %v629_v31 }
 0x32c   :  { %v719_v32 = vpop.f32.mrf.mxu0  ;;  %753 = vadd.xlane.f32.xlu0 %v752_v30 }
 0x32d   :  { %v8879_v33 = vadd.f32 %v719_v32, %v628_v29  ;;  %v761_v36 = vsel %vm751_vm5, %v8881_v34, 0.0 }
 0x32f   :  { %v758_v35 = vsel %vm751_vm5, %v8879_v33, 0.0 }
 0x330   :  { %759 = vadd.xlane.f32.xlu0 %v758_v35 }
 0x334   :  { %762 = vadd.xlane.f32.xlu0 %v761_v36 }
 0x3b3   :  { %v757_v37 = vpop.xlane.xlu1 %756 }
 0x3b4   :  { %v766_v38 = vmul.f32 0.03125, %v757_v37  ;;  %v7448_v37 = vld [vmem:[%s10048_s30] sm:$0xff]  }
 0x3b5   :  { %v754_v39 = vpop.xlane.xlu0 %753 }
 0x3b6   :  { %v770_v40 = vsub.f32 %v8869_v24, %v766_v38  ;;  %v765_v41 = vmul.f32 0.03125, %v754_v39 }
 0x3b8   :  { %v769_v42 = vsub.f32 %v8871_v26, %v765_v41  ;;  %v774_v43 = vmul.f32 %v770_v40, %v770_v40 }
 0x3b9   :  { %v760_v44 = vpop.xlane.xlu0 %759 }
 0x3ba   :  { %v767_v45 = vmul.f32 0.03125, %v760_v44  ;;  %v780_v46 = vsel %vm751_vm5, %v774_v43, 0.0  ;;  %v773_v47 = vmul.f32 %v769_v42, %v769_v42 }
 0x3bb   :  { %781 = vadd.xlane.f32.xlu0 %v780_v46 }
 0x3bc   :  { %v771_v48 = vsub.f32 %v8879_v33, %v767_v45  ;;  %v777_v49 = vsel %vm751_vm5, %v773_v47, 0.0 }
 0x3bd   :  { %778 = vadd.xlane.f32.xlu1 %v777_v49  ;;  %v763_v50 = vpop.xlane.xlu0 %762 }
 0x3be   :  { %v768_v51 = vmul.f32 0.03125, %v763_v50  ;;  %v775_v52 = vmul.f32 %v771_v48, %v771_v48 }
 0x3c0   :  { %v772_v53 = vsub.f32 %v8881_v34, %v768_v51  ;;  %v783_v54 = vsel %vm751_vm5, %v775_v52, 0.0 }
 0x3c1   :  { %784 = vadd.xlane.f32.xlu1 %v783_v54 }
 0x3c2   :  { %v776_v55 = vmul.f32 %v772_v53, %v772_v53 }
 0x3c4   :  { %v786_v56 = vsel %vm751_vm5, %v776_v55, 0.0 }
 0x3c5   :  { %787 = vadd.xlane.f32.xlu0 %v786_v56 }
 0x444   :  { %v782_v62 = vpop.xlane.xlu0 %781 }
 0x445   :  { %v790_v63 = vmul.f32 0.03125, %v782_v62  ;;  %v729_v62 = vld [vmem:[%s10049_s16 + $0x8] sm:$0xff] }
 0x446   :  { %v779_v1 = vpop.xlane.xlu1 %778 }
 0x447   :  { %v794_v2 = vadd.f32 1e-05, %v790_v63  ;;  %v789_v3 = vmul.f32 0.03125, %v779_v1  ;;  %v741_v63 = vmul.f32 %v6048_v59, %v730_v60  ;;  %v731_v1 = vld [vmem:[%s10049_s16 + $0x18] sm:$0xff] }
 0x449   :  { %7502 = vrsqrt.f32 %v794_v2  ;;  %v793_v4 = vadd.f32 1e-05, %v789_v3  ;;  %v740_v3 = vmul.f32 %v6048_v59, %v729_v62 }
 0x44a   :  { %v785_v5 = vpop.xlane.xlu1 %784 }
 0x44b   :  { %7504 = vrsqrt.f32 %v793_v4  ;;  %v791_v6 = vmul.f32 0.03125, %v785_v5  ;;  %v742_v4 = vmul.f32 %v6048_v59, %v731_v1  ;;  %v6051_v5 = vadd.f32 -1.0, %v741_v63 }
 0x44d   :  { %v795_v7 = vadd.f32 1e-05, %v791_v6 }
 0x44e   :  { %v788_v8 = vpop.xlane.xlu0 %787 }
 0x44f   :  { %7506 = vrsqrt.f32 %v795_v7  ;;  %v792_v9 = vmul.f32 0.03125, %v788_v8  ;;  %v6050_v8 = vadd.f32 -1.0, %v740_v3 }
 0x451   :  { %v796_v11 = vadd.f32 1e-05, %v792_v9 }
 0x453   :  { %7508 = vrsqrt.f32 %v796_v11  ;;  %v6052_v11 = vadd.f32 -1.0, %v742_v4 }
 0x456   :  { %v7503_v12 = vpop.eup %7502 }
 0x457   :  { %v802_v15 = vmul.f32 %v7503_v12, %v770_v40 }
 0x458   :  { %v7505_v16 = vpop.eup %7504 }
 0x459   :  { %v801_v17 = vmul.f32 %v7505_v16, %v769_v42  ;;  %v813_v18 = vmul.f32 %v6053_v13, %v802_v15  ;;  %v8942_v15 = vmul.f32 10000.0, %v6051_v5 }
 0x45b   :  { %v812_v20 = vmul.f32 %v6053_v13, %v801_v17  ;;  %v824_v23 = vadd.f32 %v6054_v19, %v813_v18  ;;  %v8945_v18 = vmul.f32 10000.0, %v6050_v8 }
 0x45c   :  { %v7507_v21 = vpop.eup %7506 }
 0x45d   :  { %v823_v22 = vadd.f32 %v6054_v19, %v812_v20  ;;  %v803_v25 = vmul.f32 %v7507_v21, %v771_v48  ;;  %v8947_v20 = vmul.f32 10000.0, %v6052_v11 }
 0x45f   :  { %v827_v27 = vpack.c.bf16 %v824_v23, %v823_v22  ;;  %v814_v30 = vmul.f32 %v6053_v13, %v803_v25 }
 0x460   :  { %v7509_v28 = vpop.eup %7508 }
 0x461   :  { %6631 = vmatprep.mubr.msk.bf16.mxu1 %vm751_vm5, %v827_v27  ;;  %6647 = vmatprep.mubr.msk.bf16.mxu0 %vm751_vm5, %v827_v27  ;;  %v804_v29 = vmul.f32 %v7509_v28, %v772_v53  ;;  %v825_v32 = vadd.f32 %v6054_v19, %v814_v30 }
 0x463   :  { %v815_v31 = vmul.f32 %v6053_v13, %v804_v29 }
 0x465   :  { %v826_v35 = vadd.f32 %v6054_v19, %v815_v31 }
 0x467   :  { %v828_v36 = vpack.c.bf16 %v826_v35, %v825_v32 }
 0x469   :  { %6632 = vmatmul.mubr.msk.bf16.vlgmr.msra.gmra.mxu1 %vm751_vm5, %v828_v36  ;;  %6648 = vmatmul.mubr.msk.bf16.vlgmr.msra.gmra.mxu0 %vm751_vm5, %v828_v36 }
 0x46a   :  { %6636 = vmatpush3.bf16.msra.mxu1 %v7447_v61  ;;  %6639 = vmatprep.mubr.msk.bf16.mxu1 %vm751_vm5, %v827_v27  ;;  %v739_v61 = vmul.f32 %v6048_v59, %v728_v58 }
 0x46b   :  { %6637 = vmatprep.subr.bf16.mxu1 %v7448_v37 }
 0x46c   :  { %v6049_v2 = vadd.f32 -1.0, %v739_v61 }
 0x46e   :  { %6638 = vmatpush3.bf16.msra.mxu1 %v7448_v37  ;;  %v8940_v7 = vmul.f32 10000.0, %v6049_v2 }
 0x471   :  { %6640 = vmatmul.mubr.msk.bf16.vlgmr.msra.gmra.mxu1 %vm751_vm5, %v828_v36 }
 0x529   :  { %v6633_v38 = vpop.f32.mrf.mxu1  ;;  %v6649_v39 = vpop.f32.mrf.mxu0 }
 0x52b   :  { %v885_v40 = vpop.f32.mrf.mxu1  ;;  %v1015_v41 = vpop.f32.mrf.mxu0 }
 0x52d   :  { %v6634_v42 = vpop.f32.mrf.mxu1  ;;  %v6650_v43 = vpop.f32.mrf.mxu0 }
 0x52e   :  { %v8907_v44 = vpack.c.bf16 %v6650_v43, %v6649_v39  ;;  %v8931_v57 = vpack.c.bf16 %v6634_v42, %v6633_v38 }
 0x52f   :  { %v888_v45 = vpop.f32.mrf.mxu1  ;;  %v1018_v46 = vpop.f32.mrf.mxu0 }
 0x530   :  { %v8909_v47 = vpack.c.bf16 %v888_v45, %v885_v40  ;;  %v8911_v48 = vpack.c.bf16 %v1018_v46, %v1015_v41  ;;  %6659 = vmatprep.subr.bf16.mxu0 %v8907_v44 }
 0x531   :  { %v6641_v49 = vpop.f32.mrf.mxu1  ;;  %6660 = vmatpush3.bf16.msra.mxu0 %v8907_v44 }
 0x532   :  { %6655 = vmatprep.mubr.msk.bf16.mxu1 %vm1038_vm6, %v8909_v47  ;;  %6661 = vmatprep.subr.bf16.mxu0 %v8911_v48 }
 0x533   :  { %v950_v50 = vpop.f32.mrf.mxu1 }
 0x535   :  { %v6642_v51 = vpop.f32.mrf.mxu1  ;;  %6662 = vmatpush3.bf16.msra.mxu0 %v8911_v48 }
 0x536   :  { %v8919_v52 = vpack.c.bf16 %v6642_v51, %v6641_v49 }
 0x537   :  { %v953_v53 = vpop.f32.mrf.mxu1 }
 0x538   :  { %v8921_v54 = vpack.c.bf16 %v953_v53, %v950_v50  ;;  %7169 = vmatprep.subr.msk.bf16.mxu1 %vm1038_vm6, %v8919_v52  ;;  %v1049_v55 = vsel %vm1038_vm6, %v8919_v52, 0 }
 0x539   :  { %6652 = vmatpush3.bf16.xpose.msra.mxu1 %v1049_v55 }
 0x53a   :  { %7170 = vmatprep.subr.msk.bf16.mxu1 %vm1038_vm6, %v8921_v54  ;;  %v1046_v56 = vsel %vm1038_vm6, %v8921_v54, 0 }
 0x541   :  { %6654 = vmatpush3.bf16.xpose.msra.mxu1 %v1046_v56 }
 0x548   :  { %6656 = vmatmul.mubr.msk.bf16.vlgmr.msra.gmra.mxu1 %vm1038_vm6, %v8931_v57 }
 0x608   :  { %v6657_v6 = vpop.f32.mrf.mxu1 }
 0x609   :  { %v1102_v12 = vmul.f32 0.25, %v6657_v6 }
 0x60a   :  { %v1085_v9 = vpop.f32.mrf.mxu1 }
 0x60b   :  { %v1100_v13 = vmul.f32 0.25, %v1085_v9  ;;  %v1106_v25 = vadd.f32 %v1102_v12, %v8942_v15 }
 0x60c   :  { %v6658_v16 = vpop.f32.mrf.mxu1 }
 0x60d   :  { %v1104_v17 = vadd.f32 %v1100_v13, %v8940_v7  ;;  %v1103_v21 = vmul.f32 0.25, %v6658_v16  ;;  %v1114_v28 = vsel %vm751_vm5, %v1106_v25, -inf }
 0x60e   :  { %v1088_v19 = vpop.f32.mrf.mxu1 }
 0x60f   :  { %v1101_v22 = vmul.f32 0.25, %v1088_v19  ;;  %v1108_v23 = vsel %vm751_vm5, %v1104_v17, -inf  ;;  %v1107_v30 = vadd.f32 %v1103_v21, %v8947_v20 }
 0x610   :  { %1109 = vmax.xlane.f32.xlu1 %v1108_v23 }
 0x611   :  { %v1105_v27 = vadd.f32 %v1101_v22, %v8945_v18  ;;  %v1117_v31 = vsel %vm751_vm5, %v1107_v30, -inf }
 0x613   :  { %v1111_v29 = vsel %vm751_vm5, %v1105_v27, -inf }
 0x614   :  { %1115 = vmax.xlane.f32.xlu1 %v1114_v28  ;;  %1112 = vmax.xlane.f32.xlu0 %v1111_v29 }
 0x618   :  { %1118 = vmax.xlane.f32.xlu0 %v1117_v31 }
 0x699   :  { %v1110_v32 = vpop.xlane.xlu1 %1109 }
 0x69a   :  { %v1120_v35 = vsub.f32 %v1104_v17, %v1110_v32  ;;  %v7449_v17 = vld [vmem:[#allocation6] sm:$0xff]  }
 0x69c   :  { %v1124_v40 = vmul.f32 1.442695, %v1120_v35 }
 0x69d   :  { %v1116_v36 = vpop.xlane.xlu1 %1115  ;;  %v1113_v37 = vpop.xlane.xlu0 %1112 }
 0x69e   :  { %v1122_v38 = vsub.f32 %v1106_v25, %v1116_v36  ;;  %v1121_v39 = vsub.f32 %v1105_v27, %v1113_v37 }
 0x6a0   :  { %v1128_v41 = vmul.f32 1.442695, %v1122_v38  ;;  %v1126_v42 = vmul.f32 1.442695, %v1121_v39 }
 0x6a1   :  { %v1119_v43 = vpop.xlane.xlu0 %1118 }
 0x6a2   :  { %7510 = vpow2.f32 %v1128_v41  ;;  %v1123_v45 = vsub.f32 %v1107_v30, %v1119_v43 }
 0x6a3   :  { %7512 = vpow2.f32 %v1126_v42 }
 0x6a4   :  { %7514 = vpow2.f32 %v1124_v40  ;;  %v1130_v46 = vmul.f32 1.442695, %v1123_v45 }
 0x6a6   :  { %7516 = vpow2.f32 %v1130_v46 }
 0x6af   :  { %v7511_v49 = vpop.eup %7510 }
 0x6b0   :  { %v7513_v50 = vpop.eup %7512  ;;  %v1138_v51 = vsel %vm751_vm5, %v7511_v49, 0.0 }
 0x6b1   :  { %v7515_v53 = vpop.eup %7514  ;;  %1139 = vadd.xlane.f32.xlu1 %v1138_v51  ;;  %v1135_v55 = vsel %vm751_vm5, %v7513_v50, 0.0 }
 0x6b2   :  { %1136 = vadd.xlane.f32.xlu0 %v1135_v55  ;;  %v1132_v58 = vsel %vm751_vm5, %v7515_v53, 0.0 }
 0x6b3   :  { %v7517_v56 = vpop.eup %7516 }
 0x6b4   :  { %v1141_v59 = vsel %vm751_vm5, %v7517_v56, 0.0 }
 0x6b5   :  { %1133 = vadd.xlane.f32.xlu1 %v1132_v58 }
 0x6b6   :  { %1142 = vadd.xlane.f32.xlu0 %v1141_v59 }
 0x6c6   :  { %1223 = vrot.lane.b32.xlu1 %v8919_v52, %s8508_s20 }
 0x6ca   :  { %1215 = vrot.lane.b32.xlu1 %v8909_v47, %s8508_s20 }
 0x6cc   :  { %1221 = vrot.lane.b32.xlu0 %v8921_v54, %s8508_s20 }
 0x6ce   :  { %1217 = vrot.lane.b32.xlu1 %v8931_v57, %s8508_s20 }
 0x73a   :  { %v1140_v60 = vpop.xlane.xlu1 %1139 }
 0x73b   :  { %v1137_v61 = vpop.xlane.xlu0 %1136 }
 0x73c   :  { %7518 = vrcp.f32 %v1137_v61 }
 0x73d   :  { %7520 = vrcp.f32 %v1140_v60 }
 0x73e   :  { %v1134_v62 = vpop.xlane.xlu1 %1133 }
 0x73f   :  { %7522 = vrcp.f32 %v1134_v62  ;;  %v1143_v63 = vpop.xlane.xlu0 %1142 }
 0x740   :  { %7524 = vrcp.f32 %v1143_v63 }
 0x742   :  { %v1224_v1 = vpop.permute.xlu1 %1223 }
 0x743   :  { %7171 = vmatprep.subr.msk.bf16.mxu0 %vm1038_vm6, %v1224_v1  ;;  %v1235_v11 = vsel %vm1038_vm6, %v1224_v1, 0  ;;  %v1222_v12 = vpop.permute.xlu0 %1221 }
 0x744   :  { %v1232_v13 = vsel %vm1038_vm6, %v1222_v12, 0 }
 0x746   :  { %v1216_v9 = vpop.permute.xlu1 %1215 }
 0x749   :  { %v7519_v52 = vpop.eup %7518 }
 0x74a   :  { %v7521_v2 = vpop.eup %7520  ;;  %v1149_v54 = vmul.f32 %v7519_v52, %v7513_v50  ;;  %v1218_v16 = vpop.permute.xlu1 %1217 }
 0x74b   :  { %v1150_v5 = vmul.f32 %v7521_v2, %v7511_v49 }
 0x74c   :  { %v7523_v47 = vpop.eup %7522 }
 0x74d   :  { %v7525_v3 = vpop.eup %7524  ;;  %v1148_v4 = vmul.f32 %v7523_v47, %v7515_v53 }
 0x74e   :  { %v1151_v6 = vmul.f32 %v7525_v3, %v7517_v56 }
 0x74f   :  { %v1152_v57 = vpack.c.bf16 %v1149_v54, %v1148_v4 }
 0x750   :  { %v1153_v8 = vpack.c.bf16 %v1151_v6, %v1150_v5 }
 0x751   :  { %6663 = vmatprep.mubr.msk.bf16.mxu0 %vm751_vm5, %v1152_v57 }
 0x752   :  { %6664 = vmatmul.mubr.msk.bf16.vlgmr.msra.gmra.mxu0 %vm751_vm5, %v1153_v8 }
 0x753   :  { %6668 = vmatpush3.bf16.xpose.msra.mxu0 %v1235_v11  ;;  %6671 = vmatprep.mubr.msk.bf16.mxu0 %vm1038_vm6, %v1216_v9 }
 0x754   :  { %7172 = vmatprep.subr.msk.bf16.mxu0 %vm1038_vm6, %v1222_v12 }
 0x75b   :  { %6670 = vmatpush3.bf16.xpose.msra.mxu0 %v1232_v13 }
 0x75c   :  { %6689 = vmatprep.subr.bf16.mxu0 %v7449_v17 }
 0x762   :  { %6672 = vmatmul.mubr.msk.bf16.vlgmr.msra.gmra.mxu0 %vm1038_vm6, %v1218_v16 }
 0x763   :  { %6690 = vmatpush3.bf16.msra.mxu0 %v7449_v17 }
 0x812   :  { %v6665_v19 = vpop.f32.mrf.mxu0 }
 0x814   :  { %v1196_v21 = vpop.f32.mrf.mxu0 }
 0x816   :  { %v6666_v22 = vpop.f32.mrf.mxu0 }
 0x817   :  { %v1212_v27 = vpack.c.bf16 %v6666_v22, %v6665_v19 }
 0x818   :  { %v1199_v23 = vpop.f32.mrf.mxu0 }
 0x819   :  { %v1211_v25 = vpack.c.bf16 %v1199_v23, %v1196_v21 }
 0x81b   :  { %6691 = vmatprep.mubr.msk.bf16.mxu0 %vm1038_vm6, %v1211_v25 }
 0x81c   :  { %6692 = vmatmul.mubr.msk.bf16.vlgmr.msra.gmra.mxu0 %vm1038_vm6, %v1212_v27  ;;  %v7450_v27 = vld [vmem:[#allocation6 + $0x8] sm:$0xff]  }
 0x822   :  { %v6673_v28 = vpop.f32.mrf.mxu0 }
 0x823   :  { %v1288_v30 = vmul.f32 0.25, %v6673_v28 }
 0x824   :  { %v1271_v29 = vpop.f32.mrf.mxu0 }
 0x825   :  { %v1286_v31 = vmul.f32 0.25, %v1271_v29  ;;  %v1292_v40 = vadd.f32 %v1288_v30, %v8942_v15 }
 0x826   :  { %v6674_v32 = vpop.f32.mrf.mxu0 }
 0x827   :  { %v1290_v35 = vadd.f32 %v1286_v31, %v8940_v7  ;;  %v1289_v37 = vmul.f32 0.25, %v6674_v32  ;;  %v1300_v42 = vsel %vm751_vm5, %v1292_v40, -inf }
 0x828   :  { %v1274_v36 = vpop.f32.mrf.mxu0 }
 0x829   :  { %v1287_v38 = vmul.f32 0.25, %v1274_v36  ;;  %v1294_v39 = vsel %vm751_vm5, %v1290_v35, -inf  ;;  %v1293_v45 = vadd.f32 %v1289_v37, %v8947_v20 }
 0x82a   :  { %1295 = vmax.xlane.f32.xlu0 %v1294_v39 }
 0x82b   :  { %v1291_v41 = vadd.f32 %v1287_v38, %v8945_v18  ;;  %v1303_v46 = vsel %vm751_vm5, %v1293_v45, -inf }
 0x82d   :  { %v1297_v43 = vsel %vm751_vm5, %v1291_v41, -inf }
 0x82e   :  { %1301 = vmax.xlane.f32.xlu0 %v1300_v42  ;;  %1298 = vmax.xlane.f32.xlu1 %v1297_v43 }
 0x832   :  { %1304 = vmax.xlane.f32.xlu0 %v1303_v46 }
 0x8b3   :  { %v1296_v49 = vpop.xlane.xlu0 %1295 }
 0x8b4   :  { %v1306_v50 = vsub.f32 %v1290_v35, %v1296_v49 }
 0x8b6   :  { %v1310_v56 = vmul.f32 1.442695, %v1306_v50 }
 0x8b7   :  { %v1302_v51 = vpop.xlane.xlu0 %1301  ;;  %v1299_v53 = vpop.xlane.xlu1 %1298 }
 0x8b8   :  { %v1308_v55 = vsub.f32 %v1292_v40, %v1302_v51  ;;  %v1307_v59 = vsub.f32 %v1291_v41, %v1299_v53  ;;  %v6081_v51 = vld [vmem:[#allocation7] ss:$0 sm:$0xff] }
 0x8ba   :  { %v1314_v58 = vmul.f32 1.442695, %v1308_v55  ;;  %v1312_v62 = vmul.f32 1.442695, %v1307_v59 }
 0x8bb   :  { %v1305_v60 = vpop.xlane.xlu0 %1304 }
 0x8bc   :  { %7526 = vpow2.f32 %v1314_v58  ;;  %v1309_v61 = vsub.f32 %v1293_v45, %v1305_v60 }
 0x8bd   :  { %7528 = vpow2.f32 %v1310_v56 }
 0x8be   :  { %v1316_v63 = vmul.f32 1.442695, %v1309_v61 }
 0x8c0   :  { %7530 = vpow2.f32 %v1316_v63 }
 0x8c1   :  { %7532 = vpow2.f32 %v1312_v62 }
 0x8c9   :  { %v7527_v1 = vpop.eup %7526 }
 0x8ca   :  { %v1324_v52 = vsel %vm751_vm5, %v7527_v1, 0.0  ;;  %v7529_v2 = vpop.eup %7528 }
 0x8cb   :  { %1325 = vadd.xlane.f32.xlu1 %v1324_v52  ;;  %v1318_v4 = vsel %vm751_vm5, %v7529_v2, 0.0 }
 0x8cd   :  { %v7531_v47 = vpop.eup %7530 }
 0x8ce   :  { %v1327_v3 = vsel %vm751_vm5, %v7531_v47, 0.0  ;;  %v7533_v54 = vpop.eup %7532 }
 0x8cf   :  { %1328 = vadd.xlane.f32.xlu0 %v1327_v3  ;;  %1319 = vadd.xlane.f32.xlu1 %v1318_v4  ;;  %v1321_v5 = vsel %vm751_vm5, %v7533_v54, 0.0 }
 0x8d3   :  { %1322 = vadd.xlane.f32.xlu0 %v1321_v5 }
 0x8dc   :  { %v6693_v36 = vpop.f32.mrf.mxu0 }
 0x8de   :  { %v1512_v37 = vpop.f32.mrf.mxu0 }
 0x8e0   :  { %1344 = vrot.lane.b32.xlu1 %v8907_v44, %s8508_s20  ;;  %v6694_v40 = vpop.f32.mrf.mxu0 }
 0x8e2   :  { %v1515_v50 = vpop.f32.mrf.mxu0 }
 0x8e9   :  { %1342 = vrot.lane.b32.xlu0 %v8911_v48, %s8508_s20 }
 0x954   :  { %v1326_v6 = vpop.xlane.xlu1 %1325 }
 0x958   :  { %v1329_v57 = vpop.xlane.xlu0 %1328  ;;  %v1320_v8 = vpop.xlane.xlu1 %1319 }
 0x959   :  { %7534 = vrcp.f32 %v1329_v57 }
 0x95a   :  { %7536 = vrcp.f32 %v1320_v8 }
 0x95b   :  { %7538 = vrcp.f32 %v1326_v6 }
 0x95c   :  { %v1323_v9 = vpop.xlane.xlu0 %1322  ;;  %v1345_v11 = vpop.permute.xlu1 %1344 }
 0x95d   :  { %7540 = vrcp.f32 %v1323_v9  ;;  %6675 = vmatprep.subr.bf16.mxu1 %v1345_v11 }
 0x95e   :  { %6676 = vmatpush3.bf16.msra.mxu1 %v1345_v11 }
 0x960   :  { %v1343_v12 = vpop.permute.xlu0 %1342 }
 0x961   :  { %6677 = vmatprep.subr.bf16.mxu1 %v1343_v12 }
 0x962   :  { %6678 = vmatpush3.bf16.msra.mxu1 %v1343_v12 }
 0x963   :  { %6683 = vmatprep.subr.bf16.mxu1 %v7450_v27 }
 0x966   :  { %v7535_v13 = vpop.eup %7534 }
 0x967   :  { %v7537_v16 = vpop.eup %7536  ;;  %v1337_v19 = vmul.f32 %v7535_v13, %v7531_v47 }
 0x968   :  { %v7539_v44 = vpop.eup %7538  ;;  %v1334_v48 = vmul.f32 %v7537_v16, %v7529_v2 }
 0x969   :  { %v1336_v22 = vmul.f32 %v7539_v44, %v7527_v1 }
 0x96a   :  { %v7541_v17 = vpop.eup %7540 }
 0x96b   :  { %v1335_v21 = vmul.f32 %v7541_v17, %v7533_v54  ;;  %v1339_v25 = vpack.c.bf16 %v1337_v19, %v1336_v22  ;;  %v7456_v22 = vld [vmem:[%s10051_s29 + $0x4] ss:$8 sps:$4 sm:$0xff]  }
 0x96d   :  { %v1338_v23 = vpack.c.bf16 %v1335_v21, %v1334_v48  ;;  %v7453_v48 = vld [vmem:[%s10051_s29 + $0x14] ss:$8 sps:$4 sm:$0xff]   ;;  %v7451_v21 = vld [vmem:[%s10051_s29 + $0x10] ss:$8 sps:$4 sm:$0xff]  }
 0x96f   :  { %6679 = vmatprep.mubr.msk.bf16.mxu1 %vm751_vm5, %v1338_v23  ;;  %v7454_v23 = vld [vmem:[%s10051_s29] ss:$8 sps:$4 sm:$0xff]  }
 0x970   :  { %6680 = vmatmul.mubr.msk.bf16.vlgmr.msra.gmra.mxu1 %vm751_vm5, %v1339_v25 }
 0x971   :  { %6684 = vmatpush3.bf16.msra.mxu1 %v7450_v27 }
 0x972   :  { %1672 = vmatprep.subr.bf16.mxu1 %v7453_v48 }
 0xa30   :  { %v6681_v28 = vpop.f32.mrf.mxu1 }
 0xa32   :  { %v1388_v29 = vpop.f32.mrf.mxu1 }
 0xa34   :  { %v6682_v30 = vpop.f32.mrf.mxu1 }
 0xa35   :  { %v1404_v35 = vpack.c.bf16 %v6682_v30, %v6681_v28 }
 0xa36   :  { %v1391_v31 = vpop.f32.mrf.mxu1 }
 0xa37   :  { %v1403_v32 = vpack.c.bf16 %v1391_v31, %v1388_v29 }
 0xa39   :  { %6685 = vmatprep.mubr.msk.bf16.mxu1 %vm1038_vm6, %v1403_v32 }
 0xa3a   :  { %6686 = vmatmul.mubr.msk.bf16.vlgmr.msra.gmra.mxu1 %vm1038_vm6, %v1404_v35 }
 0xa3b   :  { %1692 = vmatprep.mubr.bf16.mxu1 %v8506_v0  ;;  %1673 = vmatpush1.bf16.msra.mxu1 %v7451_v21 }
 0xa3c   :  { %1674 = vmatprep.subr.bf16.mxu1 %v7456_v22 }
 0xa3f   :  { %1675 = vmatpush1.bf16.msra.mxu1 %v7454_v23 }
 0xafa   :  { %v6687_v38 = vpop.f32.mrf.mxu1 }
 0xafb   :  { %v1521_v39 = vadd.f32 %v6693_v36, %v6687_v38 }
 0xafc   :  { %v1451_v41 = vpop.f32.mrf.mxu1 }
 0xafd   :  { %v1513_v42 = vadd.f32 %v1512_v37, %v1451_v41  ;;  %v1529_v45 = vadd.f32 %v1521_v39, %v8879_v33 }
 0xafe   :  { %v6688_v43 = vpop.f32.mrf.mxu1 }
 0xaff   :  { %v1527_v46 = vadd.f32 %v1513_v42, %v8871_v26  ;;  %v1524_v49 = vadd.f32 %v6694_v40, %v6688_v43  ;;  %v9003_v58 = vadd.f32 %v6081_v51, %v1529_v45  ;;  %v6082_v42 = vld [vmem:[#allocation9] ss:$0 sm:$0xff] }
 0xb00   :  { %v1454_v53 = vpop.f32.mrf.mxu1 }
 0xb01   :  { %v1516_v55 = vadd.f32 %v1515_v50, %v1454_v53  ;;  %v9001_v56 = vadd.f32 %v6081_v51, %v1527_v46  ;;  %v1530_v59 = vadd.f32 %v1524_v49, %v8881_v34  ;;  %v1548_v62 = vsel %vm751_vm5, %v9003_v58, 0.0  ;;  %v6083_v50 = vld [vmem:[#allocation10] ss:$0 sm:$0xff] }
 0xb03   :  { %v1528_v60 = vadd.f32 %v1516_v55, %v8869_v24  ;;  %v1542_v61 = vsel %vm751_vm5, %v9001_v56, 0.0  ;;  %v9011_v26 = vadd.f32 %v6081_v51, %v1530_v59 }
 0xb04   :  { %1543 = vadd.xlane.f32.xlu1 %v1542_v61 }
 0xb05   :  { %v9009_v33 = vadd.f32 %v6081_v51, %v1528_v60  ;;  %v1551_v34 = vsel %vm751_vm5, %v9011_v26, 0.0 }
 0xb07   :  { %v1545_v63 = vsel %vm751_vm5, %v9009_v33, 0.0 }
 0xb08   :  { %1549 = vadd.xlane.f32.xlu1 %v1548_v62  ;;  %1546 = vadd.xlane.f32.xlu0 %v1545_v63 }
 0xb0c   :  { %1552 = vadd.xlane.f32.xlu0 %v1551_v34 }
 0xb8d   :  { %v1544_v24 = vpop.xlane.xlu1 %1543 }
 0xb8e   :  { %v1554_v1 = vmul.f32 0.03125, %v1544_v24 }
 0xb90   :  { %v1558_v52 = vsub.f32 %v9001_v56, %v1554_v1 }
 0xb91   :  { %v1550_v2 = vpop.xlane.xlu1 %1549  ;;  %v1547_v47 = vpop.xlane.xlu0 %1546 }
 0xb92   :  { %v1556_v3 = vmul.f32 0.03125, %v1550_v2  ;;  %v1555_v4 = vmul.f32 0.03125, %v1547_v47  ;;  %v1562_v54 = vmul.f32 %v1558_v52, %v1558_v52  ;;  %v7457_v2 = vld [vmem:[%s10052_s6 + $0x38] sm:$0xff]   ;;  %v7458_v47 = vld [vmem:[%s10052_s6 + $0x30] sm:$0xff]  }
 0xb93   :  { %6695 = vmatprep.subr.bf16.mxu0 %v7457_v2 }
 0xb94   :  { %v1560_v5 = vsub.f32 %v9003_v58, %v1556_v3  ;;  %v1559_v6 = vsub.f32 %v9009_v33, %v1555_v4  ;;  %v1566_v57 = vsel %vm751_vm5, %v1562_v54, 0.0  ;;  %6696 = vmatpush3.bf16.msra.mxu0 %v7457_v2  ;;  %v7459_v3 = vld [vmem:[%s10052_s6 + $0x28] sm:$0xff]   ;;  %v7460_v4 = vld [vmem:[%s10052_s6 + $0x20] sm:$0xff]   ;;  %v7461_v54 = vld [vmem:[%s10052_s6 + $0x18] sm:$0xff]  }
 0xb95   :  { %1567 = vadd.xlane.f32.xlu1 %v1566_v57  ;;  %v1553_v8 = vpop.xlane.xlu0 %1552  ;;  %6697 = vmatprep.subr.bf16.mxu0 %v7458_v47  ;;  %v7464_v57 = vld [vmem:[%s10052_s6] sm:$0xff]  }
 0xb96   :  { %v1557_v9 = vmul.f32 0.03125, %v1553_v8  ;;  %v1564_v11 = vmul.f32 %v1560_v5, %v1560_v5  ;;  %v1563_v12 = vmul.f32 %v1559_v6, %v1559_v6  ;;  %v9043_v8 = vshrl.u32 %v595_v10, 7 }
 0xb98   :  { %v1561_v13 = vsub.f32 %v9011_v26, %v1557_v9  ;;  %v1572_v16 = vsel %vm751_vm5, %v1564_v11, 0.0  ;;  %v1569_v44 = vsel %vm751_vm5, %v1563_v12, 0.0  ;;  %6698 = vmatpush3.bf16.msra.mxu0 %v7458_v47  ;;  %v1630_v9 = vsub.s32 1, %v9043_v8  ;;  %v1622_v11 = vld [vmem:[#allocation12] sm:$0x3] }
 0xb99   :  { %1573 = vadd.xlane.f32.xlu1 %v1572_v16  ;;  %1570 = vadd.xlane.f32.xlu0 %v1569_v44 }
 0xb9a   :  { %v1565_v17 = vmul.f32 %v1561_v13, %v1561_v13  ;;  %6699 = vmatprep.subr.bf16.mxu0 %v7459_v3  ;;  %v1631_v12 = vrot.slane %v1622_v11, %v1630_v9 }
 0xb9c   :  { %v1575_v19 = vsel %vm751_vm5, %v1565_v17, 0.0  ;;  %6700 = vmatpush3.bf16.msra.mxu0 %v7459_v3 }
 0xb9d   :  { %1576 = vadd.xlane.f32.xlu0 %v1575_v19  ;;  %6701 = vmatprep.subr.bf16.mxu0 %v7460_v4 }
 0xba0   :  { %6702 = vmatpush3.bf16.msra.mxu0 %v7460_v4 }
 0xba1   :  { %6703 = vmatprep.subr.bf16.mxu0 %v7461_v54 }
 0xba4   :  { %6704 = vmatpush3.bf16.msra.mxu0 %v7461_v54 }
 0xc1e   :  { %v1568_v25 = vpop.xlane.xlu1 %1567 }
 0xc1f   :  { %v1578_v27 = vmul.f32 0.03125, %v1568_v25 }
 0xc21   :  { %v1582_v28 = vadd.f32 1e-05, %v1578_v27 }
 0xc22   :  { %v1574_v29 = vpop.xlane.xlu1 %1573  ;;  %v1571_v30 = vpop.xlane.xlu0 %1570 }
 0xc23   :  { %7542 = vrsqrt.f32 %v1582_v28  ;;  %v1580_v31 = vmul.f32 0.03125, %v1574_v29  ;;  %v1579_v32 = vmul.f32 0.03125, %v1571_v30 }
 0xc25   :  { %v1583_v35 = vadd.f32 1e-05, %v1579_v32  ;;  %v1584_v36 = vadd.f32 1e-05, %v1580_v31 }
 0xc26   :  { %v1577_v37 = vpop.xlane.xlu0 %1576 }
 0xc27   :  { %v1581_v38 = vmul.f32 0.03125, %v1577_v37  ;;  %7544 = vrsqrt.f32 %v1583_v35 }
 0xc28   :  { %7546 = vrsqrt.f32 %v1584_v36 }
 0xc29   :  { %v1585_v39 = vadd.f32 1e-05, %v1581_v38 }
 0xc2b   :  { %7548 = vrsqrt.f32 %v1585_v39 }
 0xc30   :  { %v7543_v40 = vpop.eup %7542 }
 0xc31   :  { %v1590_v41 = vmul.f32 %v7543_v40, %v1558_v52 }
 0xc33   :  { %v1601_v46 = vmul.f32 %v6082_v42, %v1590_v41 }
 0xc34   :  { %v7545_v43 = vpop.eup %7544 }
 0xc35   :  { %v1591_v45 = vmul.f32 %v7545_v43, %v1559_v6  ;;  %v7547_v49 = vpop.eup %7546  ;;  %v1612_v59 = vadd.f32 %v6083_v50, %v1601_v46  ;;  %v7463_v6 = vld [vmem:[%s10052_s6 + $0x8] sm:$0xff]  }
 0xc36   :  { %v1592_v61 = vmul.f32 %v7547_v49, %v1560_v5  ;;  %v7462_v5 = vld [vmem:[%s10052_s6 + $0x10] sm:$0xff]  }
 0xc37   :  { %v1602_v53 = vmul.f32 %v6082_v42, %v1591_v45  ;;  %6705 = vmatprep.subr.bf16.mxu0 %v7462_v5 }
 0xc38   :  { %v7549_v51 = vpop.eup %7548  ;;  %v1603_v34 = vmul.f32 %v6082_v42, %v1592_v61  ;;  %6706 = vmatpush3.bf16.msra.mxu0 %v7462_v5 }
 0xc39   :  { %v1593_v55 = vmul.f32 %v7549_v51, %v1561_v13  ;;  %v1613_v60 = vadd.f32 %v6083_v50, %v1602_v53  ;;  %6707 = vmatprep.subr.bf16.mxu0 %v7463_v6 }
 0xc3a   :  { %v1614_v1 = vadd.f32 %v6083_v50, %v1603_v34 }
 0xc3b   :  { %v1616_v62 = vpack.c.bf16 %v1613_v60, %v1612_v59  ;;  %v1604_v63 = vmul.f32 %v6082_v42, %v1593_v55  ;;  %v1626_v59 = vsub.s32 0, %v9043_v8 }
 0xc3c   :  { %6708 = vmatpush3.bf16.msra.mxu0 %v7463_v6 }
 0xc3d   :  { %6088 = vmatmul.mubr.msk.bf16.vlgmr.msra.gmra.mxu1 %vm751_vm5, %v1616_v62  ;;  %v1615_v24 = vadd.f32 %v6083_v50, %v1604_v63  ;;  %6709 = vmatprep.subr.bf16.mxu0 %v7464_v57  ;;  %v1627_v63 = vrot.slane %v1622_v11, %v1626_v59 }
 0xc3e   :  { %1702 = vmatprep.mubr.bf16.mxu1 %v8506_v0 }
 0xc3f   :  { %v1617_v52 = vpack.c.bf16 %v1615_v24, %v1614_v1 }
 0xc40   :  { %6710 = vmatpush3.bf16.msra.mxu0 %v7464_v57 }
 0xc45   :  { %6089 = vmatmul.mubr.msk.bf16.gmra.mxu1 %vm751_vm5, %v1617_v52 }
 0xcfd   :  { %v1694_v13 = vpop.f32.mrf.mxu1 }
 0xcfe   :  { %v1695_v2 = vadd.f32 %v1694_v13, %v1627_v63 }
 0xcff   :  { %v1696_v16 = vpop.f32.mrf.mxu1 }
 0xd00   :  { %v1697_v44 = vadd.f32 %v1696_v16, %v1631_v12 }
 0xd01   :  { %v1698_v17 = vpop.f32.mrf.mxu1 }
 0xd02   :  { %v1713_v19 = vmul.f32 %v1697_v44, %v1697_v44  ;;  %v1699_v47 = vadd.f32 %v1698_v17, %v1627_v63 }
 0xd03   :  { %v1700_v48 = vpop.f32.mrf.mxu1 }
 0xd04   :  { %v1717_v21 = vmul.f32 %v1713_v19, %v1697_v44  ;;  %v1701_v22 = vadd.f32 %v1700_v48, %v1631_v12 }
 0xd05   :  { %v1704_v23 = vpop.f32.mrf.mxu1 }
 0xd06   :  { %v1721_v25 = vmul.f32 0.044715, %v1717_v21  ;;  %v1714_v27 = vmul.f32 %v1701_v22, %v1701_v22  ;;  %v1705_v21 = vadd.f32 %v1704_v23, %v1627_v63 }
 0xd07   :  { %v1706_v28 = vpop.f32.mrf.mxu1 }
 0xd08   :  { %v1725_v10 = vadd.f32 %v1721_v25, %v1697_v44  ;;  %v1718_v29 = vmul.f32 %v1714_v27, %v1701_v22  ;;  %v1707_v30 = vadd.f32 %v1706_v28, %v1631_v12 }
 0xd09   :  { %v1708_v31 = vpop.f32.mrf.mxu1 }
 0xd0a   :  { %v1729_v32 = vmul.f32 0.7978846, %v1725_v10  ;;  %v1722_v35 = vmul.f32 0.044715, %v1718_v29  ;;  %v1715_v36 = vmul.f32 %v1707_v30, %v1707_v30  ;;  %v1709_v25 = vadd.f32 %v1708_v31, %v1627_v63  ;;  %v6098_v29 = vld [vmem:[#allocation13] ss:$0 sm:$0xff] }
 0xd0b   :  { %v1710_v37 = vpop.f32.mrf.mxu1 }
 0xd0c   :  { %7550 = vtanh.f32 %v1729_v32  ;;  %v1726_v38 = vadd.f32 %v1722_v35, %v1701_v22  ;;  %v1719_v39 = vmul.f32 %v1715_v36, %v1707_v30  ;;  %v1711_v40 = vadd.f32 %v1710_v37, %v1631_v12 }
 0xd0e   :  { %v1730_v41 = vmul.f32 0.7978846, %v1726_v38  ;;  %v1723_v42 = vmul.f32 0.044715, %v1719_v39  ;;  %v1716_v43 = vmul.f32 %v1711_v40, %v1711_v40 }
 0xd10   :  { %7552 = vtanh.f32 %v1730_v41  ;;  %v1727_v45 = vadd.f32 %v1723_v42, %v1707_v30  ;;  %v1720_v46 = vmul.f32 %v1716_v43, %v1711_v40 }
 0xd12   :  { %v1731_v49 = vmul.f32 0.7978846, %v1727_v45  ;;  %v1724_v50 = vmul.f32 0.044715, %v1720_v46 }
 0xd14   :  { %7554 = vtanh.f32 %v1731_v49  ;;  %v1728_v51 = vadd.f32 %v1724_v50, %v1711_v40 }
 0xd16   :  { %v1732_v53 = vmul.f32 0.7978846, %v1728_v51 }
 0xd18   :  { %7556 = vtanh.f32 %v1732_v53 }
 0xd19   :  { %v7551_v55 = vpop.eup %7550 }
 0xd1a   :  { %v1737_v60 = vadd.f32 1.0, %v7551_v55 }
 0xd1c   :  { %v1741_v61 = vmul.f32 0.5, %v1737_v60 }
 0xd1d   :  { %v7553_v62 = vpop.eup %7552 }
 0xd1e   :  { %v1738_v34 = vadd.f32 1.0, %v7553_v62  ;;  %v1745_v1 = vmul.f32 %v1741_v61, %v1697_v44 }
 0xd20   :  { %v1742_v24 = vmul.f32 0.5, %v1738_v34  ;;  %v1749_v5 = vmul.f32 %v1745_v1, %v1695_v2  ;;  %v7465_v2 = vld [vmem:[%s10053_s4 + $0x8] sm:$0xff]  }
 0xd21   :  { %v7555_v52 = vpop.eup %7554  ;;  %6715 = vmatprep.subr.bf16.mxu1 %v7465_v2 }
 0xd22   :  { %v1739_v3 = vadd.f32 1.0, %v7555_v52  ;;  %v1746_v4 = vmul.f32 %v1742_v24, %v1701_v22  ;;  %6716 = vmatpush3.bf16.msra.mxu1 %v7465_v2 }
 0xd24   :  { %v1743_v54 = vmul.f32 0.5, %v1739_v3  ;;  %v1750_v6 = vmul.f32 %v1746_v4, %v1699_v47  ;;  %v7466_v47 = vld [vmem:[%s10053_s4] sm:$0xff]   ;;  %v7467_v3 = vld [vmem:[#allocation18 + $0x8] sm:$0xff]  }
 0xd25   :  { %v7557_v57 = vpop.eup %7556  ;;  %6717 = vmatprep.subr.bf16.mxu1 %v7466_v47 }
 0xd26   :  { %v1740_v12 = vadd.f32 1.0, %v7557_v57  ;;  %v1753_v16 = vpack.c.bf16 %v1750_v6, %v1749_v5  ;;  %v1747_v19 = vmul.f32 %v1743_v54, %v1707_v30  ;;  %6718 = vmatpush3.bf16.msra.mxu1 %v7466_v47 }
 0xd27   :  { %6723 = vmatprep.subr.bf16.mxu1 %v7467_v3 }
 0xd28   :  { %v1744_v48 = vmul.f32 0.5, %v1740_v12  ;;  %6711 = vmatprep.mubr.bf16.mxu0 %v1753_v16  ;;  %v1751_v27 = vmul.f32 %v1747_v19, %v1705_v21 }
 0xd2a   :  { %v1748_v11 = vmul.f32 %v1744_v48, %v1711_v40 }
 0xd2c   :  { %v1752_v28 = vmul.f32 %v1748_v11, %v1709_v25 }
 0xd2e   :  { %v1754_v44 = vpack.c.bf16 %v1752_v28, %v1751_v27 }
 0xd30   :  { %6712 = vmatmul.mubr.bf16.vlgmr.msra.gmra.mxu0 %v1754_v44  ;;  %v6099_v44 = vld [vmem:[#allocation15] ss:$0 sm:$0xff] }
 0xdf0   :  { %v6713_v13 = vpop.f32.mrf.mxu0 }
 0xdf1   :  { %v1870_v22 = vadd.f32 %v6713_v13, %v9003_v58 }
 0xdf2   :  { %v1853_v17 = vpop.f32.mrf.mxu0 }
 0xdf3   :  { %v1868_v10 = vadd.f32 %v1853_v17, %v9001_v56  ;;  %v9055_v36 = vadd.f32 %v6098_v29, %v1870_v22 }
 0xdf4   :  { %v6714_v32 = vpop.f32.mrf.mxu0 }
 0xdf5   :  { %v9053_v35 = vadd.f32 %v6098_v29, %v1868_v10  ;;  %v1871_v23 = vadd.f32 %v6714_v32, %v9011_v26  ;;  %v1889_v56 = vsel %vm751_vm5, %v9055_v36, 0.0  ;;  %v6100_v32 = vld [vmem:[#allocation16] ss:$0 sm:$0xff] }
 0xdf6   :  { %v1856_v30 = vpop.f32.mrf.mxu0 }
 0xdf7   :  { %v1869_v31 = vadd.f32 %v1856_v30, %v9009_v33  ;;  %v1883_v37 = vsel %vm751_vm5, %v9053_v35, 0.0  ;;  %v9063_v58 = vadd.f32 %v6098_v29, %v1871_v23 }
 0xdf8   :  { %1884 = vadd.xlane.f32.xlu1 %v1883_v37 }
 0xdf9   :  { %v9061_v38 = vadd.f32 %v6098_v29, %v1869_v31  ;;  %v1892_v26 = vsel %vm751_vm5, %v9063_v58, 0.0 }
 0xdfb   :  { %v1886_v39 = vsel %vm751_vm5, %v9061_v38, 0.0 }
 0xdfc   :  { %1890 = vadd.xlane.f32.xlu1 %v1889_v56  ;;  %1887 = vadd.xlane.f32.xlu0 %v1886_v39 }
 0xe00   :  { %1893 = vadd.xlane.f32.xlu0 %v1892_v26 }
 0xe81   :  { %v1885_v33 = vpop.xlane.xlu1 %1884 }
 0xe82   :  { %v1895_v40 = vmul.f32 0.03125, %v1885_v33 }
 0xe84   :  { %v1899_v41 = vsub.f32 %v9053_v35, %v1895_v40 }
 0xe85   :  { %v1891_v42 = vpop.xlane.xlu1 %1890  ;;  %v1888_v43 = vpop.xlane.xlu0 %1887 }
 0xe86   :  { %v1897_v45 = vmul.f32 0.03125, %v1891_v42  ;;  %v1896_v46 = vmul.f32 0.03125, %v1888_v43  ;;  %v1903_v49 = vmul.f32 %v1899_v41, %v1899_v41  ;;  %v7468_v43 = vld [vmem:[#allocation18] sm:$0xff]  }
 0xe88   :  { %v1901_v50 = vsub.f32 %v9055_v36, %v1897_v45  ;;  %v1900_v51 = vsub.f32 %v9061_v38, %v1896_v46  ;;  %v1907_v53 = vsel %vm751_vm5, %v1903_v49, 0.0  ;;  %v7469_v45 = vld [vmem:[%s10054_s0 + $0x8] sm:$0xff]   ;;  %v7470_v46 = vld [vmem:[%s10054_s0] sm:$0xff]  }
 0xe89   :  { %1908 = vadd.xlane.f32.xlu1 %v1907_v53  ;;  %v1894_v55 = vpop.xlane.xlu0 %1893 }
 0xe8a   :  { %v1898_v60 = vmul.f32 0.03125, %v1894_v55  ;;  %v1905_v61 = vmul.f32 %v1901_v50, %v1901_v50  ;;  %v1904_v62 = vmul.f32 %v1900_v51, %v1900_v51 }
 0xe8c   :  { %v1902_v63 = vsub.f32 %v9063_v58, %v1898_v60  ;;  %v1913_v34 = vsel %vm751_vm5, %v1905_v61, 0.0  ;;  %v1910_v24 = vsel %vm751_vm5, %v1904_v62, 0.0 }
 0xe8d   :  { %1914 = vadd.xlane.f32.xlu1 %v1913_v34  ;;  %1911 = vadd.xlane.f32.xlu0 %v1910_v24 }
 0xe8e   :  { %v1906_v1 = vmul.f32 %v1902_v63, %v1902_v63 }
 0xe90   :  { %v1916_v52 = vsel %vm751_vm5, %v1906_v1, 0.0 }
 0xe91   :  { %1917 = vadd.xlane.f32.xlu0 %v1916_v52 }
 0xf12   :  { %v1909_v4 = vpop.xlane.xlu1 %1908 }
 0xf13   :  { %v1919_v54 = vmul.f32 0.03125, %v1909_v4 }
 0xf15   :  { %v1923_v5 = vadd.f32 1e-05, %v1919_v54 }
 0xf16   :  { %v1915_v6 = vpop.xlane.xlu1 %1914  ;;  %v1912_v57 = vpop.xlane.xlu0 %1911 }
 0xf17   :  { %7558 = vrsqrt.f32 %v1923_v5  ;;  %v1921_v12 = vmul.f32 0.03125, %v1915_v6  ;;  %v1920_v16 = vmul.f32 0.03125, %v1912_v57 }
 0xf19   :  { %v1925_v19 = vadd.f32 1e-05, %v1921_v12  ;;  %v1924_v48 = vadd.f32 1e-05, %v1920_v16 }
 0xf1a   :  { %v1918_v21 = vpop.xlane.xlu0 %1917 }
 0xf1b   :  { %7560 = vrsqrt.f32 %v1925_v19  ;;  %v1922_v25 = vmul.f32 0.03125, %v1918_v21 }
 0xf1c   :  { %7562 = vrsqrt.f32 %v1924_v48 }
 0xf1d   :  { %v1926_v11 = vadd.f32 1e-05, %v1922_v25 }
 0xf1f   :  { %7564 = vrsqrt.f32 %v1926_v11 }
 0xf24   :  { %v7559_v27 = vpop.eup %7558 }
 0xf25   :  { %v1931_v28 = vmul.f32 %v7559_v27, %v1899_v41 }
 0xf27   :  { %v1942_v29 = vmul.f32 %v6099_v44, %v1931_v28 }
 0xf28   :  { %v7561_v13 = vpop.eup %7560 }
 0xf29   :  { %v7563_v17 = vpop.eup %7562  ;;  %v1933_v22 = vmul.f32 %v7561_v13, %v1901_v50  ;;  %v1953_v56 = vadd.f32 %v6100_v32, %v1942_v29 }
 0xf2a   :  { %v1932_v10 = vmul.f32 %v7563_v17, %v1900_v51 }
 0xf2b   :  { %v1944_v37 = vmul.f32 %v6099_v44, %v1933_v22 }
 0xf2c   :  { %v7565_v30 = vpop.eup %7564  ;;  %v1943_v23 = vmul.f32 %v6099_v44, %v1932_v10 }
 0xf2d   :  { %v1934_v31 = vmul.f32 %v7565_v30, %v1902_v63  ;;  %v1955_v40 = vadd.f32 %v6100_v32, %v1944_v37 }
 0xf2e   :  { %v1954_v39 = vadd.f32 %v6100_v32, %v1943_v23 }
 0xf2f   :  { %v1945_v26 = vmul.f32 %v6099_v44, %v1934_v31 }
 0xf30   :  { %v1957_v33 = vpack.c.bf16 %v1954_v39, %v1953_v56 }
 0xf31   :  { %v1956_v42 = vadd.f32 %v6100_v32, %v1945_v26 }
 0xf32   :  { %6719 = vmatprep.mubr.msk.bf16.mxu1 %vm751_vm5, %v1957_v33 }
 0xf33   :  { %v1958_v41 = vpack.c.bf16 %v1956_v42, %v1955_v40 }
 0xf35   :  { %6720 = vmatmul.mubr.msk.bf16.vlgmr.msra.gmra.mxu1 %vm751_vm5, %v1958_v41 }
 0xf36   :  { %6724 = vmatpush3.bf16.msra.mxu1 %v7467_v3  ;;  %6727 = vmatprep.mubr.msk.bf16.mxu1 %vm751_vm5, %v1957_v33 }
 0xf37   :  { %6725 = vmatprep.subr.bf16.mxu1 %v7468_v43 }
 0xf3a   :  { %6726 = vmatpush3.bf16.msra.mxu1 %v7468_v43 }
 0xf3b   :  { %6731 = vmatprep.subr.bf16.mxu1 %v7469_v45 }
 0xf3d   :  { %6728 = vmatmul.mubr.msk.bf16.vlgmr.msra.gmra.mxu1 %vm751_vm5, %v1958_v41 }
 0xf3e   :  { %6732 = vmatpush3.bf16.msra.mxu1 %v7469_v45  ;;  %6735 = vmatprep.mubr.msk.bf16.mxu1 %vm751_vm5, %v1957_v33 }
 0xf3f   :  { %6733 = vmatprep.subr.bf16.mxu1 %v7470_v46 }
 0xf42   :  { %6734 = vmatpush3.bf16.msra.mxu1 %v7470_v46 }
 0xf45   :  { %6736 = vmatmul.mubr.msk.bf16.vlgmr.msra.gmra.mxu1 %vm751_vm5, %v1958_v41 }
 0xff5   :  { %v6721_v49 = vpop.f32.mrf.mxu1 }
 0xff7   :  { %v2015_v50 = vpop.f32.mrf.mxu1 }
 0xff9   :  { %v6722_v51 = vpop.f32.mrf.mxu1 }
 0xffa   :  { %v2165_v6 = vpack.c.bf16 %v6722_v51, %v6721_v49 }
 0xffb   :  { %v2018_v53 = vpop.f32.mrf.mxu1 }
 0xffc   :  { %v9089_v55 = vpack.c.bf16 %v2018_v53, %v2015_v50 }
 0xffd   :  { %v6729_v60 = vpop.f32.mrf.mxu1 }
 0xffe   :  { %6743 = vmatprep.mubr.msk.bf16.mxu0 %vm1038_vm6, %v9089_v55 }
 0xfff   :  { %v2080_v61 = vpop.f32.mrf.mxu1 }
0x1001   :  { %v6730_v62 = vpop.f32.mrf.mxu1 }
0x1002   :  { %v9093_v63 = vpack.c.bf16 %v6730_v62, %v6729_v60 }
0x1003   :  { %v2083_v34 = vpop.f32.mrf.mxu1 }
0x1004   :  { %v9095_v24 = vpack.c.bf16 %v2083_v34, %v2080_v61  ;;  %7173 = vmatprep.subr.msk.bf16.mxu0 %vm1038_vm6, %v9093_v63  ;;  %v2178_v1 = vsel %vm1038_vm6, %v9093_v63, 0 }
0x1005   :  { %v6737_v52 = vpop.f32.mrf.mxu1  ;;  %6740 = vmatpush3.bf16.xpose.msra.mxu0 %v2178_v1 }
0x1006   :  { %7174 = vmatprep.subr.msk.bf16.mxu0 %vm1038_vm6, %v9095_v24  ;;  %v2175_v5 = vsel %vm1038_vm6, %v9095_v24, 0 }
0x1007   :  { %v2145_v2 = vpop.f32.mrf.mxu1 }
0x1009   :  { %v6738_v47 = vpop.f32.mrf.mxu1 }
0x100a   :  { %v9103_v3 = vpack.c.bf16 %v6738_v47, %v6737_v52 }
0x100b   :  { %v2148_v4 = vpop.f32.mrf.mxu1 }
0x100c   :  { %v9105_v54 = vpack.c.bf16 %v2148_v4, %v2145_v2  ;;  %6747 = vmatprep.subr.bf16.mxu1 %v9103_v3 }
0x100d   :  { %6742 = vmatpush3.bf16.xpose.msra.mxu0 %v2175_v5  ;;  %6748 = vmatpush3.bf16.msra.mxu1 %v9103_v3 }
0x100e   :  { %6749 = vmatprep.subr.bf16.mxu1 %v9105_v54 }
0x1011   :  { %6750 = vmatpush3.bf16.msra.mxu1 %v9105_v54 }
0x1014   :  { %6744 = vmatmul.mubr.msk.bf16.vlgmr.msra.gmra.mxu0 %vm1038_vm6, %v2165_v6 }
0x10d4   :  { %v6745_v57 = vpop.f32.mrf.mxu0 }
0x10d5   :  { %v2231_v16 = vmul.f32 0.25, %v6745_v57 }
0x10d6   :  { %v2214_v12 = vpop.f32.mrf.mxu0 }
0x10d7   :  { %v2229_v19 = vmul.f32 0.25, %v2214_v12  ;;  %v2235_v44 = vadd.f32 %v2231_v16, %v8942_v15 }
0x10d8   :  { %v6746_v48 = vpop.f32.mrf.mxu0 }
0x10d9   :  { %v2233_v21 = vadd.f32 %v2229_v19, %v8940_v7  ;;  %v2232_v11 = vmul.f32 0.25, %v6746_v48  ;;  %v2243_v17 = vsel %vm751_vm5, %v2235_v44, -inf }
0x10da   :  { %v2217_v25 = vpop.f32.mrf.mxu0 }
0x10db   :  { %v2230_v27 = vmul.f32 0.25, %v2217_v25  ;;  %v2237_v28 = vsel %vm751_vm5, %v2233_v21, -inf  ;;  %v2236_v10 = vadd.f32 %v2232_v11, %v8947_v20  ;;  %v7471_v11 = vld [vmem:[#allocation19] sm:$0xff]  }
0x10dc   :  { %2238 = vmax.xlane.f32.xlu1 %v2237_v28 }
0x10dd   :  { %v2234_v13 = vadd.f32 %v2230_v27, %v8945_v18  ;;  %v2246_v29 = vsel %vm751_vm5, %v2236_v10, -inf }
0x10df   :  { %v2240_v22 = vsel %vm751_vm5, %v2234_v13, -inf }
0x10e0   :  { %2244 = vmax.xlane.f32.xlu1 %v2243_v17  ;;  %2241 = vmax.xlane.f32.xlu0 %v2240_v22 }
0x10e4   :  { %2247 = vmax.xlane.f32.xlu0 %v2246_v29 }
0x1165   :  { %v2239_v32 = vpop.xlane.xlu1 %2238 }
0x1166   :  { %v2249_v30 = vsub.f32 %v2233_v21, %v2239_v32 }
0x1168   :  { %v2253_v39 = vmul.f32 1.442695, %v2249_v30 }
0x1169   :  { %v2245_v23 = vpop.xlane.xlu1 %2244  ;;  %v2242_v31 = vpop.xlane.xlu0 %2241 }
0x116a   :  { %v2251_v37 = vsub.f32 %v2235_v44, %v2245_v23  ;;  %v2250_v56 = vsub.f32 %v2234_v13, %v2242_v31 }
0x116c   :  { %v2257_v26 = vmul.f32 1.442695, %v2251_v37  ;;  %v2255_v33 = vmul.f32 1.442695, %v2250_v56 }
0x116d   :  { %v2248_v40 = vpop.xlane.xlu0 %2247 }
0x116e   :  { %7566 = vpow2.f32 %v2257_v26  ;;  %v2252_v42 = vsub.f32 %v2236_v10, %v2248_v40 }
0x116f   :  { %7568 = vpow2.f32 %v2255_v33 }
0x1170   :  { %7570 = vpow2.f32 %v2253_v39  ;;  %v2259_v41 = vmul.f32 1.442695, %v2252_v42 }
0x1172   :  { %7572 = vpow2.f32 %v2259_v41 }
0x117b   :  { %v7567_v43 = vpop.eup %7566 }
0x117c   :  { %v7569_v45 = vpop.eup %7568  ;;  %v2267_v46 = vsel %vm751_vm5, %v7567_v43, 0.0 }
0x117d   :  { %v7571_v49 = vpop.eup %7570  ;;  %2268 = vadd.xlane.f32.xlu1 %v2267_v46  ;;  %v2264_v50 = vsel %vm751_vm5, %v7569_v45, 0.0 }
0x117e   :  { %2265 = vadd.xlane.f32.xlu0 %v2264_v50  ;;  %v2261_v53 = vsel %vm751_vm5, %v7571_v49, 0.0 }
0x117f   :  { %v7573_v51 = vpop.eup %7572 }
0x1180   :  { %v2270_v60 = vsel %vm751_vm5, %v7573_v51, 0.0 }
0x1181   :  { %2262 = vadd.xlane.f32.xlu1 %v2261_v53 }
0x1182   :  { %2271 = vadd.xlane.f32.xlu0 %v2270_v60 }
0x1192   :  { %2352 = vrot.lane.b32.xlu1 %v9093_v63, %s8508_s20 }
0x1196   :  { %2344 = vrot.lane.b32.xlu1 %v9089_v55, %s8508_s20 }
0x1198   :  { %2350 = vrot.lane.b32.xlu0 %v9095_v24, %s8508_s20 }
0x119a   :  { %2346 = vrot.lane.b32.xlu1 %v2165_v6, %s8508_s20 }
0x1206   :  { %v2269_v61 = vpop.xlane.xlu1 %2268 }
0x1207   :  { %v2266_v62 = vpop.xlane.xlu0 %2265 }
0x1208   :  { %7574 = vrcp.f32 %v2266_v62 }
0x1209   :  { %7576 = vrcp.f32 %v2269_v61 }
0x120a   :  { %v2263_v34 = vpop.xlane.xlu1 %2262 }
0x120b   :  { %7578 = vrcp.f32 %v2263_v34  ;;  %v2272_v1 = vpop.xlane.xlu0 %2271 }
0x120c   :  { %7580 = vrcp.f32 %v2272_v1 }
0x120e   :  { %v2353_v52 = vpop.permute.xlu1 %2352 }
0x120f   :  { %7175 = vmatprep.subr.msk.bf16.mxu1 %vm1038_vm6, %v2353_v52  ;;  %v2364_v16 = vsel %vm1038_vm6, %v2353_v52, 0  ;;  %v2351_v48 = vpop.permute.xlu0 %2350 }
0x1210   :  { %v2361_v21 = vsel %vm1038_vm6, %v2351_v48, 0 }
0x1212   :  { %v2345_v19 = vpop.permute.xlu1 %2344 }
0x1215   :  { %v7575_v63 = vpop.eup %7574 }
0x1216   :  { %v7577_v2 = vpop.eup %7576  ;;  %v2278_v5 = vmul.f32 %v7575_v63, %v7569_v45  ;;  %v2347_v25 = vpop.permute.xlu1 %2346 }
0x1217   :  { %v2279_v24 = vmul.f32 %v7577_v2, %v7567_v43 }
0x1218   :  { %v7579_v47 = vpop.eup %7578 }
0x1219   :  { %v7581_v55 = vpop.eup %7580  ;;  %v2277_v4 = vmul.f32 %v7579_v47, %v7571_v49 }
0x121a   :  { %v2280_v57 = vmul.f32 %v7581_v55, %v7573_v51 }
0x121b   :  { %v2281_v6 = vpack.c.bf16 %v2278_v5, %v2277_v4 }
0x121c   :  { %v2282_v12 = vpack.c.bf16 %v2280_v57, %v2279_v24 }
0x121d   :  { %6751 = vmatprep.mubr.msk.bf16.mxu1 %vm751_vm5, %v2281_v6 }
0x121e   :  { %6752 = vmatmul.mubr.msk.bf16.vlgmr.msra.gmra.mxu1 %vm751_vm5, %v2282_v12 }
0x121f   :  { %6756 = vmatpush3.bf16.xpose.msra.mxu1 %v2364_v16  ;;  %6759 = vmatprep.mubr.msk.bf16.mxu1 %vm1038_vm6, %v2345_v19 }
0x1220   :  { %7176 = vmatprep.subr.msk.bf16.mxu1 %vm1038_vm6, %v2351_v48 }
0x1227   :  { %6758 = vmatpush3.bf16.xpose.msra.mxu1 %v2361_v21 }
0x1228   :  { %6777 = vmatprep.subr.bf16.mxu1 %v7471_v11 }
0x122e   :  { %6760 = vmatmul.mubr.msk.bf16.vlgmr.msra.gmra.mxu1 %vm1038_vm6, %v2347_v25 }
0x122f   :  { %6778 = vmatpush3.bf16.msra.mxu1 %v7471_v11 }
0x12de   :  { %v6753_v27 = vpop.f32.mrf.mxu1 }
0x12e0   :  { %v2325_v28 = vpop.f32.mrf.mxu1 }
0x12e2   :  { %v6754_v44 = vpop.f32.mrf.mxu1 }
0x12e3   :  { %v2341_v22 = vpack.c.bf16 %v6754_v44, %v6753_v27 }
0x12e4   :  { %v2328_v13 = vpop.f32.mrf.mxu1 }
0x12e5   :  { %v2340_v17 = vpack.c.bf16 %v2328_v13, %v2325_v28  ;;  %v7472_v13 = vld [vmem:[#allocation19 + $0x8] sm:$0xff]  }
0x12e7   :  { %6779 = vmatprep.mubr.msk.bf16.mxu1 %vm1038_vm6, %v2340_v17 }
0x12e8   :  { %6780 = vmatmul.mubr.msk.bf16.vlgmr.msra.gmra.mxu1 %vm1038_vm6, %v2341_v22 }
0x12ee   :  { %v6761_v10 = vpop.f32.mrf.mxu1 }
0x12ef   :  { %v2417_v32 = vmul.f32 0.25, %v6761_v10 }
0x12f0   :  { %v2400_v29 = vpop.f32.mrf.mxu1 }
0x12f1   :  { %v2415_v30 = vmul.f32 0.25, %v2400_v29  ;;  %v2421_v33 = vadd.f32 %v2417_v32, %v8942_v15 }
0x12f2   :  { %v6762_v23 = vpop.f32.mrf.mxu1 }
0x12f3   :  { %v2419_v31 = vadd.f32 %v2415_v30, %v8940_v7  ;;  %v2418_v56 = vmul.f32 0.25, %v6762_v23  ;;  %v2429_v42 = vsel %vm751_vm5, %v2421_v33, -inf }
0x12f4   :  { %v2403_v37 = vpop.f32.mrf.mxu1 }
0x12f5   :  { %v2416_v39 = vmul.f32 0.25, %v2403_v37  ;;  %v2423_v26 = vsel %vm751_vm5, %v2419_v31, -inf  ;;  %v2422_v43 = vadd.f32 %v2418_v56, %v8947_v20 }
0x12f6   :  { %2424 = vmax.xlane.f32.xlu0 %v2423_v26 }
0x12f7   :  { %v2420_v40 = vadd.f32 %v2416_v39, %v8945_v18  ;;  %v2432_v7 = vsel %vm751_vm5, %v2422_v43, -inf }
0x12f9   :  { %v2426_v41 = vsel %vm751_vm5, %v2420_v40, -inf }
0x12fa   :  { %2430 = vmax.xlane.f32.xlu0 %v2429_v42  ;;  %2427 = vmax.xlane.f32.xlu1 %v2426_v41 }
0x12fe   :  { %2433 = vmax.xlane.f32.xlu0 %v2432_v7 }
0x137f   :  { %v2425_v45 = vpop.xlane.xlu0 %2424 }
0x1380   :  { %v2435_v46 = vsub.f32 %v2419_v31, %v2425_v45  ;;  %v6127_v45 = vld [vmem:[#allocation21] ss:$0 sm:$0xff] }
0x1382   :  { %v2439_v15 = vmul.f32 1.442695, %v2435_v46 }
0x1383   :  { %v2431_v49 = vpop.xlane.xlu0 %2430  ;;  %v2428_v50 = vpop.xlane.xlu1 %2427 }
0x1384   :  { %v2437_v51 = vsub.f32 %v2421_v33, %v2431_v49  ;;  %v2436_v60 = vsub.f32 %v2420_v40, %v2428_v50 }
0x1386   :  { %v2443_v53 = vmul.f32 1.442695, %v2437_v51  ;;  %v2441_v62 = vmul.f32 1.442695, %v2436_v60 }
0x1387   :  { %v2434_v18 = vpop.xlane.xlu0 %2433 }
0x1388   :  { %7582 = vpow2.f32 %v2443_v53  ;;  %v2438_v61 = vsub.f32 %v2422_v43, %v2434_v18 }
0x1389   :  { %7584 = vpow2.f32 %v2439_v15 }
0x138a   :  { %v2445_v34 = vmul.f32 1.442695, %v2438_v61 }
0x138c   :  { %7586 = vpow2.f32 %v2445_v34 }
0x138d   :  { %7588 = vpow2.f32 %v2441_v62 }
0x1395   :  { %v7583_v20 = vpop.eup %7582 }
0x1396   :  { %v2453_v1 = vsel %vm751_vm5, %v7583_v20, 0.0  ;;  %v7585_v52 = vpop.eup %7584 }
0x1397   :  { %2454 = vadd.xlane.f32.xlu1 %v2453_v1  ;;  %v2447_v47 = vsel %vm751_vm5, %v7585_v52, 0.0 }
0x1399   :  { %v7587_v63 = vpop.eup %7586 }
0x139a   :  { %v2456_v2 = vsel %vm751_vm5, %v7587_v63, 0.0  ;;  %v7589_v55 = vpop.eup %7588 }
0x139b   :  { %2457 = vadd.xlane.f32.xlu0 %v2456_v2  ;;  %2448 = vadd.xlane.f32.xlu1 %v2447_v47  ;;  %v2450_v4 = vsel %vm751_vm5, %v7589_v55, 0.0 }
0x139f   :  { %2451 = vadd.xlane.f32.xlu0 %v2450_v4 }
0x13a8   :  { %v6781_v23 = vpop.f32.mrf.mxu1 }
0x13aa   :  { %v2641_v31 = vpop.f32.mrf.mxu1 }
0x13ac   :  { %2473 = vrot.lane.b32.xlu1 %v9103_v3, %s8508_s20  ;;  %v6782_v39 = vpop.f32.mrf.mxu1 }
0x13ae   :  { %v2644_v7 = vpop.f32.mrf.mxu1 }
0x13b5   :  { %2471 = vrot.lane.b32.xlu0 %v9105_v54, %s8508_s20 }
0x1420   :  { %v2455_v5 = vpop.xlane.xlu1 %2454 }
0x1424   :  { %v2458_v24 = vpop.xlane.xlu0 %2457  ;;  %v2449_v57 = vpop.xlane.xlu1 %2448 }
0x1425   :  { %7590 = vrcp.f32 %v2458_v24 }
0x1426   :  { %7592 = vrcp.f32 %v2449_v57 }
0x1427   :  { %7594 = vrcp.f32 %v2455_v5 }
0x1428   :  { %v2452_v6 = vpop.xlane.xlu0 %2451  ;;  %v2474_v12 = vpop.permute.xlu1 %2473 }
0x1429   :  { %7596 = vrcp.f32 %v2452_v6  ;;  %6763 = vmatprep.subr.bf16.mxu0 %v2474_v12 }
0x142a   :  { %6764 = vmatpush3.bf16.msra.mxu0 %v2474_v12 }
0x142c   :  { %v2472_v16 = vpop.permute.xlu0 %2471 }
0x142d   :  { %6765 = vmatprep.subr.bf16.mxu0 %v2472_v16 }
0x142e   :  { %6766 = vmatpush3.bf16.msra.mxu0 %v2472_v16 }
0x142f   :  { %6771 = vmatprep.subr.bf16.mxu0 %v7472_v13 }
0x1432   :  { %v7591_v19 = vpop.eup %7590 }
0x1433   :  { %v7593_v48 = vpop.eup %7592  ;;  %v2466_v25 = vmul.f32 %v7591_v19, %v7587_v63 }
0x1434   :  { %v7595_v3 = vpop.eup %7594  ;;  %v2463_v54 = vmul.f32 %v7593_v48, %v7585_v52 }
0x1435   :  { %v2465_v27 = vmul.f32 %v7595_v3, %v7583_v20 }
0x1436   :  { %v7597_v21 = vpop.eup %7596 }
0x1437   :  { %v2464_v11 = vmul.f32 %v7597_v21, %v7589_v55  ;;  %v2468_v44 = vpack.c.bf16 %v2466_v25, %v2465_v27  ;;  %v7475_v21 = vld [vmem:[%s10055_s18 + $0x14] ss:$8 sps:$4 sm:$0xff]   ;;  %v7473_v25 = vld [vmem:[%s10055_s18 + $0x10] ss:$8 sps:$4 sm:$0xff]  }
0x1439   :  { %v2467_v28 = vpack.c.bf16 %v2464_v11, %v2463_v54  ;;  %v7478_v54 = vld [vmem:[%s10055_s18 + $0x4] ss:$8 sps:$4 sm:$0xff]   ;;  %v7476_v11 = vld [vmem:[%s10055_s18] ss:$8 sps:$4 sm:$0xff]  }
0x143b   :  { %6767 = vmatprep.mubr.msk.bf16.mxu0 %vm751_vm5, %v2467_v28 }
0x143c   :  { %6768 = vmatmul.mubr.msk.bf16.vlgmr.msra.gmra.mxu0 %vm751_vm5, %v2468_v44 }
0x143d   :  { %6772 = vmatpush3.bf16.msra.mxu0 %v7472_v13 }
0x143e   :  { %2801 = vmatprep.subr.bf16.mxu0 %v7475_v21 }
0x14fc   :  { %v6769_v17 = vpop.f32.mrf.mxu0 }
0x14fe   :  { %v2517_v22 = vpop.f32.mrf.mxu0 }
0x1500   :  { %v6770_v10 = vpop.f32.mrf.mxu0 }
0x1501   :  { %v2533_v30 = vpack.c.bf16 %v6770_v10, %v6769_v17 }
0x1502   :  { %v2520_v29 = vpop.f32.mrf.mxu0 }
0x1503   :  { %v2532_v32 = vpack.c.bf16 %v2520_v29, %v2517_v22 }
0x1505   :  { %6773 = vmatprep.mubr.msk.bf16.mxu0 %vm1038_vm6, %v2532_v32 }
0x1506   :  { %6774 = vmatmul.mubr.msk.bf16.vlgmr.msra.gmra.mxu0 %vm1038_vm6, %v2533_v30 }
0x1507   :  { %2821 = vmatprep.mubr.bf16.mxu0 %v8506_v0  ;;  %2802 = vmatpush1.bf16.msra.mxu0 %v7473_v25 }
0x1508   :  { %2803 = vmatprep.subr.bf16.mxu0 %v7478_v54 }
0x150b   :  { %2804 = vmatpush1.bf16.msra.mxu0 %v7476_v11 }
0x150c   :  { %6803 = vmatprep.subr.bf16.mxu0 %v8507_v14 }
0x15c6   :  { %v6775_v37 = vpop.f32.mrf.mxu0 }
0x15c7   :  { %v2650_v56 = vadd.f32 %v6781_v23, %v6775_v37 }
0x15c8   :  { %v2580_v26 = vpop.f32.mrf.mxu0 }
0x15c9   :  { %v2642_v33 = vadd.f32 %v2641_v31, %v2580_v26  ;;  %v2658_v42 = vadd.f32 %v2650_v56, %v9055_v36 }
0x15ca   :  { %v6776_v40 = vpop.f32.mrf.mxu0 }
0x15cb   :  { %v2656_v41 = vadd.f32 %v2642_v33, %v9053_v35  ;;  %v2653_v43 = vadd.f32 %v6782_v39, %v6776_v40  ;;  %v9168_v51 = vadd.f32 %v6127_v45, %v2658_v42  ;;  %v6128_v39 = vld [vmem:[#allocation22] ss:$0 sm:$0xff] }
0x15cc   :  { %v2583_v46 = vpop.f32.mrf.mxu0 }
0x15cd   :  { %v9166_v49 = vadd.f32 %v6127_v45, %v2656_v41  ;;  %v2645_v50 = vadd.f32 %v2644_v7, %v2583_v46  ;;  %v2659_v15 = vadd.f32 %v2653_v43, %v9063_v58  ;;  %v2677_v61 = vsel %vm751_vm5, %v9168_v51, 0.0  ;;  %v6129_v41 = vld [vmem:[#allocation24] ss:$0 sm:$0xff] }
0x15cf   :  { %v2657_v53 = vadd.f32 %v2645_v50, %v9061_v38  ;;  %v2671_v60 = vsel %vm751_vm5, %v9166_v49, 0.0  ;;  %v9176_v35 = vadd.f32 %v6127_v45, %v2659_v15 }
0x15d0   :  { %2672 = vadd.xlane.f32.xlu1 %v2671_v60 }
0x15d1   :  { %v9174_v36 = vadd.f32 %v6127_v45, %v2657_v53  ;;  %v2680_v58 = vsel %vm751_vm5, %v9176_v35, 0.0  ;;  %v3016_v45 = vld [vmem:[#allocation28] sm:$0xf] }
0x15d3   :  { %v2674_v18 = vsel %vm751_vm5, %v9174_v36, 0.0 }
0x15d4   :  { %2675 = vadd.xlane.f32.xlu0 %v2674_v18  ;;  %2678 = vadd.xlane.f32.xlu1 %v2677_v61  ;;  %v3030_v18 = vsel %vm3028_vm7, %v3016_v45, 0 }
0x15d8   :  { %2681 = vadd.xlane.f32.xlu0 %v2680_v58 }
0x1659   :  { %v2673_v38 = vpop.xlane.xlu1 %2672 }
0x165a   :  { %v2683_v62 = vmul.f32 0.03125, %v2673_v38 }
0x165c   :  { %v2687_v34 = vsub.f32 %v9166_v49, %v2683_v62 }
0x165d   :  { %v2676_v20 = vpop.xlane.xlu0 %2675  ;;  %v2679_v1 = vpop.xlane.xlu1 %2678 }
0x165e   :  { %v2684_v52 = vmul.f32 0.03125, %v2676_v20  ;;  %v2685_v63 = vmul.f32 0.03125, %v2679_v1  ;;  %v2691_v2 = vmul.f32 %v2687_v34, %v2687_v34  ;;  %v3014_v20 = vld [vmem:[%s10056_s22] sm:$0x3] }
0x165f   :  { %v3015_v1 = vpack.c.bf16 %v3014_v20, %v3014_v20 }
0x1660   :  { %v2688_v47 = vsub.f32 %v9174_v36, %v2684_v52  ;;  %v2689_v55 = vsub.f32 %v9168_v51, %v2685_v63  ;;  %v2695_v4 = vsel %vm751_vm5, %v2691_v2, 0.0  ;;  %v7480_v52 = vld [vmem:[%s10057_s27 + $0x30] sm:$0xff]   ;;  %v7481_v63 = vld [vmem:[%s10057_s27 + $0x28] sm:$0xff]   ;;  %v7482_v2 = vld [vmem:[%s10057_s27 + $0x20] sm:$0xff]  }
0x1661   :  { %v2682_v5 = vpop.xlane.xlu0 %2681  ;;  %2696 = vadd.xlane.f32.xlu1 %v2695_v4  ;;  %v7485_v4 = vld [vmem:[%s10057_s27 + $0x8] sm:$0xff]  }
0x1662   :  { %v2686_v24 = vmul.f32 0.03125, %v2682_v5  ;;  %v2692_v57 = vmul.f32 %v2688_v47, %v2688_v47  ;;  %v2693_v6 = vmul.f32 %v2689_v55, %v2689_v55  ;;  %v7486_v5 = vld [vmem:[%s10057_s27] sm:$0xff]  }
0x1664   :  { %v2690_v12 = vsub.f32 %v9176_v35, %v2686_v24  ;;  %v2698_v16 = vsel %vm751_vm5, %v2692_v57, 0.0  ;;  %v2701_v19 = vsel %vm751_vm5, %v2693_v6, 0.0  ;;  %v7487_v24 = vld [vmem:[%s10058_s25 + $0x8] sm:$0xff]   ;;  %v7488_v57 = vld [vmem:[%s10058_s25] sm:$0xff]  }
0x1665   :  { %2699 = vadd.xlane.f32.xlu0 %v2698_v16  ;;  %2702 = vadd.xlane.f32.xlu1 %v2701_v19  ;;  %v2751_v6 = vld [vmem:[#allocation25] sm:$0x3] }
0x1666   :  { %v2694_v48 = vmul.f32 %v2690_v12, %v2690_v12  ;;  %v2756_v20 = vrot.slane %v2751_v6, %v1626_v59 }
0x1668   :  { %v2704_v3 = vsel %vm751_vm5, %v2694_v48, 0.0 }
0x1669   :  { %2705 = vadd.xlane.f32.xlu0 %v2704_v3 }
0x16ea   :  { %v2697_v27 = vpop.xlane.xlu1 %2696 }
0x16eb   :  { %v2707_v28 = vmul.f32 0.03125, %v2697_v27 }
0x16ed   :  { %v2711_v44 = vadd.f32 1e-05, %v2707_v28 }
0x16ee   :  { %v2700_v13 = vpop.xlane.xlu0 %2699  ;;  %v2703_v17 = vpop.xlane.xlu1 %2702 }
0x16ef   :  { %7598 = vrsqrt.f32 %v2711_v44  ;;  %v2708_v22 = vmul.f32 0.03125, %v2700_v13  ;;  %v2709_v10 = vmul.f32 0.03125, %v2703_v17 }
0x16f1   :  { %v2712_v29 = vadd.f32 1e-05, %v2708_v22  ;;  %v2713_v32 = vadd.f32 1e-05, %v2709_v10 }
0x16f2   :  { %v2706_v30 = vpop.xlane.xlu0 %2705 }
0x16f3   :  { %7600 = vrsqrt.f32 %v2712_v29  ;;  %v2710_v23 = vmul.f32 0.03125, %v2706_v30 }
0x16f4   :  { %7602 = vrsqrt.f32 %v2713_v32 }
0x16f5   :  { %v2714_v31 = vadd.f32 1e-05, %v2710_v23 }
0x16f7   :  { %7604 = vrsqrt.f32 %v2714_v31  ;;  %v6145_v31 = vld [vmem:[#allocation30] ss:$0 sm:$0xff] }
0x16fc   :  { %v7599_v37 = vpop.eup %7598 }
0x16fd   :  { %v2719_v56 = vmul.f32 %v7599_v37, %v2687_v34 }
0x16ff   :  { %v2730_v40 = vmul.f32 %v6128_v39, %v2719_v56 }
0x1700   :  { %v7601_v26 = vpop.eup %7600 }
0x1701   :  { %v2720_v33 = vmul.f32 %v7601_v26, %v2688_v47  ;;  %v7603_v42 = vpop.eup %7602  ;;  %v2741_v46 = vadd.f32 %v6129_v41, %v2730_v40  ;;  %v7483_v47 = vld [vmem:[%s10057_s27 + $0x18] sm:$0xff]  }
0x1702   :  { %v2721_v15 = vmul.f32 %v7603_v42, %v2689_v55  ;;  %v7484_v55 = vld [vmem:[%s10057_s27 + $0x10] sm:$0xff]  }
0x1703   :  { %v2731_v43 = vmul.f32 %v6128_v39, %v2720_v33 }
0x1704   :  { %v7605_v7 = vpop.eup %7604  ;;  %v2732_v58 = vmul.f32 %v6128_v39, %v2721_v15 }
0x1705   :  { %v2742_v50 = vadd.f32 %v6129_v41, %v2731_v43  ;;  %v2722_v53 = vmul.f32 %v7605_v7, %v2690_v12  ;;  %v2760_v12 = vrot.slane %v2751_v6, %v1630_v9 }
0x1706   :  { %v2743_v62 = vadd.f32 %v6129_v41, %v2732_v58 }
0x1707   :  { %v2745_v60 = vpack.c.bf16 %v2742_v50, %v2741_v46  ;;  %v2733_v61 = vmul.f32 %v6128_v39, %v2722_v53 }
0x1709   :  { %6134 = vmatmul.mubr.msk.bf16.vlgmr.msra.gmra.mxu0 %vm751_vm5, %v2745_v60  ;;  %v2744_v38 = vadd.f32 %v6129_v41, %v2733_v61 }
0x170a   :  { %2831 = vmatprep.mubr.bf16.mxu0 %v8506_v0  ;;  %6804 = vmatpush3.bf16.msra.mxu0 %v3030_v18  ;;  %v7479_v0 = vld [vmem:[%s10057_s27 + $0x38] sm:$0xff]  }
0x170b   :  { %6809 = vmatprep.subr.bf16.mxu0 %v8507_v14  ;;  %v2746_v34 = vpack.c.bf16 %v2744_v38, %v2743_v62  ;;  %6783 = vmatprep.subr.bf16.mxu1 %v7479_v0 }
0x170c   :  { %6784 = vmatpush3.bf16.msra.mxu1 %v7479_v0 }
0x170d   :  { %6785 = vmatprep.subr.bf16.mxu1 %v7480_v52 }
0x1710   :  { %6786 = vmatpush3.bf16.msra.mxu1 %v7480_v52 }
0x1711   :  { %6135 = vmatmul.mubr.msk.bf16.gmra.mxu0 %vm751_vm5, %v2746_v34  ;;  %6787 = vmatprep.subr.bf16.mxu1 %v7481_v63 }
0x1712   :  { %6805 = vmatprep.mubr.msk.bf16.mxu0 %vm8509_vm8, %v8507_v14 }
0x1714   :  { %6788 = vmatpush3.bf16.msra.mxu1 %v7481_v63 }
0x1715   :  { %6789 = vmatprep.subr.bf16.mxu1 %v7482_v2 }
0x1718   :  { %6790 = vmatpush3.bf16.msra.mxu1 %v7482_v2 }
0x1719   :  { %6806 = vmatmul.mubr.msk.bf16.vlgmr.msra.gmra.mxu0 %vm3024_vm9, %v3015_v1  ;;  %6791 = vmatprep.subr.bf16.mxu1 %v7483_v47 }
0x171a   :  { %6813 = vmatprep.mubr.msk.bf16.mxu0 %vm8509_vm8, %v8507_v14  ;;  %6810 = vmatpush3.bf16.msra.mxu0 %v7487_v24 }
0x171b   :  { %6811 = vmatprep.subr.bf16.mxu0 %v8507_v14 }
0x171c   :  { %6792 = vmatpush3.bf16.msra.mxu1 %v7483_v47 }
0x171d   :  { %6793 = vmatprep.subr.bf16.mxu1 %v7484_v55 }
0x171e   :  { %6812 = vmatpush3.bf16.msra.mxu0 %v7488_v57 }
0x171f   :  { %6817 = vmatprep.subr.bf16.mxu0 %v8507_v14 }
0x1720   :  { %6794 = vmatpush3.bf16.msra.mxu1 %v7484_v55 }
0x1721   :  { %6795 = vmatprep.subr.bf16.mxu1 %v7485_v4 }
0x1724   :  { %6796 = vmatpush3.bf16.msra.mxu1 %v7485_v4 }
0x1725   :  { %6797 = vmatprep.subr.bf16.mxu1 %v7486_v5 }
0x1728   :  { %6798 = vmatpush3.bf16.msra.mxu1 %v7486_v5 }
0x17c9   :  { %v2823_v16 = vpop.f32.mrf.mxu0 }
0x17ca   :  { %v2824_v55 = vadd.f32 %v2823_v16, %v2756_v20 }
0x17cb   :  { %v2825_v19 = vpop.f32.mrf.mxu0 }
0x17cc   :  { %v2826_v48 = vadd.f32 %v2825_v19, %v2760_v12 }
0x17cd   :  { %v2827_v3 = vpop.f32.mrf.mxu0 }
0x17ce   :  { %v2842_v21 = vmul.f32 %v2826_v48, %v2826_v48  ;;  %v2828_v4 = vadd.f32 %v2827_v3, %v2756_v20 }
0x17cf   :  { %v2829_v25 = vpop.f32.mrf.mxu0 }
0x17d0   :  { %v2846_v54 = vmul.f32 %v2842_v21, %v2826_v48  ;;  %v2830_v11 = vadd.f32 %v2829_v25, %v2760_v12 }
0x17d1   :  { %v2833_v27 = vpop.f32.mrf.mxu0 }
0x17d2   :  { %v2850_v28 = vmul.f32 0.044715, %v2846_v54  ;;  %v2843_v44 = vmul.f32 %v2830_v11, %v2830_v11  ;;  %v2834_v6 = vadd.f32 %v2833_v27, %v2756_v20 }
0x17d3   :  { %v2835_v13 = vpop.f32.mrf.mxu0 }
0x17d4   :  { %v2854_v17 = vadd.f32 %v2850_v28, %v2826_v48  ;;  %v2847_v22 = vmul.f32 %v2843_v44, %v2830_v11  ;;  %v2836_v10 = vadd.f32 %v2835_v13, %v2760_v12 }
0x17d5   :  { %v2837_v29 = vpop.f32.mrf.mxu0 }
0x17d6   :  { %v2858_v32 = vmul.f32 0.7978846, %v2854_v17  ;;  %v2851_v30 = vmul.f32 0.044715, %v2847_v22  ;;  %v2844_v23 = vmul.f32 %v2836_v10, %v2836_v10  ;;  %v2838_v28 = vadd.f32 %v2837_v29, %v2756_v20  ;;  %v7489_v22 = vld [vmem:[%s10059_s3 + $0x8] sm:$0xff]   ;;  %v9286_v20 = vld [vmem:[%s10062_s8 + $0x10] sm:$0xff] }
0x17d7   :  { %v2839_v9 = vpop.f32.mrf.mxu0 }
0x17d8   :  { %7606 = vtanh.f32 %v2858_v32  ;;  %v2855_v37 = vadd.f32 %v2851_v30, %v2830_v11  ;;  %v2848_v56 = vmul.f32 %v2844_v23, %v2836_v10  ;;  %v2840_v39 = vadd.f32 %v2839_v9, %v2760_v12  ;;  %v6148_v32 = vld [vmem:[#allocation31] ss:$0 sm:$0xff]  ;;  %v6144_v23 = vld [vmem:[#allocation27] ss:$0 sm:$0xff] }
0x17d9   :  { %v3066_v26 = vpop.f32.mrf.mxu0 }
0x17da   :  { %v2859_v33 = vmul.f32 0.7978846, %v2855_v37  ;;  %v2852_v40 = vmul.f32 0.044715, %v2848_v56  ;;  %v2845_v42 = vmul.f32 %v2840_v39, %v2840_v39  ;;  %v3067_v41 = vadd.f32 %v6145_v31, %v3066_v26 }
0x17db   :  { %v6807_v43 = vpop.f32.mrf.mxu0 }
0x17dc   :  { %7608 = vtanh.f32 %v2859_v33  ;;  %v2856_v7 = vadd.f32 %v2852_v40, %v2836_v10  ;;  %v2849_v45 = vmul.f32 %v2845_v42, %v2840_v39  ;;  %v6147_v46 = vmul.f32 -1.442695, %v3067_v41 }
0x17dd   :  { %v3069_v50 = vpop.f32.mrf.mxu0 }
0x17de   :  { %v2860_v15 = vmul.f32 0.7978846, %v2856_v7  ;;  %v2853_v53 = vmul.f32 0.044715, %v2849_v45  ;;  %7610 = vpow2.f32 %v6147_v46  ;;  %v3220_v46 = vld [vmem:[%s10060_s14] sm:$0xff]  ;;  %v9240_v50 = vld [vmem:[%s10061_s23 + $0x38] sm:$0xff] }
0x17df   :  { %v6808_v60 = vpop.f32.mrf.mxu0 }
0x17e0   :  { %7612 = vtanh.f32 %v2860_v15  ;;  %v2857_v18 = vadd.f32 %v2853_v53, %v2840_v39  ;;  %v9244_v15 = vld [vmem:[%s10061_s23 + $0x30] sm:$0xff]  ;;  %v9249_v53 = vld [vmem:[%s10061_s23 + $0x28] sm:$0xff]  ;;  %v9254_v60 = vld [vmem:[%s10061_s23 + $0x20] sm:$0xff] }
0x17e2   :  { %v2861_v61 = vmul.f32 0.7978846, %v2857_v18  ;;  %v9259_v18 = vld [vmem:[%s10061_s23 + $0x18] sm:$0xff] }
0x17e4   :  { %7614 = vtanh.f32 %v2861_v61  ;;  %v9264_v61 = vld [vmem:[%s10061_s23 + $0x10] sm:$0xff] }
0x17e5   :  { %v7607_v58 = vpop.eup %7606 }
0x17e6   :  { %v2866_v38 = vadd.f32 1.0, %v7607_v58  ;;  %v9269_v58 = vld [vmem:[%s10061_s23 + $0x8] sm:$0xff] }
0x17e8   :  { %v2870_v62 = vmul.f32 0.5, %v2866_v38  ;;  %v9274_v38 = vld [vmem:[%s10061_s23] sm:$0xff] }
0x17e9   :  { %v7609_v34 = vpop.eup %7608 }
0x17ea   :  { %v2867_v1 = vadd.f32 1.0, %v7609_v34  ;;  %v2874_v2 = vmul.f32 %v2870_v62, %v2826_v48  ;;  %v9280_v62 = vld [vmem:[%s10062_s8] sm:$0xff]  ;;  %v9283_v34 = vld [vmem:[%s10062_s8 + $0x8] sm:$0xff] }
0x17eb   :  { %v7611_v0 = vpop.eup %7610 }
0x17ec   :  { %v3075_v52 = vadd.f32 1.0, %v7611_v0  ;;  %v2871_v63 = vmul.f32 0.5, %v2867_v1  ;;  %v2878_v12 = vmul.f32 %v2874_v2, %v2824_v55  ;;  %v9295_v1 = vld [vmem:[%s10062_s8 + $0x18] sm:$0xff]  ;;  %v9298_v0 = vld [vmem:[%s10062_s8 + $0x20] sm:$0xff] }
0x17ed   :  { %v7613_v47 = vpop.eup %7612  ;;  %v9315_v2 = vld [vmem:[%s10062_s8 + $0x38] sm:$0xff] }
0x17ee   :  { %v2868_v5 = vadd.f32 1.0, %v7613_v47  ;;  %7616 = vrcp.f32 %v3075_v52  ;;  %v2875_v24 = vmul.f32 %v2871_v63, %v2830_v11  ;;  %v9305_v52 = vld [vmem:[%s10062_s8 + $0x28] sm:$0xff]  ;;  %v9308_v63 = vld [vmem:[%s10062_s8 + $0x30] sm:$0xff]  ;;  %v6153_v47 = vld [vmem:[#allocation36] ss:$0 sm:$0xff] }
0x17f0   :  { %v2872_v57 = vmul.f32 0.5, %v2868_v5  ;;  %v2879_v19 = vmul.f32 %v2875_v24, %v2828_v4  ;;  %v3221_v24 = vld [vmem:[%s10060_s14 + $0x8] sm:$0xff] }
0x17f1   :  { %v7615_v21 = vpop.eup %7614 }
0x17f2   :  { %v2869_v25 = vadd.f32 1.0, %v7615_v21  ;;  %v2882_v54 = vpack.c.bf16 %v2879_v19, %v2878_v12  ;;  %v2876_v8 = vmul.f32 %v2872_v57, %v2836_v10  ;;  %v7490_v10 = vld [vmem:[%s10059_s3] sm:$0xff]   ;;  %v3222_v57 = vld [vmem:[%s10060_s14 + $0x10] sm:$0xff]  ;;  %v3223_v21 = vld [vmem:[%s10060_s14 + $0x18] sm:$0xff] }
0x17f4   :  { %v2873_v59 = vmul.f32 0.5, %v2869_v25  ;;  %6799 = vmatprep.mubr.bf16.mxu1 %v2882_v54  ;;  %v2880_v44 = vmul.f32 %v2876_v8, %v2834_v6  ;;  %v3224_v25 = vld [vmem:[%s10060_s14 + $0x20] sm:$0xff]  ;;  %v3225_v54 = vld [vmem:[%s10060_s14 + $0x28] sm:$0xff]  ;;  %v3226_v8 = vld [vmem:[%s10060_s14 + $0x30] sm:$0xff] }
0x17f5   :  { %v9344_v6 = vld [vmem:[%s10063_s26] sm:$0xff] }
0x17f6   :  { %v2877_v48 = vmul.f32 %v2873_v59, %v2840_v39  ;;  %v3227_v59 = vld [vmem:[%s10060_s14 + $0x38] sm:$0xff] }
0x17f8   :  { %v2881_v16 = vmul.f32 %v2877_v48, %v2838_v28  ;;  %v9353_v28 = vld [vmem:[%s10063_s26 + $0x8] sm:$0xff]  ;;  %v9357_v48 = vld [vmem:[%s10063_s26 + $0x10] sm:$0xff] }
0x17fa   :  { %v2883_v3 = vpack.c.bf16 %v2881_v16, %v2880_v44  ;;  %v9365_v44 = vld [vmem:[%s10063_s26 + $0x18] sm:$0xff]  ;;  %v9368_v16 = vld [vmem:[%s10063_s26 + $0x20] sm:$0xff] }
0x17fb   :  { %v7617_v13 = vpop.eup %7616 }
0x17fc   :  { %v3078_v17 = vmul.f32 %v7617_v13, %v3067_v41  ;;  %6800 = vmatmul.mubr.bf16.vlgmr.msra.gmra.mxu1 %v2883_v3  ;;  %v9375_v3 = vld [vmem:[%s10063_s26 + $0x28] sm:$0xff]  ;;  %v9378_v13 = vld [vmem:[%s10063_s26 + $0x30] sm:$0xff] }
0x17fd   :  { %6827 = vmatprep.mubr.msk.f32.mxu1 %vm3228_vm10, %v3220_v46 }
0x17fe   :  { %v3079_v11 = vpack.c.bf16 %v3078_v17, %v3078_v17  ;;  %v9385_v17 = vld [vmem:[%s10063_s26 + $0x38] sm:$0xff] }
0x1800   :  { %6814 = vmatmul.mubr.msk.bf16.vlgmr.msra.gmra.mxu0 %vm751_vm5, %v3079_v11  ;;  %v7283_v11 = vpack.i.bf16 %v9269_v58, %v9274_v38 }
0x1801   :  { %6821 = vmatprep.mubr.msk.bf16.mxu0 %vm8509_vm8, %v8507_v14  ;;  %6818 = vmatpush3.bf16.msra.mxu0 %v7489_v22  ;;  %v7288_v22 = vpack.i.bf16 %v9259_v18, %v9264_v61 }
0x1802   :  { %6819 = vmatprep.subr.bf16.mxu0 %v8507_v14  ;;  %7284 = vrot.lane.b32.xlu1 %v7283_v11, %s8482_s2 }
0x1803   :  { %7289 = vrot.lane.b32.xlu0 %v7288_v22, %s8482_s2 }
0x1805   :  { %6820 = vmatpush3.bf16.msra.mxu0 %v7490_v10  ;;  %v7293_v10 = vpack.i.bf16 %v9249_v53, %v9254_v60 }
0x1806   :  { %6839 = vmatprep.subr.mxu0 %v9240_v50 }
0x1807   :  { %7294 = vrot.lane.b32.xlu0 %v7293_v10, %s8482_s2 }
0x18bc   :  { %v6801_v27 = vpop.f32.mrf.mxu1 }
0x18bd   :  { %v2999_v30 = vadd.f32 %v6801_v27, %v9168_v51  ;;  %v7491_v27 = vld [vmem:[%s10064_s28] sm:$0x3f]  }
0x18be   :  { %v9230_v29 = vpop.f32.mrf.mxu1 }
0x18bf   :  { %v3010_v26 = vadd.f32 %v6144_v23, %v2999_v30 }
0x18c0   :  { %v6802_v9 = vpop.f32.mrf.mxu1  ;;  %v3140_v31 = vpop.f32.mrf.mxu0 }
0x18c1   :  { %v3000_v37 = vadd.f32 %v6802_v9, %v9176_v35  ;;  %v3141_v56 = vadd.f32 %v6148_v32, %v3140_v31 }
0x18c2   :  { %v6815_v39 = vpop.f32.mrf.mxu0  ;;  %v9401_v32 = vpop.f32.mrf.mxu1 }
0x18c3   :  { %v3011_v33 = vadd.f32 %v6144_v23, %v3000_v37  ;;  %v6152_v14 = vmul.f32 -1.442695, %v3141_v56  ;;  %v3759_v39 = vsel %vm3757_vm13, %v7491_v27, 0 }
0x18c4   :  { %v3143_v40 = vpop.f32.mrf.mxu0 }
0x18c5   :  { %v9234_v42 = vpack.c.bf16 %v3011_v33, %v3010_v26  ;;  %7618 = vpow2.f32 %v6152_v14 }
0x18c6   :  { %v6816_v41 = vpop.f32.mrf.mxu0 }
0x18d2   :  { %v7619_v51 = vpop.eup %7618 }
0x18d3   :  { %v3149_v43 = vadd.f32 1.0, %v7619_v51 }
0x18d5   :  { %7620 = vrcp.f32 %v3149_v43 }
0x18e2   :  { %v7621_v7 = vpop.eup %7620 }
0x18e3   :  { %v3152_v35 = vmul.f32 %v7621_v7, %v3141_v56 }
0x18e5   :  { %v3153_v45 = vpack.c.bf16 %v3152_v35, %v3152_v35 }
0x18e7   :  { %6822 = vmatmul.mubr.msk.bf16.vlgmr.msra.gmra.mxu0 %vm751_vm5, %v3153_v45  ;;  %v7308_v45 = vpack.i.bf16 %v9240_v50, %v9244_v15 }
0x18e8   :  { %6840 = vmatpush3.msra.mxu0 %v9240_v50  ;;  %6855 = vmatprep.mubr.msk.f32.mxu0 %vm3386_vm11, %v9280_v62 }
0x18e9   :  { %6841 = vmatprep.subr.mxu0 %v9244_v15 }
0x18ea   :  { %6842 = vmatpush3.msra.mxu0 %v9244_v15 }
0x18eb   :  { %6843 = vmatprep.subr.mxu0 %v9249_v53 }
0x18ec   :  { %6844 = vmatpush3.msra.mxu0 %v9249_v53 }
0x18ed   :  { %6845 = vmatprep.subr.mxu0 %v9254_v60 }
0x18ee   :  { %6846 = vmatpush3.msra.mxu0 %v9254_v60 }
0x18ef   :  { %6847 = vmatprep.subr.mxu0 %v9259_v18 }
0x18f0   :  { %6848 = vmatpush3.msra.mxu0 %v9259_v18 }
0x18f1   :  { %6849 = vmatprep.subr.mxu0 %v9264_v61 }
0x18f2   :  { %6850 = vmatpush3.msra.mxu0 %v9264_v61 }
0x18f3   :  { %6851 = vmatprep.subr.mxu0 %v9269_v58 }
0x18f4   :  { %6852 = vmatpush3.msra.mxu0 %v9269_v58 }
0x18f5   :  { %6853 = vmatprep.subr.mxu0 %v9274_v38 }
0x18f6   :  { %6854 = vmatpush3.msra.mxu0 %v9274_v38 }
0x18f7   :  { %6856 = vmatmul.mubr.msk.f32.vlgmr.msra.gmra.mxu0 %vm3386_vm11, %v9283_v34  ;;  %7177 = vmatprep.subr.msk.bf16.mxu0 %vm3757_vm13, %v7491_v27 }
0x18f8   :  { %6858 = vmatprep.mubr.msk.f32.mxu0 %vm3386_vm11, %v9286_v20  ;;  %6896 = vmatpush3.bf16.msra.mxu0 %v3759_v39 }
0x18fb   :  { %6859 = vmatmul.mubr.msk.f32.gmra.mxu0 %vm3386_vm11, %v9295_v1 }
0x18fc   :  { %6861 = vmatprep.mubr.msk.f32.mxu0 %vm3386_vm11, %v9298_v0 }
0x18ff   :  { %6862 = vmatmul.mubr.msk.f32.gmra.mxu0 %vm3386_vm11, %v9305_v52 }
0x1900   :  { %6864 = vmatprep.mubr.msk.f32.mxu0 %vm3386_vm11, %v9308_v63 }
0x1903   :  { %6865 = vmatmul.mubr.msk.f32.gmra.mxu0 %vm3386_vm11, %v9315_v2 }
0x19a7   :  { %v3214_v55 = vpop.f32.mrf.mxu0 }
0x19a8   :  { %v3215_v4 = vadd.f32 %v6153_v47, %v3214_v55  ;;  %v7285_v55 = vpop.permute.xlu1 %7284 }
0x19a9   :  { %v6823_v5 = vpop.f32.mrf.mxu0 }
0x19aa   :  { %6825 = vmatprep.subr.msk.mxu1 %vm3253_vm12, %v3215_v4  ;;  %v7290_v5 = vpop.permute.xlu0 %7289 }
0x19ab   :  { %v3217_v12 = vpop.f32.mrf.mxu0  ;;  %6826 = vmatpush3.msk.msra.mxu1 %vm3253_vm12, %v3215_v4 }
0x19ac   :  { %6828 = vmatmul.mubr.msk.f32.vlgmr.msra.gmra.mxu1 %vm3228_vm10, %v3221_v24  ;;  %6867 = vmatprep.subr.mxu1 %v9240_v50  ;;  %v7287_v24 = vunpack.i.h.bf16 %v7285_v55 }
0x19ad   :  { %v6824_v19 = vpop.f32.mrf.mxu0  ;;  %6868 = vmatpush3.msra.mxu1 %v9240_v50  ;;  %6830 = vmatprep.mubr.msk.f32.mxu1 %vm3228_vm10, %v3222_v57  ;;  %v7286_v57 = vunpack.i.l.bf16 %v7285_v55 }
0x19ae   :  { %6869 = vmatprep.subr.mxu1 %v9244_v15 }
0x19af   :  { %6870 = vmatpush3.msra.mxu1 %v9244_v15 }
0x19b0   :  { %6831 = vmatmul.mubr.msk.f32.gmra.mxu1 %vm3228_vm10, %v3223_v21  ;;  %6871 = vmatprep.subr.mxu1 %v9249_v53 }
0x19b1   :  { %6872 = vmatpush3.msra.mxu1 %v9249_v53  ;;  %6833 = vmatprep.mubr.msk.f32.mxu1 %vm3228_vm10, %v3224_v25 }
0x19b2   :  { %6873 = vmatprep.subr.mxu1 %v9254_v60 }
0x19b3   :  { %6874 = vmatpush3.msra.mxu1 %v9254_v60 }
0x19b4   :  { %6834 = vmatmul.mubr.msk.f32.gmra.mxu1 %vm3228_vm10, %v3225_v54  ;;  %6875 = vmatprep.subr.mxu1 %v9259_v18  ;;  %v7292_v54 = vunpack.i.h.bf16 %v7290_v5 }
0x19b5   :  { %6876 = vmatpush3.msra.mxu1 %v9259_v18  ;;  %6836 = vmatprep.mubr.msk.f32.mxu1 %vm3228_vm10, %v3226_v8  ;;  %v7291_v8 = vunpack.i.l.bf16 %v7290_v5 }
0x19b6   :  { %6877 = vmatprep.subr.mxu1 %v9264_v61 }
0x19b7   :  { %6878 = vmatpush3.msra.mxu1 %v9264_v61 }
0x19b8   :  { %6837 = vmatmul.mubr.msk.f32.gmra.mxu1 %vm3228_vm10, %v3227_v59  ;;  %6879 = vmatprep.subr.mxu1 %v9269_v58  ;;  %v7295_v59 = vpop.permute.xlu0 %7294 }
0x19b9   :  { %6880 = vmatpush3.msra.mxu1 %v9269_v58  ;;  %6883 = vmatprep.mubr.msk.f32.mxu1 %vm3386_vm11, %v9344_v6  ;;  %v6857_v58 = vpop.f32.mrf.mxu0 }
0x19ba   :  { %6881 = vmatprep.subr.mxu1 %v9274_v38  ;;  %v3711_v21 = vsel %vm3709_vm14, %v6857_v58, %v7287_v24 }
0x19bb   :  { %6882 = vmatpush3.msra.mxu1 %v9274_v38  ;;  %v3477_v38 = vpop.f32.mrf.mxu0 }
0x19bc   :  { %6884 = vmatmul.mubr.msk.f32.vlgmr.msra.gmra.mxu1 %vm3386_vm11, %v9353_v28  ;;  %v3710_v25 = vsel %vm3709_vm14, %v3477_v38, %v7286_v57 }
0x19bd   :  { %6886 = vmatprep.mubr.msk.f32.mxu1 %vm3386_vm11, %v9357_v48  ;;  %v6860_v47 = vpop.f32.mrf.mxu0 }
0x19bf   :  { %v3487_v4 = vpop.f32.mrf.mxu0 }
0x19c0   :  { %6887 = vmatmul.mubr.msk.f32.gmra.mxu1 %vm3386_vm11, %v9365_v44 }
0x19c1   :  { %6889 = vmatprep.mubr.msk.f32.mxu1 %vm3386_vm11, %v9368_v16  ;;  %v6863_v50 = vpop.f32.mrf.mxu0 }
0x19c3   :  { %v3497_v10 = vpop.f32.mrf.mxu0 }
0x19c4   :  { %6890 = vmatmul.mubr.msk.f32.gmra.mxu1 %vm3386_vm11, %v9375_v3 }
0x19c5   :  { %6892 = vmatprep.mubr.msk.f32.mxu1 %vm3386_vm11, %v9378_v13 }
0x19c8   :  { %6893 = vmatmul.mubr.msk.f32.gmra.mxu1 %vm3386_vm11, %v9385_v17 }
0x19c9   :  { %6921 = vmatprep.mubr.msk.f32.mxu1 %vm3386_vm11, %v9280_v62 }
0x1a6c   :  { %v9403_v30 = vpop.f32.mrf.mxu1 }
0x1a6e   :  { %v9405_v23 = vpop.f32.mrf.mxu1 }
0x1a70   :  { %v9407_v9 = vpop.f32.mrf.mxu1 }
0x1a72   :  { %v9409_v31 = vpop.f32.mrf.mxu1 }
0x1a74   :  { %v9411_v37 = vpop.f32.mrf.mxu1 }
0x1a76   :  { %v9413_v56 = vpop.f32.mrf.mxu1 }
0x1a78   :  { %v9415_v26 = vpop.f32.mrf.mxu1 }
0x1a7a   :  { %v9417_v33 = vpop.f32.mrf.mxu1 }
0x1a7c   :  { %v6885_v14 = vpop.f32.mrf.mxu1 }
0x1a7e   :  { %v3606_v40 = vpop.f32.mrf.mxu1 }
0x1a7f   :  { %v7298_v41 = vpack.i.bf16 %v6885_v14, %v3606_v40 }
0x1a80   :  { %v6888_v51 = vpop.f32.mrf.mxu1 }
0x1a81   :  { %7299 = vrot.lane.b32.xlu1 %v7298_v41, %s8510_s1  ;;  %v3713_v41 = vsel %vm3709_vm14, %v6860_v47, %v7292_v54 }
0x1a82   :  { %v3616_v43 = vpop.f32.mrf.mxu1 }
0x1a83   :  { %v7303_v7 = vpack.i.bf16 %v6888_v51, %v3616_v43  ;;  %v3712_v51 = vsel %vm3709_vm14, %v3487_v4, %v7291_v8  ;;  %v7297_v43 = vunpack.i.h.bf16 %v7295_v59 }
0x1a84   :  { %v6891_v35 = vpop.f32.mrf.mxu1 }
0x1a85   :  { %7304 = vrot.lane.b32.xlu1 %v7303_v7, %s8510_s1  ;;  %v7296_v7 = vunpack.i.l.bf16 %v7295_v59  ;;  %v3715_v38 = vsel %vm3709_vm14, %v6863_v50, %v7297_v43 }
0x1a86   :  { %v3626_v46 = vpop.f32.mrf.mxu1 }
0x1a87   :  { %v7313_v53 = vpack.i.bf16 %v6891_v35, %v3626_v46  ;;  %v6866_v46 = vpop.f32.mrf.mxu0  ;;  %v3714_v4 = vsel %vm3709_vm14, %v3497_v10, %v7296_v7 }
0x1a88   :  { %v6894_v60 = vpop.f32.mrf.mxu1 }
0x1a89   :  { %7309 = vrot.lane.b32.xlu1 %v7308_v45, %s8482_s2  ;;  %7314 = vrot.lane.b32.xlu0 %v7313_v53, %s8510_s1  ;;  %v3507_v57 = vpop.f32.mrf.mxu0  ;;  %s10065_s2 = sld [smem:[#allocation97_spill]] }
0x1a8a   :  { %v3636_v18 = vpop.f32.mrf.mxu1 }
0x1a8b   :  { %v7318_v61 = vpack.i.bf16 %v6894_v60, %v3636_v18 }
0x1a8d   :  { %7319 = vrot.lane.b32.xlu1 %v7318_v61, %s8510_s1 }
0x1af3   :  { %v7300_v15 = vpop.permute.xlu1 %7299 }
0x1af4   :  { %v7302_v12 = vunpack.i.h.bf16 %v7300_v15  ;;  %v7301_v19 = vunpack.i.l.bf16 %v7300_v15 }
0x1af6   :  { %v3718_v11 = vsel %vm3024_vm9, %v3710_v25, %v7301_v19  ;;  %v3719_v22 = vsel %vm3024_vm9, %v3711_v21, %v7302_v12 }
0x1af7   :  { %v3726_v27 = vpack.c.bf16 %v3719_v22, %v3718_v11  ;;  %v7305_v39 = vpop.permute.xlu1 %7304  ;;  %v6182_v11 = vld [vmem:[#allocation33] ss:$0 sm:$0xff] }
0x1af8   :  { %v7307_v14 = vunpack.i.h.bf16 %v7305_v39  ;;  %v7306_v40 = vunpack.i.l.bf16 %v7305_v39 }
0x1af9   :  { %6897 = vmatprep.mubr.msk.bf16.mxu0 %vm3744_vm15, %v3726_v27 }
0x1afa   :  { %v3720_v35 = vsel %vm3024_vm9, %v3712_v51, %v7306_v40  ;;  %v3721_v45 = vsel %vm3024_vm9, %v3713_v41, %v7307_v14 }
0x1afb   :  { %v3727_v53 = vpack.c.bf16 %v3721_v45, %v3720_v35  ;;  %v7310_v60 = vpop.permute.xlu1 %7309  ;;  %v7315_v18 = vpop.permute.xlu0 %7314 }
0x1afc   :  { %v7317_v61 = vunpack.i.h.bf16 %v7315_v18  ;;  %v7316_v58 = vunpack.i.l.bf16 %v7315_v18  ;;  %v7312_v55 = vunpack.i.h.bf16 %v7310_v60  ;;  %v7311_v47 = vunpack.i.l.bf16 %v7310_v60 }
0x1afd   :  { %6898 = vmatmul.mubr.msk.bf16.vlgmr.msra.gmra.mxu0 %vm3744_vm15, %v3727_v53 }
0x1afe   :  { %v3723_v5 = vsel %vm3024_vm9, %v3715_v38, %v7317_v61  ;;  %v3722_v24 = vsel %vm3024_vm9, %v3714_v4, %v7316_v58  ;;  %v3717_v25 = vsel %vm3709_vm14, %v6866_v46, %v7312_v55  ;;  %v3716_v54 = vsel %vm3709_vm14, %v3507_v57, %v7311_v47 }
0x1aff   :  { %v3728_v15 = vpack.c.bf16 %v3723_v5, %v3722_v24  ;;  %v7320_v12 = vpop.permute.xlu1 %7319 }
0x1b00   :  { %v7322_v19 = vunpack.i.h.bf16 %v7320_v12  ;;  %v7321_v21 = vunpack.i.l.bf16 %v7320_v12 }
0x1b01   :  { %6901 = vmatprep.mubr.msk.bf16.mxu0 %vm3744_vm15, %v3728_v15 }
0x1b02   :  { %v3724_v50 = vsel %vm3024_vm9, %v3716_v54, %v7321_v21  ;;  %v3725_v8 = vsel %vm3024_vm9, %v3717_v25, %v7322_v19 }
0x1b03   :  { %v3729_v59 = vpack.c.bf16 %v3725_v8, %v3724_v50 }
0x1b05   :  { %6902 = vmatmul.mubr.msk.bf16.gmra.mxu0 %vm3744_vm15, %v3729_v59 }
0x1b06   :  { %6949 = vmatprep.mubr.msk.f32.mxu0 %vm3386_vm11, %v9344_v6 }
0x1bbd   :  { %v6899_v22 = vpop.f32.mrf.mxu0 }
0x1bbe   :  { %v9448_v10 = vadd.f32 %v6899_v22, %v6182_v11 }
0x1bbf   :  { %v3795_v27 = vpop.f32.mrf.mxu0 }
0x1bc0   :  { %v6190_v39 = vmul.f32 -1.442695, %v9448_v10  ;;  %v9451_v14 = vadd.f32 %v6182_v11, %v3795_v27 }
0x1bc1   :  { %v6900_v40 = vpop.f32.mrf.mxu0 }
0x1bc2   :  { %7622 = vpow2.f32 %v6190_v39  ;;  %v6188_v41 = vmul.f32 -1.442695, %v9451_v14  ;;  %v9454_v51 = vadd.f32 %v6900_v40, %v6182_v11 }
0x1bc3   :  { %v3798_v43 = vpop.f32.mrf.mxu0 }
0x1bc4   :  { %7624 = vpow2.f32 %v6188_v41  ;;  %v6191_v7 = vmul.f32 -1.442695, %v9454_v51  ;;  %v9457_v35 = vadd.f32 %v6182_v11, %v3798_v43 }
0x1bc5   :  { %v6903_v45 = vpop.f32.mrf.mxu0 }
0x1bc6   :  { %7626 = vpow2.f32 %v6191_v7  ;;  %v6189_v46 = vmul.f32 -1.442695, %v9457_v35  ;;  %v9460_v53 = vadd.f32 %v6903_v45, %v6182_v11 }
0x1bc7   :  { %v3811_v60 = vpop.f32.mrf.mxu0 }
0x1bc8   :  { %7628 = vpow2.f32 %v6189_v46  ;;  %v6194_v18 = vmul.f32 -1.442695, %v9460_v53  ;;  %v9463_v61 = vadd.f32 %v6182_v11, %v3811_v60 }
0x1bc9   :  { %v6904_v58 = vpop.f32.mrf.mxu0 }
0x1bca   :  { %7630 = vpow2.f32 %v6194_v18  ;;  %v6192_v38 = vmul.f32 -1.442695, %v9463_v61  ;;  %v9466_v55 = vadd.f32 %v6904_v58, %v6182_v11 }
0x1bcb   :  { %v3814_v47 = vpop.f32.mrf.mxu0 }
0x1bcc   :  { %7632 = vpow2.f32 %v6192_v38  ;;  %v6195_v4 = vmul.f32 -1.442695, %v9466_v55  ;;  %v9469_v5 = vadd.f32 %v6182_v11, %v3814_v47 }
0x1bce   :  { %7634 = vpow2.f32 %v6195_v4  ;;  %v6193_v24 = vmul.f32 -1.442695, %v9469_v5 }
0x1bcf   :  { %v7623_v57 = vpop.eup %7622 }
0x1bd0   :  { %v3852_v15 = vadd.f32 1.0, %v7623_v57  ;;  %7636 = vpow2.f32 %v6193_v24 }
0x1bd1   :  { %v7625_v12 = vpop.eup %7624 }
0x1bd2   :  { %v3850_v19 = vadd.f32 1.0, %v7625_v12  ;;  %7638 = vrcp.f32 %v3852_v15 }
0x1bd3   :  { %v7627_v21 = vpop.eup %7626 }
0x1bd4   :  { %v3853_v25 = vadd.f32 1.0, %v7627_v21  ;;  %7640 = vrcp.f32 %v3850_v19 }
0x1bd5   :  { %v7629_v54 = vpop.eup %7628 }
0x1bd6   :  { %7642 = vrcp.f32 %v3853_v25  ;;  %v3851_v50 = vadd.f32 1.0, %v7629_v54 }
0x1bd7   :  { %v7631_v8 = vpop.eup %7630 }
0x1bd8   :  { %7644 = vrcp.f32 %v3851_v50  ;;  %v3856_v59 = vadd.f32 1.0, %v7631_v8 }
0x1bd9   :  { %v7633_v11 = vpop.eup %7632 }
0x1bda   :  { %v3854_v22 = vadd.f32 1.0, %v7633_v11  ;;  %7646 = vrcp.f32 %v3856_v59  ;;  %v7492_v59 = vld [vmem:[%s10065_s2 + $0x8] ss:$0 sps:$4 sm:$0xff]  }
0x1bdb   :  { %v7635_v27 = vpop.eup %7634  ;;  %v4209_v11 = vsel %vm3028_vm7, %v7492_v59, 0 }
0x1bdc   :  { %v3857_v39 = vadd.f32 1.0, %v7635_v27  ;;  %7648 = vrcp.f32 %v3854_v22  ;;  %v7493_v22 = vld [vmem:[%s10065_s2] sm:$0xff]  }
0x1bdd   :  { %v7637_v40 = vpop.eup %7636 }
0x1bde   :  { %7650 = vrcp.f32 %v3857_v39  ;;  %v3855_v41 = vadd.f32 1.0, %v7637_v40 }
0x1bdf   :  { %v7639_v43 = vpop.eup %7638 }
0x1be0   :  { %7652 = vrcp.f32 %v3855_v41  ;;  %v3876_v46 = vmul.f32 %v7639_v43, %v9448_v10 }
0x1be1   :  { %v7641_v7 = vpop.eup %7640 }
0x1be2   :  { %v3874_v58 = vmul.f32 %v7641_v7, %v9451_v14 }
0x1be3   :  { %v7643_v45 = vpop.eup %7642 }
0x1be4   :  { %v3877_v60 = vmul.f32 %v7643_v45, %v9454_v51 }
0x1be5   :  { %v7645_v18 = vpop.eup %7644 }
0x1be6   :  { %v3875_v38 = vmul.f32 %v7645_v18, %v9457_v35  ;;  %v7323_v47 = vpack.i.bf16 %v3877_v60, %v3876_v46 }
0x1be7   :  { %v7647_v24 = vpop.eup %7646 }
0x1be8   :  { %7324 = vrot.lane.b32.xlu1 %v7323_v47, %s8510_s1  ;;  %v7328_v4 = vpack.i.bf16 %v3875_v38, %v3874_v58  ;;  %v9479_v12 = vmul.f32 %v7647_v24, %v9460_v53 }
0x1be9   :  { %v7649_v57 = vpop.eup %7648 }
0x1bea   :  { %7329 = vrot.lane.b32.xlu0 %v7328_v4, %s8510_s1  ;;  %v9485_v25 = vmul.f32 %v7649_v57, %v9463_v61 }
0x1beb   :  { %v7651_v15 = vpop.eup %7650 }
0x1bec   :  { %v9482_v19 = vmul.f32 %v7651_v15, %v9466_v55 }
0x1bed   :  { %v7653_v21 = vpop.eup %7652 }
0x1bee   :  { %v9488_v54 = vmul.f32 %v7653_v21, %v9469_v5  ;;  %6905 = vmatprep.subr.mxu1 %v9482_v19  ;;  %6933 = vmatprep.subr.mxu0 %v9482_v19  ;;  %v7348_v50 = vpack.i.bf16 %v9482_v19, %v9479_v12 }
0x1bef   :  { %6906 = vmatpush3.msra.mxu1 %v9482_v19  ;;  %6934 = vmatpush3.msra.mxu0 %v9482_v19 }
0x1bf0   :  { %6907 = vmatprep.subr.mxu1 %v9479_v12  ;;  %6935 = vmatprep.subr.mxu0 %v9479_v12  ;;  %v7338_v8 = vpack.i.bf16 %v9488_v54, %v9485_v25 }
0x1bf1   :  { %6908 = vmatpush3.msra.mxu1 %v9479_v12  ;;  %6936 = vmatpush3.msra.mxu0 %v9479_v12 }
0x1bf2   :  { %6909 = vmatprep.subr.mxu1 %v9488_v54  ;;  %6937 = vmatprep.subr.mxu0 %v9488_v54 }
0x1bf3   :  { %6910 = vmatpush3.msra.mxu1 %v9488_v54  ;;  %6938 = vmatpush3.msra.mxu0 %v9488_v54 }
0x1bf4   :  { %6911 = vmatprep.subr.mxu1 %v9485_v25  ;;  %6939 = vmatprep.subr.mxu0 %v9485_v25 }
0x1bf5   :  { %6912 = vmatpush3.msra.mxu1 %v9485_v25  ;;  %6940 = vmatpush3.msra.mxu0 %v9485_v25 }
0x1bf6   :  { %6913 = vmatprep.subr.mxu1 %v3877_v60  ;;  %6941 = vmatprep.subr.mxu0 %v3877_v60 }
0x1bf7   :  { %6914 = vmatpush3.msra.mxu1 %v3877_v60  ;;  %6942 = vmatpush3.msra.mxu0 %v3877_v60 }
0x1bf8   :  { %6915 = vmatprep.subr.mxu1 %v3876_v46  ;;  %6943 = vmatprep.subr.mxu0 %v3876_v46 }
0x1bf9   :  { %6916 = vmatpush3.msra.mxu1 %v3876_v46  ;;  %6944 = vmatpush3.msra.mxu0 %v3876_v46 }
0x1bfa   :  { %6917 = vmatprep.subr.mxu1 %v3875_v38  ;;  %6945 = vmatprep.subr.mxu0 %v3875_v38 }
0x1bfb   :  { %6918 = vmatpush3.msra.mxu1 %v3875_v38  ;;  %6946 = vmatpush3.msra.mxu0 %v3875_v38 }
0x1bfc   :  { %6919 = vmatprep.subr.mxu1 %v3874_v58  ;;  %6947 = vmatprep.subr.mxu0 %v3874_v58 }
0x1bfd   :  { %6920 = vmatpush3.msra.mxu1 %v3874_v58  ;;  %6948 = vmatpush3.msra.mxu0 %v3874_v58 }
0x1bfe   :  { %6922 = vmatmul.mubr.msk.f32.vlgmr.msra.gmra.mxu1 %vm3386_vm11, %v9283_v34  ;;  %6950 = vmatmul.mubr.msk.f32.vlgmr.msra.gmra.mxu0 %vm3386_vm11, %v9353_v28 }
0x1bff   :  { %6924 = vmatprep.mubr.msk.f32.mxu1 %vm3386_vm11, %v9286_v20  ;;  %6952 = vmatprep.mubr.msk.f32.mxu0 %vm3386_vm11, %v9357_v48 }
0x1c00   :  { %7178 = vmatprep.subr.msk.bf16.mxu1 %vm3028_vm7, %v7492_v59 }
0x1c01   :  { %6962 = vmatpush3.bf16.msra.mxu1 %v4209_v11 }
0x1c02   :  { %6925 = vmatmul.mubr.msk.f32.gmra.mxu1 %vm3386_vm11, %v9295_v1  ;;  %6953 = vmatmul.mubr.msk.f32.gmra.mxu0 %vm3386_vm11, %v9365_v44 }
0x1c03   :  { %6955 = vmatprep.mubr.msk.f32.mxu0 %vm3386_vm11, %v9368_v16  ;;  %6927 = vmatprep.mubr.msk.f32.mxu1 %vm3386_vm11, %v9298_v0 }
0x1c04   :  { %6963 = vmatprep.subr.bf16.mxu1 %v7493_v22 }
0x1c05   :  { %6964 = vmatpush3.bf16.msra.mxu1 %v7493_v22 }
0x1c06   :  { %6956 = vmatmul.mubr.msk.f32.gmra.mxu0 %vm3386_vm11, %v9375_v3  ;;  %6928 = vmatmul.mubr.msk.f32.gmra.mxu1 %vm3386_vm11, %v9305_v52 }
0x1c07   :  { %6958 = vmatprep.mubr.msk.f32.mxu0 %vm3386_vm11, %v9378_v13  ;;  %6930 = vmatprep.mubr.msk.f32.mxu1 %vm3386_vm11, %v9308_v63 }
0x1c0a   :  { %6959 = vmatmul.mubr.msk.f32.gmra.mxu0 %vm3386_vm11, %v9385_v17  ;;  %6931 = vmatmul.mubr.msk.f32.gmra.mxu1 %vm3386_vm11, %v9315_v2 }
0x1c0b   :  { %6989 = vmatprep.mubr.msk.f32.mxu0 %vm3386_vm11, %v9280_v62 }
0x1c5a   :  { %v7325_v21 = vpop.permute.xlu1 %7324 }
0x1c5c   :  { %v7330_v24 = vpop.permute.xlu0 %7329 }
0x1c5d   :  { %v7332_v25 = vunpack.i.h.bf16 %v7330_v24  ;;  %v7331_v54 = vunpack.i.l.bf16 %v7330_v24 }
0x1cbe   :  { %v6951_v27 = vpop.f32.mrf.mxu0  ;;  %v6923_v38 = vpop.f32.mrf.mxu1 }
0x1cbf   :  { %v4157_v12 = vsel %vm3024_vm9, %v6923_v38, %v7332_v25 }
0x1cc0   :  { %v4053_v39 = vpop.f32.mrf.mxu0  ;;  %v3948_v47 = vpop.f32.mrf.mxu1 }
0x1cc1   :  { %v7333_v40 = vpack.i.bf16 %v6951_v27, %v4053_v39  ;;  %v4156_v19 = vsel %vm3024_vm9, %v3948_v47, %v7331_v54  ;;  %v7327_v39 = vunpack.i.h.bf16 %v7325_v21 }
0x1cc2   :  { %v6954_v41 = vpop.f32.mrf.mxu0  ;;  %v6926_v4 = vpop.f32.mrf.mxu1 }
0x1cc3   :  { %7334 = vrot.lane.b32.xlu0 %v7333_v40, %s8511_s9  ;;  %v7326_v40 = vunpack.i.l.bf16 %v7325_v21 }
0x1cc4   :  { %v4063_v43 = vpop.f32.mrf.mxu0  ;;  %v3958_v57 = vpop.f32.mrf.mxu1 }
0x1cc5   :  { %v7343_v7 = vpack.i.bf16 %v6954_v41, %v4063_v43 }
0x1cc6   :  { %v6957_v45 = vpop.f32.mrf.mxu0  ;;  %v6929_v15 = vpop.f32.mrf.mxu1 }
0x1cc7   :  { %7339 = vrot.lane.b32.xlu0 %v7338_v8, %s8510_s1  ;;  %7344 = vrot.lane.b32.xlu1 %v7343_v7, %s8511_s9 }
0x1cc8   :  { %v4073_v62 = vpop.f32.mrf.mxu0  ;;  %v3968_v27 = vpop.f32.mrf.mxu1 }
0x1cc9   :  { %v7353_v46 = vpack.i.bf16 %v6957_v45, %v4073_v62 }
0x1cca   :  { %v6960_v60 = vpop.f32.mrf.mxu0  ;;  %v6932_v24 = vpop.f32.mrf.mxu1 }
0x1ccb   :  { %7349 = vrot.lane.b32.xlu1 %v7348_v50, %s8510_s1  ;;  %7354 = vrot.lane.b32.xlu0 %v7353_v46, %s8511_s9  ;;  %v4159_v46 = vsel %vm3024_vm9, %v6926_v4, %v7327_v39 }
0x1ccc   :  { %v4083_v18 = vpop.f32.mrf.mxu0 }
0x1ccd   :  { %v7358_v58 = vpack.i.bf16 %v6960_v60, %v4083_v18  ;;  %v4158_v60 = vsel %vm3024_vm9, %v3958_v57, %v7326_v40 }
0x1ccf   :  { %7359 = vrot.lane.b32.xlu1 %v7358_v58, %s8511_s9 }
0x1d35   :  { %v7335_v8 = vpop.permute.xlu0 %7334 }
0x1d36   :  { %v7337_v59 = vunpack.i.h.bf16 %v7335_v8  ;;  %v7336_v11 = vunpack.i.l.bf16 %v7335_v8 }
0x1d38   :  { %v4164_v50 = vsel %vm1038_vm6, %v4156_v19, %v7336_v11  ;;  %v4165_v22 = vsel %vm1038_vm6, %v4157_v12, %v7337_v59 }
0x1d39   :  { %v4172_v41 = vpack.c.bf16 %v4165_v22, %v4164_v50  ;;  %v7340_v43 = vpop.permute.xlu0 %7339  ;;  %v7345_v7 = vpop.permute.xlu1 %7344 }
0x1d3a   :  { %v7347_v45 = vunpack.i.h.bf16 %v7345_v7  ;;  %v7346_v62 = vunpack.i.l.bf16 %v7345_v7  ;;  %v7342_v18 = vunpack.i.h.bf16 %v7340_v43  ;;  %v7341_v58 = vunpack.i.l.bf16 %v7340_v43  ;;  %v3978_v22 = vpop.f32.mrf.mxu1 }
0x1d3b   :  { %6965 = vmatprep.mubr.msk.bf16.mxu1 %vm4195_vm0, %v4172_v41 }
0x1d3c   :  { %v4166_v38 = vsel %vm1038_vm6, %v4158_v60, %v7346_v62  ;;  %v4167_v47 = vsel %vm1038_vm6, %v4159_v46, %v7347_v45  ;;  %v4161_v11 = vsel %vm3024_vm9, %v6929_v15, %v7342_v18  ;;  %v4160_v4 = vsel %vm3024_vm9, %v3968_v27, %v7341_v58  ;;  %v6212_v46 = vld [vmem:[#allocation34] ss:$0 sm:$0xff] }
0x1d3d   :  { %v4173_v25 = vpack.c.bf16 %v4167_v47, %v4166_v38  ;;  %v7350_v21 = vpop.permute.xlu1 %7349  ;;  %v7355_v54 = vpop.permute.xlu0 %7354 }
0x1d3e   :  { %v7357_v8 = vunpack.i.h.bf16 %v7355_v54  ;;  %v7356_v59 = vunpack.i.l.bf16 %v7355_v54  ;;  %v7352_v12 = vunpack.i.h.bf16 %v7350_v21  ;;  %v7351_v57 = vunpack.i.l.bf16 %v7350_v21 }
0x1d3f   :  { %6966 = vmatmul.mubr.msk.bf16.vlgmr.msra.gmra.mxu1 %vm4195_vm0, %v4173_v25 }
0x1d40   :  { %v4168_v19 = vsel %vm1038_vm6, %v4160_v4, %v7356_v59  ;;  %v4169_v50 = vsel %vm1038_vm6, %v4161_v11, %v7357_v8  ;;  %v4163_v7 = vsel %vm3024_vm9, %v6932_v24, %v7352_v12  ;;  %v4162_v45 = vsel %vm3024_vm9, %v3978_v22, %v7351_v57 }
0x1d41   :  { %v4174_v39 = vpack.c.bf16 %v4169_v50, %v4168_v19  ;;  %v7360_v40 = vpop.permute.xlu1 %7359 }
0x1d42   :  { %v7362_v41 = vunpack.i.h.bf16 %v7360_v40  ;;  %v7361_v43 = vunpack.i.l.bf16 %v7360_v40 }
0x1d43   :  { %6969 = vmatprep.mubr.msk.bf16.mxu1 %vm4195_vm0, %v4174_v39 }
0x1d44   :  { %v4170_v15 = vsel %vm1038_vm6, %v4162_v45, %v7361_v43  ;;  %v4171_v27 = vsel %vm1038_vm6, %v4163_v7, %v7362_v41 }
0x1d45   :  { %v4175_v62 = vpack.c.bf16 %v4171_v27, %v4170_v15 }
0x1d47   :  { %6970 = vmatmul.mubr.msk.bf16.gmra.mxu1 %vm4195_vm0, %v4175_v62 }
0x1d48   :  { %7017 = vmatprep.mubr.msk.f32.mxu1 %vm3386_vm11, %v9344_v6 }
0x1dff   :  { %v6967_v60 = vpop.f32.mrf.mxu1 }
0x1e00   :  { %v4254_v18 = vadd.f32 %v6967_v60, %v6212_v46 }
0x1e01   :  { %v4245_v58 = vpop.f32.mrf.mxu1 }
0x1e02   :  { %v9576_v38 = vadd.f32 %v4254_v18, %v9409_v31  ;;  %v4246_v47 = vadd.f32 %v6212_v46, %v4245_v58 }
0x1e03   :  { %v6968_v24 = vpop.f32.mrf.mxu1 }
0x1e04   :  { %v6221_v25 = vmul.f32 -1.442695, %v9576_v38  ;;  %v9580_v21 = vadd.f32 %v4246_v47, %v9405_v23  ;;  %v4257_v54 = vadd.f32 %v6968_v24, %v6212_v46 }
0x1e05   :  { %v4248_v8 = vpop.f32.mrf.mxu1 }
0x1e06   :  { %7654 = vpow2.f32 %v6221_v25  ;;  %v6219_v59 = vmul.f32 -1.442695, %v9580_v21  ;;  %v4279_v6 = vadd.f32 %v9407_v9, %v4257_v54  ;;  %v4249_v11 = vadd.f32 %v6212_v46, %v4248_v8 }
0x1e07   :  { %v6971_v4 = vpop.f32.mrf.mxu1 }
0x1e08   :  { %7656 = vpow2.f32 %v6219_v59  ;;  %v6222_v12 = vmul.f32 -1.442695, %v4279_v6  ;;  %v4277_v31 = vadd.f32 %v9403_v30, %v4249_v11  ;;  %v4270_v57 = vadd.f32 %v6971_v4, %v6212_v46 }
0x1e09   :  { %v4261_v19 = vpop.f32.mrf.mxu1 }
0x1e0a   :  { %7658 = vpow2.f32 %v6222_v12  ;;  %v6220_v50 = vmul.f32 -1.442695, %v4277_v31  ;;  %v4282_v23 = vadd.f32 %v4270_v57, %v9417_v33  ;;  %v4262_v22 = vadd.f32 %v6212_v46, %v4261_v19 }
0x1e0b   :  { %v6972_v39 = vpop.f32.mrf.mxu1 }
0x1e0c   :  { %7660 = vpow2.f32 %v6220_v50  ;;  %v6225_v40 = vmul.f32 -1.442695, %v4282_v23  ;;  %v4280_v41 = vadd.f32 %v4262_v22, %v9413_v56  ;;  %v4273_v43 = vadd.f32 %v6972_v39, %v6212_v46 }
0x1e0d   :  { %v4264_v9 = vpop.f32.mrf.mxu1 }
0x1e0e   :  { %7662 = vpow2.f32 %v6225_v40  ;;  %v6223_v7 = vmul.f32 -1.442695, %v4280_v41  ;;  %v4283_v45 = vadd.f32 %v9415_v26, %v4273_v43  ;;  %v4265_v15 = vadd.f32 %v6212_v46, %v4264_v9 }
0x1e10   :  { %7664 = vpow2.f32 %v6223_v7  ;;  %v6226_v30 = vmul.f32 -1.442695, %v4283_v45  ;;  %v4281_v27 = vadd.f32 %v9411_v37, %v4265_v15 }
0x1e12   :  { %7666 = vpow2.f32 %v6226_v30  ;;  %v6224_v62 = vmul.f32 -1.442695, %v4281_v27 }
0x1e13   :  { %v7655_v33 = vpop.eup %7654 }
0x1e14   :  { %v4310_v60 = vadd.f32 1.0, %v7655_v33  ;;  %7668 = vpow2.f32 %v6224_v62 }
0x1e15   :  { %v7657_v18 = vpop.eup %7656 }
0x1e16   :  { %v4308_v58 = vadd.f32 1.0, %v7657_v18  ;;  %7670 = vrcp.f32 %v4310_v60 }
0x1e17   :  { %v7659_v47 = vpop.eup %7658 }
0x1e18   :  { %v4311_v56 = vadd.f32 1.0, %v7659_v47  ;;  %7672 = vrcp.f32 %v4308_v58 }
0x1e19   :  { %v7661_v24 = vpop.eup %7660 }
0x1e1a   :  { %7674 = vrcp.f32 %v4311_v56  ;;  %v4309_v25 = vadd.f32 1.0, %v7661_v24 }
0x1e1b   :  { %v7663_v26 = vpop.eup %7662 }
0x1e1c   :  { %7676 = vrcp.f32 %v4309_v25  ;;  %v4314_v46 = vadd.f32 1.0, %v7663_v26 }
0x1e1d   :  { %v7665_v54 = vpop.eup %7664 }
0x1e1e   :  { %v4312_v8 = vadd.f32 1.0, %v7665_v54  ;;  %7678 = vrcp.f32 %v4314_v46 }
0x1e1f   :  { %v7667_v37 = vpop.eup %7666 }
0x1e20   :  { %v4315_v59 = vadd.f32 1.0, %v7667_v37  ;;  %7680 = vrcp.f32 %v4312_v8 }
0x1e21   :  { %v7669_v11 = vpop.eup %7668 }
0x1e22   :  { %7682 = vrcp.f32 %v4315_v59  ;;  %v4313_v4 = vadd.f32 1.0, %v7669_v11 }
0x1e23   :  { %v7671_v12 = vpop.eup %7670 }
0x1e24   :  { %7684 = vrcp.f32 %v4313_v4  ;;  %v4334_v50 = vmul.f32 %v7671_v12, %v9576_v38 }
0x1e25   :  { %v7673_v57 = vpop.eup %7672 }
0x1e26   :  { %v4332_v40 = vmul.f32 %v7673_v57, %v9580_v21 }
0x1e27   :  { %v7675_v19 = vpop.eup %7674 }
0x1e28   :  { %v4335_v22 = vmul.f32 %v7675_v19, %v4279_v6 }
0x1e29   :  { %v7677_v39 = vpop.eup %7676 }
0x1e2a   :  { %v4333_v43 = vmul.f32 %v7677_v39, %v4277_v31  ;;  %v7363_v9 = vpack.i.bf16 %v4335_v22, %v4334_v50 }
0x1e2b   :  { %v7679_v15 = vpop.eup %7678 }
0x1e2c   :  { %7364 = vrot.lane.b32.xlu1 %v7363_v9, %s8510_s1  ;;  %v7368_v7 = vpack.i.bf16 %v4333_v43, %v4332_v40  ;;  %v9593_v33 = vmul.f32 %v7679_v15, %v4282_v23 }
0x1e2d   :  { %v7681_v30 = vpop.eup %7680 }
0x1e2e   :  { %7369 = vrot.lane.b32.xlu0 %v7368_v7, %s8510_s1  ;;  %v9597_v38 = vmul.f32 %v7681_v30, %v4280_v41 }
0x1e2f   :  { %v7683_v62 = vpop.eup %7682 }
0x1e30   :  { %v9595_v60 = vmul.f32 %v7683_v62, %v4283_v45 }
0x1e31   :  { %v7685_v18 = vpop.eup %7684 }
0x1e32   :  { %v9599_v6 = vmul.f32 %v7685_v18, %v4281_v27  ;;  %6973 = vmatprep.subr.mxu0 %v9595_v60  ;;  %7001 = vmatprep.subr.mxu1 %v9595_v60  ;;  %v7388_v21 = vpack.i.bf16 %v9595_v60, %v9593_v33 }
0x1e33   :  { %6974 = vmatpush3.msra.mxu0 %v9595_v60  ;;  %7002 = vmatpush3.msra.mxu1 %v9595_v60 }
0x1e34   :  { %6975 = vmatprep.subr.mxu0 %v9593_v33  ;;  %7003 = vmatprep.subr.mxu1 %v9593_v33  ;;  %v7378_v31 = vpack.i.bf16 %v9599_v6, %v9597_v38 }
0x1e35   :  { %6976 = vmatpush3.msra.mxu0 %v9593_v33  ;;  %7004 = vmatpush3.msra.mxu1 %v9593_v33 }
0x1e36   :  { %6977 = vmatprep.subr.mxu0 %v9599_v6  ;;  %7005 = vmatprep.subr.mxu1 %v9599_v6 }
0x1e37   :  { %6978 = vmatpush3.msra.mxu0 %v9599_v6  ;;  %7006 = vmatpush3.msra.mxu1 %v9599_v6 }
0x1e38   :  { %6979 = vmatprep.subr.mxu0 %v9597_v38  ;;  %7007 = vmatprep.subr.mxu1 %v9597_v38 }
0x1e39   :  { %6980 = vmatpush3.msra.mxu0 %v9597_v38  ;;  %7008 = vmatpush3.msra.mxu1 %v9597_v38 }
0x1e3a   :  { %6981 = vmatprep.subr.mxu0 %v4335_v22  ;;  %7009 = vmatprep.subr.mxu1 %v4335_v22 }
0x1e3b   :  { %6982 = vmatpush3.msra.mxu0 %v4335_v22  ;;  %7010 = vmatpush3.msra.mxu1 %v4335_v22 }
0x1e3c   :  { %6983 = vmatprep.subr.mxu0 %v4334_v50  ;;  %7011 = vmatprep.subr.mxu1 %v4334_v50 }
0x1e3d   :  { %6984 = vmatpush3.msra.mxu0 %v4334_v50  ;;  %7012 = vmatpush3.msra.mxu1 %v4334_v50 }
0x1e3e   :  { %6985 = vmatprep.subr.mxu0 %v4333_v43  ;;  %7013 = vmatprep.subr.mxu1 %v4333_v43 }
0x1e3f   :  { %6986 = vmatpush3.msra.mxu0 %v4333_v43  ;;  %7014 = vmatpush3.msra.mxu1 %v4333_v43 }
0x1e40   :  { %6987 = vmatprep.subr.mxu0 %v4332_v40  ;;  %7015 = vmatprep.subr.mxu1 %v4332_v40 }
0x1e41   :  { %6988 = vmatpush3.msra.mxu0 %v4332_v40  ;;  %7016 = vmatpush3.msra.mxu1 %v4332_v40 }
0x1e42   :  { %6990 = vmatmul.mubr.msk.f32.vlgmr.msra.gmra.mxu0 %vm3386_vm11, %v9283_v34  ;;  %7018 = vmatmul.mubr.msk.f32.vlgmr.msra.gmra.mxu1 %vm3386_vm11, %v9353_v28  ;;  %v7494_v34 = vld [vmem:[%s10066_s7 + $0x8] ss:$0 sps:$4 sm:$0xff]  }
0x1e43   :  { %6992 = vmatprep.mubr.msk.f32.mxu0 %vm3386_vm11, %v9286_v20  ;;  %7020 = vmatprep.mubr.msk.f32.mxu1 %vm3386_vm11, %v9357_v48  ;;  %v4666_v20 = vsel %vm3028_vm7, %v7494_v34, 0 }
0x1e44   :  { %7179 = vmatprep.subr.msk.bf16.mxu0 %vm3028_vm7, %v7494_v34  ;;  %v2998_v34 = vadd.f32 %v9401_v32, %v9174_v36 }
0x1e45   :  { %7030 = vmatpush3.bf16.msra.mxu0 %v4666_v20 }
0x1e46   :  { %6993 = vmatmul.mubr.msk.f32.gmra.mxu0 %vm3386_vm11, %v9295_v1  ;;  %7021 = vmatmul.mubr.msk.f32.gmra.mxu1 %vm3386_vm11, %v9365_v44  ;;  %v7495_v1 = vld [vmem:[%s10066_s7] sm:$0xff]  }
0x1e47   :  { %7023 = vmatprep.mubr.msk.f32.mxu1 %vm3386_vm11, %v9368_v16  ;;  %6995 = vmatprep.mubr.msk.f32.mxu0 %vm3386_vm11, %v9298_v0 }
0x1e48   :  { %7031 = vmatprep.subr.bf16.mxu0 %v7495_v1 }
0x1e49   :  { %7032 = vmatpush3.bf16.msra.mxu0 %v7495_v1 }
0x1e4a   :  { %7024 = vmatmul.mubr.msk.f32.gmra.mxu1 %vm3386_vm11, %v9375_v3  ;;  %6996 = vmatmul.mubr.msk.f32.gmra.mxu0 %vm3386_vm11, %v9305_v52 }
0x1e4b   :  { %7026 = vmatprep.mubr.msk.f32.mxu1 %vm3386_vm11, %v9378_v13  ;;  %6998 = vmatprep.mubr.msk.f32.mxu0 %vm3386_vm11, %v9308_v63 }
0x1e4e   :  { %7027 = vmatmul.mubr.msk.f32.gmra.mxu1 %vm3386_vm11, %v9385_v17  ;;  %6999 = vmatmul.mubr.msk.f32.gmra.mxu0 %vm3386_vm11, %v9315_v2  ;;  %v7496_v2 = vld [vmem:[%s10067_s12 + $0x8] sm:$0xff]  }
0x1e4f   :  { %7051 = vmatprep.subr.bf16.mxu0 %v7496_v2 }
0x1e9e   :  { %v7365_v25 = vpop.permute.xlu1 %7364 }
0x1e9f   :  { %v7367_v19 = vunpack.i.h.bf16 %v7365_v25  ;;  %v7366_v50 = vunpack.i.l.bf16 %v7365_v25 }
0x1ea0   :  { %v7370_v47 = vpop.permute.xlu0 %7369 }
0x1ea1   :  { %v7372_v26 = vunpack.i.h.bf16 %v7370_v47  ;;  %v7371_v46 = vunpack.i.l.bf16 %v7370_v47 }
0x1f02   :  { %v7019_v0 = vpop.f32.mrf.mxu1  ;;  %v6991_v45 = vpop.f32.mrf.mxu0 }
0x1f03   :  { %v4615_v59 = vsel %vm3024_vm9, %v6991_v45, %v7372_v26 }
0x1f04   :  { %v4511_v52 = vpop.f32.mrf.mxu1  ;;  %v4406_v27 = vpop.f32.mrf.mxu0 }
0x1f05   :  { %v7373_v28 = vpack.i.bf16 %v7019_v0, %v4511_v52  ;;  %v4614_v11 = vsel %vm3024_vm9, %v4406_v27, %v7371_v46 }
0x1f06   :  { %v7022_v63 = vpop.f32.mrf.mxu1  ;;  %v6994_v58 = vpop.f32.mrf.mxu0 }
0x1f07   :  { %7374 = vrot.lane.b32.xlu0 %v7373_v28, %s8511_s9  ;;  %v4617_v7 = vsel %vm3024_vm9, %v6994_v58, %v7367_v19 }
0x1f08   :  { %v4521_v48 = vpop.f32.mrf.mxu1  ;;  %v4416_v56 = vpop.f32.mrf.mxu0 }
0x1f09   :  { %v7383_v44 = vpack.i.bf16 %v7022_v63, %v4521_v48  ;;  %v4616_v15 = vsel %vm3024_vm9, %v4416_v56, %v7366_v50  ;;  %v2997_v48 = vadd.f32 %v9230_v29, %v9166_v49 }
0x1f0a   :  { %v7025_v16 = vpop.f32.mrf.mxu1  ;;  %v6997_v24 = vpop.f32.mrf.mxu0 }
0x1f0b   :  { %7379 = vrot.lane.b32.xlu0 %v7378_v31, %s8510_s1  ;;  %7384 = vrot.lane.b32.xlu1 %v7383_v44, %s8511_s9  ;;  %v7497_v31 = vld [vmem:[%s10067_s12] sm:$0xff]  }
0x1f0c   :  { %v4531_v3 = vpop.f32.mrf.mxu1  ;;  %v4426_v57 = vpop.f32.mrf.mxu0 }
0x1f0d   :  { %v7393_v13 = vpack.i.bf16 %v7025_v16, %v4531_v3 }
0x1f0e   :  { %v7028_v17 = vpop.f32.mrf.mxu1  ;;  %v7000_v18 = vpop.f32.mrf.mxu0 }
0x1f0f   :  { %7389 = vrot.lane.b32.xlu1 %v7388_v21, %s8510_s1  ;;  %7394 = vrot.lane.b32.xlu0 %v7393_v13, %s8511_s9  ;;  %v7766_v13 = vld [vmem:[#allocation27] ss:$0 sm:$0xff] }
0x1f10   :  { %v4541_v23 = vpop.f32.mrf.mxu1  ;;  %v4436_v3 = vpop.f32.mrf.mxu0  ;;  %v3008_v49 = vadd.f32 %v7766_v13, %v2997_v48 }
0x1f11   :  { %v7398_v41 = vpack.i.bf16 %v7028_v17, %v4541_v23  ;;  %v3009_v17 = vadd.f32 %v7766_v13, %v2998_v34 }
0x1f13   :  { %7399 = vrot.lane.b32.xlu1 %v7398_v41, %s8511_s9  ;;  %v9687_v47 = vpack.c.bf16 %v3009_v17, %v3008_v49 }
0x1f79   :  { %v7375_v54 = vpop.permute.xlu0 %7374 }
0x1f7a   :  { %v7377_v8 = vunpack.i.h.bf16 %v7375_v54  ;;  %v7376_v37 = vunpack.i.l.bf16 %v7375_v54 }
0x1f7c   :  { %v4622_v4 = vsel %vm1038_vm6, %v4614_v11, %v7376_v37  ;;  %v4623_v12 = vsel %vm1038_vm6, %v4615_v59, %v7377_v8 }
0x1f7d   :  { %v4630_v22 = vpack.c.bf16 %v4623_v12, %v4622_v4  ;;  %v7380_v39 = vpop.permute.xlu0 %7379  ;;  %v7385_v40 = vpop.permute.xlu1 %7384 }
0x1f7e   :  { %v7387_v43 = vunpack.i.h.bf16 %v7385_v40  ;;  %v7386_v9 = vunpack.i.l.bf16 %v7385_v40  ;;  %v7382_v30 = vunpack.i.h.bf16 %v7380_v39  ;;  %v7381_v62 = vunpack.i.l.bf16 %v7380_v39 }
0x1f7f   :  { %7033 = vmatprep.mubr.msk.bf16.mxu0 %vm4195_vm0, %v4630_v22 }
0x1f80   :  { %v4624_v33 = vsel %vm1038_vm6, %v4616_v15, %v7386_v9  ;;  %v4625_v60 = vsel %vm1038_vm6, %v4617_v7, %v7387_v43  ;;  %v4619_v0 = vsel %vm3024_vm9, %v6997_v24, %v7382_v30  ;;  %v4618_v52 = vsel %vm3024_vm9, %v4426_v57, %v7381_v62  ;;  %v6243_v24 = vld [vmem:[#allocation37] ss:$0 sm:$0xff] }
0x1f81   :  { %v4631_v38 = vpack.c.bf16 %v4625_v60, %v4624_v33  ;;  %v7390_v6 = vpop.permute.xlu1 %7389  ;;  %v7395_v21 = vpop.permute.xlu0 %7394 }
0x1f82   :  { %v7397_v20 = vunpack.i.h.bf16 %v7395_v21  ;;  %v7396_v1 = vunpack.i.l.bf16 %v7395_v21  ;;  %v7392_v28 = vunpack.i.h.bf16 %v7390_v6  ;;  %v7391_v63 = vunpack.i.l.bf16 %v7390_v6 }
0x1f83   :  { %7034 = vmatmul.mubr.msk.bf16.vlgmr.msra.gmra.mxu0 %vm4195_vm0, %v4631_v38 }
0x1f84   :  { %v4626_v44 = vsel %vm1038_vm6, %v4618_v52, %v7396_v1  ;;  %v4627_v16 = vsel %vm1038_vm6, %v4619_v0, %v7397_v20  ;;  %7052 = vmatpush3.bf16.msra.mxu0 %v7496_v2  ;;  %v4621_v45 = vsel %vm3024_vm9, %v7000_v18, %v7392_v28  ;;  %v4620_v27 = vsel %vm3024_vm9, %v4436_v3, %v7391_v63 }
0x1f85   :  { %v4632_v36 = vpack.c.bf16 %v4627_v16, %v4626_v44  ;;  %v7400_v32 = vpop.permute.xlu1 %7399  ;;  %7053 = vmatprep.subr.bf16.mxu0 %v7497_v31 }
0x1f86   :  { %v7402_v23 = vunpack.i.h.bf16 %v7400_v32  ;;  %v7401_v41 = vunpack.i.l.bf16 %v7400_v32 }
0x1f87   :  { %7037 = vmatprep.mubr.msk.bf16.mxu0 %vm4195_vm0, %v4632_v36 }
0x1f88   :  { %v4628_v29 = vsel %vm1038_vm6, %v4620_v27, %v7401_v41  ;;  %v4629_v58 = vsel %vm1038_vm6, %v4621_v45, %v7402_v23  ;;  %7054 = vmatpush3.bf16.msra.mxu0 %v7497_v31 }
0x1f89   :  { %v4633_v2 = vpack.c.bf16 %v4629_v58, %v4628_v29 }
0x1f8b   :  { %7038 = vmatmul.mubr.msk.bf16.gmra.mxu0 %vm4195_vm0, %v4633_v2 }
0x1f8c   :  { %7055 = vmatprep.mubr.msk.bf16.mxu0 %vm751_vm5, %v9687_v47 }
0x1f93   :  { %7056 = vmatmul.mubr.msk.bf16.vlgmr.msra.gmra.mxu0 %vm751_vm5, %v9234_v42 }
0x2043   :  { %v7035_v56 = vpop.f32.mrf.mxu0 }
0x2044   :  { %v4711_v26 = vadd.f32 %v7035_v56, %v6243_v24 }
0x2045   :  { %v4702_v25 = vpop.f32.mrf.mxu0 }
0x2046   :  { %v4703_v46 = vadd.f32 %v6243_v24, %v4702_v25  ;;  %v9698_v11 = vadd.f32 %v4711_v26, %v9448_v10 }
0x2047   :  { %v7036_v54 = vpop.f32.mrf.mxu0 }
0x2048   :  { %v9695_v8 = vadd.f32 %v4703_v46, %v9451_v14  ;;  %v4714_v37 = vadd.f32 %v7036_v54, %v6243_v24  ;;  %v4747_v10 = vsel %vm3024_vm9, %v9698_v11, 0.0 }
0x2049   :  { %v4705_v59 = vpop.f32.mrf.mxu0 }
0x204a   :  { %v4706_v4 = vadd.f32 %v6243_v24, %v4705_v59  ;;  %v4741_v12 = vsel %vm3024_vm9, %v9695_v8, 0.0  ;;  %v9706_v50 = vadd.f32 %v4714_v37, %v9454_v51 }
0x204b   :  { %4742 = vadd.xlane.f32.xlu0 %v4741_v12  ;;  %v7039_v57 = vpop.f32.mrf.mxu0 }
0x204c   :  { %v9703_v19 = vadd.f32 %v4706_v4, %v9457_v35  ;;  %v4727_v14 = vadd.f32 %v7039_v57, %v6243_v24  ;;  %v4750_v51 = vsel %vm3024_vm9, %v9706_v50, 0.0 }
0x204d   :  { %v4718_v22 = vpop.f32.mrf.mxu0 }
0x204e   :  { %v4719_v39 = vadd.f32 %v6243_v24, %v4718_v22  ;;  %v4744_v40 = vsel %vm3024_vm9, %v9703_v19, 0.0  ;;  %v9718_v7 = vadd.f32 %v4727_v14, %v9460_v53 }
0x204f   :  { %4745 = vadd.xlane.f32.xlu1 %v4744_v40  ;;  %4748 = vadd.xlane.f32.xlu0 %v4747_v10  ;;  %v7040_v43 = vpop.f32.mrf.mxu0 }
0x2050   :  { %v9713_v9 = vadd.f32 %v4719_v39, %v9463_v61  ;;  %v4730_v15 = vadd.f32 %v7040_v43, %v6243_v24  ;;  %v4759_v53 = vsel %vm3024_vm9, %v9718_v7, 0.0 }
0x2051   :  { %v4721_v35 = vpop.f32.mrf.mxu0 }
0x2052   :  { %v4722_v30 = vadd.f32 %v6243_v24, %v4721_v35  ;;  %v4753_v62 = vsel %vm3024_vm9, %v9713_v9, 0.0  ;;  %v9726_v18 = vadd.f32 %v4730_v15, %v9466_v55  ;;  %v4880_v15 = vld [vmem:[#allocation42] sm:$0xf] }
0x2053   :  { %4751 = vadd.xlane.f32.xlu0 %v4750_v51  ;;  %v7057_v33 = vpop.f32.mrf.mxu0  ;;  %4754 = vadd.xlane.f32.xlu1 %v4753_v62  ;;  %v9789_v62 = vld [vmem:[%s10068_s10 + $0x8] sm:$0xff]  }
0x2054   :  { %v9723_v60 = vadd.f32 %v4722_v30, %v9469_v5  ;;  %v4762_v55 = vsel %vm3024_vm9, %v9726_v18, 0.0  ;;  %7180 = vmatprep.subr.msk.bf16.mxu1 %vm3028_vm7, %v4880_v15  ;;  %v4894_v30 = vsel %vm3028_vm7, %v4880_v15, 0 }
0x2055   :  { %v5017_v61 = vpop.f32.mrf.mxu0  ;;  %7042 = vmatpush3.bf16.msra.mxu1 %v4894_v30 }
0x2056   :  { %v4756_v38 = vsel %vm3024_vm9, %v9723_v60, 0.0  ;;  %7059 = vmatprep.subr.bf16.mxu1 %v9789_v62 }
0x2057   :  { %v7058_v6 = vpop.f32.mrf.mxu0  ;;  %4757 = vadd.xlane.f32.xlu0 %v4756_v38  ;;  %4760 = vadd.xlane.f32.xlu1 %v4759_v53 }
0x2058   :  { %v5102_v21 = vpack.c.bf16 %v7058_v6, %v7057_v33 }
0x2059   :  { %v5020_v31 = vpop.f32.mrf.mxu0 }
0x205a   :  { %v5119_v34 = vsel %vm3024_vm9, %v5102_v21, 0  ;;  %v5101_v20 = vpack.c.bf16 %v5020_v31, %v5017_v61  ;;  %7181 = vmatprep.subr.msk.bf16.mxu0 %vm3024_vm9, %v5102_v21 }
0x205b   :  { %7068 = vmatpush3.bf16.xpose.msra.mxu0 %v5119_v34  ;;  %4763 = vadd.xlane.f32.xlu0 %v4762_v55 }
0x205c   :  { %7182 = vmatprep.subr.msk.bf16.mxu0 %vm3024_vm9, %v5101_v20  ;;  %v5116_v5 = vsel %vm3024_vm9, %v5101_v20, 0 }
0x2063   :  { %7070 = vmatpush3.bf16.xpose.msra.mxu0 %v5116_v5 }
0x20d4   :  { %v4743_v1 = vpop.xlane.xlu0 %4742 }
0x20d5   :  { %v4766_v0 = vmul.f32 0.125, %v4743_v1 }
0x20d7   :  { %v9739_v52 = vsub.f32 %v9695_v8, %v4766_v0 }
0x20d8   :  { %v4746_v28 = vpop.xlane.xlu1 %4745  ;;  %v4749_v63 = vpop.xlane.xlu0 %4748 }
0x20d9   :  { %v4767_v48 = vmul.f32 0.125, %v4746_v28  ;;  %v4768_v44 = vmul.f32 0.125, %v4749_v63  ;;  %v4782_v16 = vmul.f32 %v9739_v52, %v9739_v52 }
0x20db   :  { %v9744_v3 = vsub.f32 %v9703_v19, %v4767_v48  ;;  %v9747_v36 = vsub.f32 %v9698_v11, %v4768_v44  ;;  %v4790_v32 = vsel %vm3024_vm9, %v4782_v16, 0.0 }
0x20dc   :  { %v4752_v13 = vpop.xlane.xlu0 %4751  ;;  %4791 = vadd.xlane.f32.xlu1 %v4790_v32  ;;  %v4755_v17 = vpop.xlane.xlu1 %4754 }
0x20dd   :  { %v4769_v23 = vmul.f32 0.125, %v4752_v13  ;;  %v4770_v41 = vmul.f32 0.125, %v4755_v17  ;;  %v4783_v45 = vmul.f32 %v9744_v3, %v9744_v3  ;;  %v4784_v27 = vmul.f32 %v9747_v36, %v9747_v36 }
0x20df   :  { %v9755_v49 = vsub.f32 %v9706_v50, %v4769_v23  ;;  %v9758_v29 = vsub.f32 %v9713_v9, %v4770_v41  ;;  %v4793_v58 = vsel %vm3024_vm9, %v4783_v45, 0.0  ;;  %v4796_v2 = vsel %vm3024_vm9, %v4784_v27, 0.0 }
0x20e0   :  { %4794 = vadd.xlane.f32.xlu0 %v4793_v58  ;;  %v4758_v56 = vpop.xlane.xlu0 %4757  ;;  %4797 = vadd.xlane.f32.xlu1 %v4796_v2  ;;  %v4761_v24 = vpop.xlane.xlu1 %4760  ;;  %v6250_v2 = vld [vmem:[#allocation39] ss:$0 sm:$0xff] }
0x20e1   :  { %v4771_v25 = vmul.f32 0.125, %v4758_v56  ;;  %v4772_v26 = vmul.f32 0.125, %v4761_v24  ;;  %v4785_v46 = vmul.f32 %v9755_v49, %v9755_v49  ;;  %v4786_v54 = vmul.f32 %v9758_v29, %v9758_v29 }
0x20e3   :  { %v9767_v37 = vsub.f32 %v9723_v60, %v4771_v25  ;;  %v9770_v59 = vsub.f32 %v9718_v7, %v4772_v26  ;;  %v4799_v4 = vsel %vm3024_vm9, %v4785_v46, 0.0  ;;  %v4802_v12 = vsel %vm3024_vm9, %v4786_v54, 0.0  ;;  %v6251_v54 = vld [vmem:[#allocation40] ss:$0 sm:$0xff] }
0x20e4   :  { %4800 = vadd.xlane.f32.xlu0 %v4799_v4  ;;  %v4764_v57 = vpop.xlane.xlu0 %4763  ;;  %4803 = vadd.xlane.f32.xlu1 %v4802_v12 }
0x20e5   :  { %v4773_v22 = vmul.f32 0.125, %v4764_v57  ;;  %v4787_v14 = vmul.f32 %v9767_v37, %v9767_v37  ;;  %v4788_v39 = vmul.f32 %v9770_v59, %v9770_v59 }
0x20e7   :  { %v9779_v40 = vsub.f32 %v9726_v18, %v4773_v22  ;;  %v4805_v10 = vsel %vm3024_vm9, %v4787_v14, 0.0  ;;  %v4808_v43 = vsel %vm3024_vm9, %v4788_v39, 0.0 }
0x20e8   :  { %4806 = vadd.xlane.f32.xlu0 %v4805_v10  ;;  %4809 = vadd.xlane.f32.xlu1 %v4808_v43 }
0x20e9   :  { %v4789_v35 = vmul.f32 %v9779_v40, %v9779_v40 }
0x20eb   :  { %v4811_v51 = vsel %vm3024_vm9, %v4789_v35, 0.0 }
0x20ec   :  { %4812 = vadd.xlane.f32.xlu0 %v4811_v51 }
0x2165   :  { %v4792_v33 = vpop.xlane.xlu1 %4791 }
0x2166   :  { %v4814_v61 = vmul.f32 0.125, %v4792_v33 }
0x2168   :  { %v4822_v38 = vadd.f32 1e-05, %v4814_v61 }
0x2169   :  { %v4795_v53 = vpop.xlane.xlu0 %4794  ;;  %v4798_v6 = vpop.xlane.xlu1 %4797 }
0x216a   :  { %7686 = vrsqrt.f32 %v4822_v38  ;;  %v4815_v21 = vmul.f32 0.125, %v4795_v53  ;;  %v4816_v31 = vmul.f32 0.125, %v4798_v6  ;;  %v7499_v53 = vld [vmem:[%s10068_s10] sm:$0xff]  }
0x216c   :  { %v4823_v34 = vadd.f32 1e-05, %v4815_v21  ;;  %v4824_v20 = vadd.f32 1e-05, %v4816_v31 }
0x216d   :  { %v4801_v55 = vpop.xlane.xlu0 %4800  ;;  %v4804_v5 = vpop.xlane.xlu1 %4803 }
0x216e   :  { %7688 = vrsqrt.f32 %v4823_v34  ;;  %v4817_v1 = vmul.f32 0.125, %v4801_v55  ;;  %v4818_v0 = vmul.f32 0.125, %v4804_v5 }
0x216f   :  { %7690 = vrsqrt.f32 %v4824_v20 }
0x2170   :  { %v4825_v28 = vadd.f32 1e-05, %v4817_v1  ;;  %v4826_v63 = vadd.f32 1e-05, %v4818_v0 }
0x2171   :  { %v4807_v48 = vpop.xlane.xlu0 %4806  ;;  %v4810_v44 = vpop.xlane.xlu1 %4809 }
0x2172   :  { %7692 = vrsqrt.f32 %v4825_v28  ;;  %v4819_v16 = vmul.f32 0.125, %v4807_v48  ;;  %v4820_v32 = vmul.f32 0.125, %v4810_v44 }
0x2173   :  { %7694 = vrsqrt.f32 %v4826_v63 }
0x2174   :  { %v4827_v13 = vadd.f32 1e-05, %v4819_v16  ;;  %v4828_v17 = vadd.f32 1e-05, %v4820_v32 }
0x2175   :  { %v4813_v23 = vpop.xlane.xlu0 %4812 }
0x2176   :  { %7696 = vrsqrt.f32 %v4827_v13  ;;  %v4821_v41 = vmul.f32 0.125, %v4813_v23  ;;  %v7767_v23 = vld [vmem:[%s10062_s8] sm:$0xff] }
0x2177   :  { %v7687_v45 = vpop.eup %7686  ;;  %7698 = vrsqrt.f32 %v4828_v17 }
0x2178   :  { %v4829_v27 = vadd.f32 1e-05, %v4821_v41  ;;  %v4838_v58 = vmul.f32 %v7687_v45, %v9739_v52 }
0x217a   :  { %7700 = vrsqrt.f32 %v4829_v27  ;;  %v4853_v26 = vmul.f32 %v6250_v2, %v4838_v58 }
0x217b   :  { %v7689_v56 = vpop.eup %7688 }
0x217c   :  { %v7691_v24 = vpop.eup %7690  ;;  %v4839_v25 = vmul.f32 %v7689_v56, %v9744_v3  ;;  %v4868_v39 = vadd.f32 %v6251_v54, %v4853_v26  ;;  %v5196_v56 = vld [vmem:[%s10069_s5 + $0x10] sm:$0xff]  ;;  %v5195_v26 = vld [vmem:[%s10069_s5 + $0x8] sm:$0xff] }
0x217d   :  { %v4840_v46 = vmul.f32 %v7691_v24, %v9747_v36  ;;  %v7768_v24 = vld [vmem:[%s10050_s19] ss:$0 sm:$0xff] }
0x217e   :  { %v4854_v4 = vmul.f32 %v6250_v2, %v4839_v25 }
0x217f   :  { %v7693_v12 = vpop.eup %7692  ;;  %v4855_v22 = vmul.f32 %v6250_v2, %v4840_v46  ;;  %v5204_v46 = vmul.f32 %v7768_v24, %v5196_v56 }
0x2180   :  { %v7695_v57 = vpop.eup %7694  ;;  %v4841_v14 = vmul.f32 %v7693_v12, %v9755_v49  ;;  %v4869_v10 = vadd.f32 %v6251_v54, %v4854_v4  ;;  %v5203_v12 = vmul.f32 %v7768_v24, %v5195_v26 }
0x2181   :  { %v4842_v52 = vmul.f32 %v7695_v57, %v9758_v29  ;;  %v4870_v3 = vadd.f32 %v6251_v54, %v4855_v22  ;;  %v5198_v22 = vld [vmem:[%s10069_s5 + $0x20] sm:$0xff] }
0x2182   :  { %v4856_v43 = vmul.f32 %v6250_v2, %v4841_v14  ;;  %v4876_v35 = vpack.c.bf16 %v4869_v10, %v4868_v39  ;;  %v6270_v14 = vadd.f32 -1.0, %v5204_v46  ;;  %v5200_v39 = vld [vmem:[%s10069_s5 + $0x30] sm:$0xff] }
0x2183   :  { %v7697_v51 = vpop.eup %7696  ;;  %v4857_v33 = vmul.f32 %v6250_v2, %v4842_v52 }
0x2184   :  { %v7699_v15 = vpop.eup %7698  ;;  %7043 = vmatprep.mubr.msk.bf16.mxu1 %vm3024_vm9, %v4876_v35  ;;  %v4871_v36 = vadd.f32 %v6251_v54, %v4856_v43  ;;  %v4843_v30 = vmul.f32 %v7697_v51, %v9767_v37  ;;  %v6269_v43 = vadd.f32 -1.0, %v5203_v12  ;;  %v5206_v35 = vmul.f32 %v7768_v24, %v5198_v22 }
0x2185   :  { %v4844_v61 = vmul.f32 %v7699_v15, %v9770_v59  ;;  %v4872_v29 = vadd.f32 %v6251_v54, %v4857_v33  ;;  %v5220_v33 = vmul.f32 10000.0, %v6270_v14 }
0x2186   :  { %v4877_v38 = vpack.c.bf16 %v4871_v36, %v4870_v3  ;;  %v4858_v49 = vmul.f32 %v6250_v2, %v4843_v30  ;;  %v5208_v3 = vmul.f32 %v7768_v24, %v5200_v39  ;;  %v5199_v36 = vld [vmem:[%s10069_s5 + $0x28] sm:$0xff] }
0x2187   :  { %v7701_v6 = vpop.eup %7700  ;;  %v4859_v34 = vmul.f32 %v6250_v2, %v4844_v61 }
0x2188   :  { %7044 = vmatmul.mubr.msk.bf16.vlgmr.msra.gmra.mxu1 %vm3024_vm9, %v4877_v38  ;;  %v4873_v21 = vadd.f32 %v6251_v54, %v4858_v49  ;;  %v4845_v31 = vmul.f32 %v7701_v6, %v9779_v40  ;;  %v5201_v38 = vld [vmem:[%s10069_s5 + $0x38] sm:$0xff]  ;;  %v5219_v6 = vmul.f32 10000.0, %v6269_v43 }
0x2189   :  { %7060 = vmatpush3.bf16.msra.mxu1 %v9789_v62  ;;  %v4874_v37 = vadd.f32 %v6251_v54, %v4859_v34 }
0x218a   :  { %v4878_v20 = vpack.c.bf16 %v4873_v21, %v4872_v29  ;;  %v4860_v55 = vmul.f32 %v6250_v2, %v4845_v31  ;;  %7061 = vmatprep.subr.bf16.mxu1 %v7499_v53  ;;  %v5194_v2 = vld [vmem:[%s10069_s5] sm:$0xff]  ;;  %v6272_v29 = vadd.f32 -1.0, %v5206_v35  ;;  %v5207_v21 = vmul.f32 %v7768_v24, %v5199_v36 }
0x218b   :  { %v5202_v25 = vmul.f32 %v7768_v24, %v5194_v2 }
0x218c   :  { %7047 = vmatprep.mubr.msk.bf16.mxu1 %vm3024_vm9, %v4878_v20  ;;  %v4875_v59 = vadd.f32 %v6251_v54, %v4860_v55  ;;  %v5197_v54 = vld [vmem:[%s10069_s5 + $0x18] sm:$0xff]  ;;  %v6274_v55 = vadd.f32 -1.0, %v5208_v3 }
0x218d   :  { %7062 = vmatpush3.bf16.msra.mxu1 %v7499_v53  ;;  %v6268_v4 = vadd.f32 -1.0, %v5202_v25  ;;  %v5205_v57 = vmul.f32 %v7768_v24, %v5197_v54 }
0x218e   :  { %v4879_v5 = vpack.c.bf16 %v4875_v59, %v4874_v37  ;;  %v5209_v37 = vmul.f32 %v7768_v24, %v5201_v38 }
0x218f   :  { %v5218_v52 = vmul.f32 10000.0, %v6268_v4  ;;  %v6271_v15 = vadd.f32 -1.0, %v5205_v57 }
0x2190   :  { %7048 = vmatmul.mubr.msk.bf16.gmra.mxu1 %vm3024_vm9, %v4879_v5 }
0x2191   :  { %7063 = vmatprep.mubr.msk.bf16.mxu1 %vm751_vm5, %v9687_v47  ;;  %v5221_v34 = vmul.f32 10000.0, %v6271_v15 }
0x2198   :  { %7064 = vmatmul.mubr.msk.bf16.vlgmr.msra.gmra.mxu1 %vm751_vm5, %v9234_v42 }
0x2248   :  { %v7045_v40 = vpop.f32.mrf.mxu1 }
0x224a   :  { %v4930_v1 = vpop.f32.mrf.mxu1 }
0x224c   :  { %v7046_v62 = vpop.f32.mrf.mxu1 }
0x224d   :  { %v5098_v63 = vpack.c.bf16 %v7046_v62, %v7045_v40 }
0x224e   :  { %v4933_v0 = vpop.f32.mrf.mxu1 }
0x224f   :  { %v5097_v28 = vpack.c.bf16 %v4933_v0, %v4930_v1  ;;  %v5222_v0 = vmul.f32 10000.0, %v6272_v29 }
0x2250   :  { %v7049_v48 = vpop.f32.mrf.mxu1 }
0x2251   :  { %7071 = vmatprep.mubr.msk.bf16.mxu0 %vm3024_vm9, %v5097_v28  ;;  %v6273_v28 = vadd.f32 -1.0, %v5207_v21 }
0x2252   :  { %v4946_v44 = vpop.f32.mrf.mxu1  ;;  %7072 = vmatmul.mubr.msk.bf16.vlgmr.msra.gmra.mxu0 %vm3024_vm9, %v5098_v63 }
0x2254   :  { %v7050_v16 = vpop.f32.mrf.mxu1 }
0x2255   :  { %v5100_v47 = vpack.c.bf16 %v7050_v16, %v7049_v48  ;;  %v5224_v48 = vmul.f32 10000.0, %v6274_v55  ;;  %v6275_v16 = vadd.f32 -1.0, %v5209_v37 }
0x2256   :  { %v4949_v32 = vpop.f32.mrf.mxu1 }
0x2257   :  { %v5099_v13 = vpack.c.bf16 %v4949_v32, %v4946_v44 }
0x2258   :  { %v7065_v42 = vpop.f32.mrf.mxu1 }
0x2259   :  { %7075 = vmatprep.mubr.msk.bf16.mxu0 %vm3024_vm9, %v5099_v13 }
0x225a   :  { %v5082_v17 = vpop.f32.mrf.mxu1  ;;  %7076 = vmatmul.mubr.msk.bf16.gmra.mxu0 %vm3024_vm9, %v5100_v47 }
0x225b   :  { %7117 = vmatprep.mubr.msk.f32.mxu0 %vm3386_vm11, %v7767_v23 }
0x225c   :  { %v7066_v41 = vpop.f32.mrf.mxu1 }
0x225d   :  { %v5327_v45 = vpack.c.bf16 %v7066_v41, %v7065_v42  ;;  %v5223_v41 = vmul.f32 10000.0, %v6273_v28 }
0x225e   :  { %v5085_v27 = vpop.f32.mrf.mxu1 }
0x225f   :  { %v5326_v58 = vpack.c.bf16 %v5085_v27, %v5082_v17  ;;  %7079 = vmatprep.subr.bf16.mxu1 %v5327_v45 }
0x2260   :  { %7080 = vmatpush3.bf16.msra.mxu1 %v5327_v45  ;;  %v5225_v45 = vmul.f32 10000.0, %v6275_v16 }
0x2261   :  { %7081 = vmatprep.subr.bf16.mxu1 %v5326_v58 }
0x2264   :  { %7082 = vmatpush3.bf16.msra.mxu1 %v5326_v58 }
0x2312   :  { %v7073_v10 = vpop.f32.mrf.mxu0 }
0x2313   :  { %v5188_v30 = vmul.f32 0.35355338, %v7073_v10 }
0x2314   :  { %v5155_v51 = vpop.f32.mrf.mxu0 }
0x2315   :  { %v5186_v61 = vmul.f32 0.35355338, %v5155_v51  ;;  %v5228_v59 = vadd.f32 %v5220_v33, %v5188_v30 }
0x2316   :  { %v7074_v49 = vpop.f32.mrf.mxu0 }
0x2317   :  { %v5226_v53 = vadd.f32 %v5218_v52, %v5186_v61  ;;  %v5189_v31 = vmul.f32 0.35355338, %v7074_v49  ;;  %v5240_v47 = vsel %vm751_vm5, %v5228_v59, -inf }
0x2318   :  { %v5158_v20 = vpop.f32.mrf.mxu0 }
0x2319   :  { %v5187_v5 = vmul.f32 0.35355338, %v5158_v20  ;;  %v5234_v40 = vsel %vm751_vm5, %v5226_v53, -inf  ;;  %v5229_v63 = vadd.f32 %v5221_v34, %v5189_v31 }
0x231a   :  { %5235 = vmax.xlane.f32.xlu1 %v5234_v40  ;;  %v7077_v1 = vpop.f32.mrf.mxu0 }
0x231b   :  { %v5227_v62 = vadd.f32 %v5219_v6, %v5187_v5  ;;  %v5192_v32 = vmul.f32 0.35355338, %v7077_v1  ;;  %v5243_v58 = vsel %vm751_vm5, %v5229_v63, -inf }
0x231c   :  { %v5171_v44 = vpop.f32.mrf.mxu0 }
0x231d   :  { %v5190_v13 = vmul.f32 0.35355338, %v5171_v44  ;;  %v5237_v42 = vsel %vm751_vm5, %v5227_v62, -inf  ;;  %v5232_v2 = vadd.f32 %v5224_v48, %v5192_v32 }
0x231e   :  { %5241 = vmax.xlane.f32.xlu1 %v5240_v47  ;;  %5238 = vmax.xlane.f32.xlu0 %v5237_v42  ;;  %v7078_v17 = vpop.f32.mrf.mxu0 }
0x231f   :  { %v5230_v23 = vadd.f32 %v5222_v0, %v5190_v13  ;;  %v5193_v56 = vmul.f32 0.35355338, %v7078_v17  ;;  %v5252_v54 = vsel %vm751_vm5, %v5232_v2, -inf }
0x2320   :  { %v5174_v27 = vpop.f32.mrf.mxu0 }
0x2321   :  { %v5191_v24 = vmul.f32 0.35355338, %v5174_v27  ;;  %v5246_v25 = vsel %vm751_vm5, %v5230_v23, -inf  ;;  %v5233_v46 = vadd.f32 %v5225_v45, %v5193_v56 }
0x2322   :  { %5244 = vmax.xlane.f32.xlu0 %v5243_v58  ;;  %5247 = vmax.xlane.f32.xlu1 %v5246_v25 }
0x2323   :  { %v5231_v26 = vadd.f32 %v5223_v41, %v5191_v24  ;;  %v5255_v12 = vsel %vm751_vm5, %v5233_v46, -inf }
0x2325   :  { %v5249_v4 = vsel %vm751_vm5, %v5231_v26, -inf }
0x2326   :  { %5253 = vmax.xlane.f32.xlu1 %v5252_v54  ;;  %5250 = vmax.xlane.f32.xlu0 %v5249_v4 }
0x232a   :  { %5256 = vmax.xlane.f32.xlu0 %v5255_v12 }
0x23a3   :  { %v5236_v57 = vpop.xlane.xlu1 %5235 }
0x23a4   :  { %v5258_v22 = vsub.f32 %v5226_v53, %v5236_v57 }
0x23a6   :  { %v5266_v14 = vmul.f32 1.442695, %v5258_v22 }
0x23a7   :  { %v5239_v39 = vpop.xlane.xlu0 %5238  ;;  %v5242_v10 = vpop.xlane.xlu1 %5241 }
0x23a8   :  { %7702 = vpow2.f32 %v5266_v14  ;;  %v5259_v52 = vsub.f32 %v5227_v62, %v5239_v39  ;;  %v5260_v43 = vsub.f32 %v5228_v59, %v5242_v10 }
0x23aa   :  { %v5268_v35 = vmul.f32 1.442695, %v5259_v52  ;;  %v5270_v51 = vmul.f32 1.442695, %v5260_v43 }
0x23ab   :  { %v5245_v15 = vpop.xlane.xlu0 %5244  ;;  %v5248_v3 = vpop.xlane.xlu1 %5247 }
0x23ac   :  { %7704 = vpow2.f32 %v5268_v35  ;;  %v5261_v36 = vsub.f32 %v5229_v63, %v5245_v15  ;;  %v5262_v30 = vsub.f32 %v5230_v23, %v5248_v3 }
0x23ad   :  { %7706 = vpow2.f32 %v5270_v51 }
0x23ae   :  { %v5272_v33 = vmul.f32 1.442695, %v5261_v36  ;;  %v5274_v61 = vmul.f32 1.442695, %v5262_v30  ;;  %v5409_v30 = vld [vmem:[#allocation43] sm:$0xf] }
0x23af   :  { %v5251_v38 = vpop.xlane.xlu0 %5250  ;;  %v5254_v49 = vpop.xlane.xlu1 %5253  ;;  %7183 = vmatprep.subr.msk.bf16.mxu1 %vm3028_vm7, %v5409_v30 }
0x23b0   :  { %7708 = vpow2.f32 %v5272_v33  ;;  %v5263_v53 = vsub.f32 %v5231_v26, %v5251_v38  ;;  %v5264_v6 = vsub.f32 %v5232_v2, %v5254_v49  ;;  %v5430_v33 = vsel %vm3028_vm7, %v5409_v30, 0 }
0x23b1   :  { %7710 = vpow2.f32 %v5274_v61 }
0x23b2   :  { %v5276_v29 = vmul.f32 1.442695, %v5263_v53  ;;  %v5278_v21 = vmul.f32 1.442695, %v5264_v6 }
0x23b3   :  { %v5257_v31 = vpop.xlane.xlu0 %5256 }
0x23b4   :  { %7712 = vpow2.f32 %v5276_v29  ;;  %v5265_v34 = vsub.f32 %v5233_v46, %v5257_v31 }
0x23b5   :  { %v7703_v20 = vpop.eup %7702  ;;  %7714 = vpow2.f32 %v5278_v21 }
0x23b6   :  { %v5280_v55 = vmul.f32 1.442695, %v5265_v34  ;;  %v5282_v37 = vsel %vm751_vm5, %v7703_v20, 0.0 }
0x23b7   :  { %5283 = vadd.xlane.f32.xlu1 %v5282_v37 }
0x23b8   :  { %7716 = vpow2.f32 %v5280_v55 }
0x23b9   :  { %v7705_v59 = vpop.eup %7704 }
0x23ba   :  { %v7707_v5 = vpop.eup %7706  ;;  %v5285_v40 = vsel %vm751_vm5, %v7705_v59, 0.0 }
0x23bb   :  { %5286 = vadd.xlane.f32.xlu0 %v5285_v40  ;;  %v5288_v1 = vsel %vm751_vm5, %v7707_v5, 0.0 }
0x23bc   :  { %5289 = vadd.xlane.f32.xlu1 %v5288_v1 }
0x23bd   :  { %v7709_v62 = vpop.eup %7708 }
0x23be   :  { %v7711_v0 = vpop.eup %7710  ;;  %v5291_v28 = vsel %vm751_vm5, %v7709_v62, 0.0 }
0x23bf   :  { %5292 = vadd.xlane.f32.xlu0 %v5291_v28  ;;  %v5294_v63 = vsel %vm751_vm5, %v7711_v0, 0.0 }
0x23c0   :  { %5295 = vadd.xlane.f32.xlu1 %v5294_v63 }
0x23c1   :  { %v7713_v48 = vpop.eup %7712 }
0x23c2   :  { %v7715_v44 = vpop.eup %7714  ;;  %v5297_v16 = vsel %vm751_vm5, %v7713_v48, 0.0 }
0x23c3   :  { %5298 = vadd.xlane.f32.xlu0 %v5297_v16  ;;  %v5300_v32 = vsel %vm751_vm5, %v7715_v44, 0.0 }
0x23c4   :  { %5301 = vadd.xlane.f32.xlu1 %v5300_v32 }
0x23c5   :  { %v7717_v13 = vpop.eup %7716 }
0x23c6   :  { %v5303_v47 = vsel %vm751_vm5, %v7717_v13, 0.0 }
0x23c7   :  { %5304 = vadd.xlane.f32.xlu0 %v5303_v47 }
0x2440   :  { %v5284_v42 = vpop.xlane.xlu1 %5283 }
0x2441   :  { %7718 = vrcp.f32 %v5284_v42 }
0x2444   :  { %v5287_v17 = vpop.xlane.xlu0 %5286 }
0x2445   :  { %7720 = vrcp.f32 %v5287_v17  ;;  %v5290_v23 = vpop.xlane.xlu1 %5289 }
0x2446   :  { %7722 = vrcp.f32 %v5290_v23 }
0x2448   :  { %v5293_v41 = vpop.xlane.xlu0 %5292 }
0x2449   :  { %7724 = vrcp.f32 %v5293_v41  ;;  %v5296_v45 = vpop.xlane.xlu1 %5295 }
0x244a   :  { %7726 = vrcp.f32 %v5296_v45 }
0x244c   :  { %v5299_v27 = vpop.xlane.xlu0 %5298 }
0x244d   :  { %7728 = vrcp.f32 %v5299_v27  ;;  %v5302_v58 = vpop.xlane.xlu1 %5301 }
0x244e   :  { %7730 = vrcp.f32 %v5302_v58  ;;  %v7719_v2 = vpop.eup %7718 }
0x244f   :  { %v5314_v25 = vmul.f32 %v7719_v2, %v7703_v20 }
0x2450   :  { %v5305_v56 = vpop.xlane.xlu0 %5304 }
0x2451   :  { %7732 = vrcp.f32 %v5305_v56 }
0x2452   :  { %v7721_v24 = vpop.eup %7720 }
0x2453   :  { %v5315_v26 = vmul.f32 %v7721_v24, %v7705_v59  ;;  %v7723_v46 = vpop.eup %7722  ;;  %v7769_v59 = vld [vmem:[%s10063_s26] sm:$0xff] }
0x2454   :  { %v5316_v12 = vmul.f32 %v7723_v46, %v7707_v5  ;;  %v6280_v5 = vld [vmem:[#allocation45] ss:$0 sm:$0xff] }
0x2455   :  { %v5322_v54 = vpack.c.bf16 %v5315_v26, %v5314_v25 }
0x2456   :  { %v7725_v4 = vpop.eup %7724 }
0x2457   :  { %7083 = vmatprep.mubr.msk.bf16.mxu1 %vm751_vm5, %v5322_v54  ;;  %v5317_v57 = vmul.f32 %v7725_v4, %v7709_v62  ;;  %v7727_v22 = vpop.eup %7726 }
0x2458   :  { %v5318_v10 = vmul.f32 %v7727_v22, %v7711_v0 }
0x2459   :  { %v5323_v14 = vpack.c.bf16 %v5317_v57, %v5316_v12 }
0x245a   :  { %v7729_v39 = vpop.eup %7728 }
0x245b   :  { %7084 = vmatmul.mubr.msk.bf16.vlgmr.msra.gmra.mxu1 %vm751_vm5, %v5323_v14  ;;  %v5319_v52 = vmul.f32 %v7729_v39, %v7713_v48  ;;  %v7731_v43 = vpop.eup %7730 }
0x245c   :  { %v5320_v15 = vmul.f32 %v7731_v43, %v7715_v44  ;;  %7092 = vmatpush3.bf16.msra.mxu1 %v5430_v33 }
0x245d   :  { %v5324_v35 = vpack.c.bf16 %v5319_v52, %v5318_v10 }
0x245e   :  { %v7733_v51 = vpop.eup %7732 }
0x245f   :  { %7087 = vmatprep.mubr.msk.bf16.mxu1 %vm751_vm5, %v5324_v35  ;;  %v5321_v3 = vmul.f32 %v7733_v51, %v7717_v13 }
0x2461   :  { %v5325_v36 = vpack.c.bf16 %v5321_v3, %v5320_v15 }
0x2463   :  { %7088 = vmatmul.mubr.msk.bf16.gmra.mxu1 %vm751_vm5, %v5325_v36 }
0x251b   :  { %v7085_v61 = vpop.f32.mrf.mxu1 }
0x251d   :  { %v5374_v38 = vpop.f32.mrf.mxu1 }
0x251f   :  { %v7086_v49 = vpop.f32.mrf.mxu1 }
0x2520   :  { %v5406_v29 = vpack.c.bf16 %v7086_v49, %v7085_v61 }
0x2521   :  { %v5377_v53 = vpop.f32.mrf.mxu1 }
0x2522   :  { %v5405_v6 = vpack.c.bf16 %v5377_v53, %v5374_v38 }
0x2523   :  { %v7089_v21 = vpop.f32.mrf.mxu1 }
0x2524   :  { %7093 = vmatprep.mubr.msk.bf16.mxu1 %vm3024_vm9, %v5405_v6 }
0x2525   :  { %v5390_v31 = vpop.f32.mrf.mxu1  ;;  %7094 = vmatmul.mubr.msk.bf16.vlgmr.msra.gmra.mxu1 %vm3024_vm9, %v5406_v29 }
0x2527   :  { %v7090_v34 = vpop.f32.mrf.mxu1 }
0x2528   :  { %v5408_v37 = vpack.c.bf16 %v7090_v34, %v7089_v21 }
0x2529   :  { %v5393_v20 = vpop.f32.mrf.mxu1 }
0x252a   :  { %v5407_v55 = vpack.c.bf16 %v5393_v20, %v5390_v31 }
0x252c   :  { %7097 = vmatprep.mubr.msk.bf16.mxu1 %vm3024_vm9, %v5407_v55 }
0x252d   :  { %7098 = vmatmul.mubr.msk.bf16.gmra.mxu1 %vm3024_vm9, %v5408_v37 }
0x252e   :  { %7145 = vmatprep.mubr.msk.f32.mxu1 %vm3386_vm11, %v7769_v59 }
0x25e5   :  { %v7095_v40 = vpop.f32.mrf.mxu1 }
0x25e6   :  { %v5475_v1 = vadd.f32 %v7095_v40, %v6280_v5 }
0x25e7   :  { %v5466_v62 = vpop.f32.mrf.mxu1 }
0x25e8   :  { %v9854_v0 = vadd.f32 %v5475_v1, %v9698_v11  ;;  %v5467_v28 = vadd.f32 %v6280_v5, %v5466_v62 }
0x25e9   :  { %v7096_v63 = vpop.f32.mrf.mxu1 }
0x25ea   :  { %v6287_v48 = vmul.f32 -1.442695, %v9854_v0  ;;  %v9858_v44 = vadd.f32 %v5467_v28, %v9695_v8  ;;  %v5478_v16 = vadd.f32 %v7096_v63, %v6280_v5  ;;  %v7770_v28 = vld [vmem:[%s10062_s8 + $0x8] sm:$0xff] }
0x25eb   :  { %v5469_v32 = vpop.f32.mrf.mxu1  ;;  %v7771_v63 = vld [vmem:[%s10063_s26 + $0x8] sm:$0xff] }
0x25ec   :  { %7734 = vpow2.f32 %v6287_v48  ;;  %v6285_v13 = vmul.f32 -1.442695, %v9858_v44  ;;  %v5500_v47 = vadd.f32 %v5478_v16, %v9706_v50  ;;  %v5470_v42 = vadd.f32 %v6280_v5, %v5469_v32  ;;  %v7772_v48 = vld [vmem:[%s10062_s8 + $0x10] sm:$0xff]  ;;  %v7774_v16 = vld [vmem:[%s10062_s8 + $0x18] sm:$0xff] }
0x25ed   :  { %v7099_v17 = vpop.f32.mrf.mxu1  ;;  %v7775_v32 = vld [vmem:[%s10063_s26 + $0x18] sm:$0xff] }
0x25ee   :  { %7736 = vpow2.f32 %v6285_v13  ;;  %v6288_v23 = vmul.f32 -1.442695, %v5500_v47  ;;  %v5498_v11 = vadd.f32 %v5470_v42, %v9703_v19  ;;  %v5491_v41 = vadd.f32 %v7099_v17, %v6280_v5  ;;  %v7776_v13 = vld [vmem:[%s10062_s8 + $0x20] sm:$0xff]  ;;  %v7778_v42 = vld [vmem:[%s10062_s8 + $0x28] sm:$0xff] }
0x25ef   :  { %v5482_v45 = vpop.f32.mrf.mxu1  ;;  %v7779_v17 = vld [vmem:[%s10063_s26 + $0x28] sm:$0xff] }
0x25f0   :  { %7738 = vpow2.f32 %v6288_v23  ;;  %v6286_v27 = vmul.f32 -1.442695, %v5498_v11  ;;  %v5503_v8 = vadd.f32 %v5491_v41, %v9718_v7  ;;  %v5483_v58 = vadd.f32 %v6280_v5, %v5482_v45  ;;  %v7780_v23 = vld [vmem:[%s10062_s8 + $0x30] sm:$0xff]  ;;  %v7782_v41 = vld [vmem:[%s10062_s8 + $0x38] sm:$0xff] }
0x25f1   :  { %v7100_v2 = vpop.f32.mrf.mxu1  ;;  %v7783_v45 = vld [vmem:[%s10063_s26 + $0x38] sm:$0xff] }
0x25f2   :  { %7740 = vpow2.f32 %v6286_v27  ;;  %v6291_v56 = vmul.f32 -1.442695, %v5503_v8  ;;  %v5501_v24 = vadd.f32 %v5483_v58, %v9713_v9  ;;  %v5494_v25 = vadd.f32 %v7100_v2, %v6280_v5  ;;  %v7500_v27 = vld [vmem:[%s8800_s17 + $0x8] ss:$0 sps:$4 sm:$0xff]   ;;  %v7501_v58 = vld [vmem:[%s8800_s17] sm:$0xff]  }
0x25f3   :  { %v5485_v50 = vpop.f32.mrf.mxu1 }
0x25f4   :  { %7742 = vpow2.f32 %v6291_v56  ;;  %v6289_v26 = vmul.f32 -1.442695, %v5501_v24  ;;  %v5504_v46 = vadd.f32 %v5494_v25, %v9726_v18  ;;  %v5486_v54 = vadd.f32 %v6280_v5, %v5485_v50 }
0x25f6   :  { %7744 = vpow2.f32 %v6289_v26  ;;  %v6292_v19 = vmul.f32 -1.442695, %v5504_v46  ;;  %v5502_v4 = vadd.f32 %v5486_v54, %v9723_v60 }
0x25f8   :  { %7746 = vpow2.f32 %v6292_v19  ;;  %v6290_v12 = vmul.f32 -1.442695, %v5502_v4 }
0x25f9   :  { %v7735_v7 = vpop.eup %7734 }
0x25fa   :  { %v5531_v57 = vadd.f32 1.0, %v7735_v7  ;;  %7748 = vpow2.f32 %v6290_v12 }
0x25fb   :  { %v7737_v22 = vpop.eup %7736 }
0x25fc   :  { %v5529_v14 = vadd.f32 1.0, %v7737_v22  ;;  %7750 = vrcp.f32 %v5531_v57 }
0x25fd   :  { %v7739_v39 = vpop.eup %7738 }
0x25fe   :  { %v5532_v9 = vadd.f32 1.0, %v7739_v39  ;;  %7752 = vrcp.f32 %v5529_v14 }
0x25ff   :  { %v7741_v10 = vpop.eup %7740 }
0x2600   :  { %7754 = vrcp.f32 %v5532_v9  ;;  %v5530_v52 = vadd.f32 1.0, %v7741_v10 }
0x2601   :  { %v7743_v18 = vpop.eup %7742 }
0x2602   :  { %7756 = vrcp.f32 %v5530_v52  ;;  %v5535_v43 = vadd.f32 1.0, %v7743_v18 }
0x2603   :  { %v7745_v35 = vpop.eup %7744 }
0x2604   :  { %v5533_v51 = vadd.f32 1.0, %v7745_v35  ;;  %7758 = vrcp.f32 %v5535_v43 }
0x2605   :  { %v7747_v60 = vpop.eup %7746 }
0x2606   :  { %v5536_v15 = vadd.f32 1.0, %v7747_v60  ;;  %7760 = vrcp.f32 %v5533_v51 }
0x2607   :  { %v7749_v3 = vpop.eup %7748 }
0x2608   :  { %7762 = vrcp.f32 %v5536_v15  ;;  %v5534_v36 = vadd.f32 1.0, %v7749_v3 }
0x2609   :  { %v7751_v30 = vpop.eup %7750 }
0x260a   :  { %7764 = vrcp.f32 %v5534_v36  ;;  %v5555_v38 = vmul.f32 %v7751_v30, %v9854_v0 }
0x260b   :  { %v7753_v33 = vpop.eup %7752 }
0x260c   :  { %v5553_v6 = vmul.f32 %v7753_v33, %v9858_v44  ;;  %v7773_v44 = vld [vmem:[%s10063_s26 + $0x10] sm:$0xff] }
0x260d   :  { %v7755_v61 = vpop.eup %7754 }
0x260e   :  { %v5556_v49 = vmul.f32 %v7755_v61, %v5500_v47  ;;  %v7777_v47 = vld [vmem:[%s10063_s26 + $0x20] sm:$0xff] }
0x260f   :  { %v7757_v53 = vpop.eup %7756 }
0x2610   :  { %v5554_v29 = vmul.f32 %v7757_v53, %v5498_v11  ;;  %v7403_v21 = vpack.i.bf16 %v5556_v49, %v5555_v38  ;;  %v7781_v11 = vld [vmem:[%s10063_s26 + $0x30] sm:$0xff] }
0x2611   :  { %v7759_v34 = vpop.eup %7758 }
0x2612   :  { %7404 = vrot.lane.b32.xlu0 %v7403_v21, %s8510_s1  ;;  %v7408_v31 = vpack.i.bf16 %v5554_v29, %v5553_v6  ;;  %v9871_v37 = vmul.f32 %v7759_v34, %v5503_v8  ;;  %v5887_v8 = vsel %vm3028_vm7, %v7500_v27, 0 }
0x2613   :  { %v7761_v20 = vpop.eup %7760 }
0x2614   :  { %7409 = vrot.lane.b32.xlu1 %v7408_v31, %s8510_s1  ;;  %v5557_v40 = vmul.f32 %v7761_v20, %v5501_v24 }
0x2615   :  { %v7763_v55 = vpop.eup %7762 }
0x2616   :  { %v9873_v59 = vmul.f32 %v7763_v55, %v5504_v46 }
0x2617   :  { %v7765_v5 = vpop.eup %7764 }
0x2618   :  { %v5558_v1 = vmul.f32 %v7765_v5, %v5502_v4  ;;  %7101 = vmatprep.subr.mxu0 %v9873_v59  ;;  %7129 = vmatprep.subr.mxu1 %v9873_v59  ;;  %v7428_v62 = vpack.i.bf16 %v9873_v59, %v9871_v37 }
0x2619   :  { %7102 = vmatpush3.msra.mxu0 %v9873_v59  ;;  %7130 = vmatpush3.msra.mxu1 %v9873_v59 }
0x261a   :  { %7103 = vmatprep.subr.mxu0 %v9871_v37  ;;  %7131 = vmatprep.subr.mxu1 %v9871_v37  ;;  %v7413_v0 = vpack.i.bf16 %v5558_v1, %v5557_v40 }
0x261b   :  { %7104 = vmatpush3.msra.mxu0 %v9871_v37  ;;  %7132 = vmatpush3.msra.mxu1 %v9871_v37 }
0x261c   :  { %7105 = vmatprep.subr.mxu0 %v5558_v1  ;;  %7133 = vmatprep.subr.mxu1 %v5558_v1 }
0x261d   :  { %7414 = vrot.lane.b32.xlu0 %v7413_v0, %s8510_s1  ;;  %7106 = vmatpush3.msra.mxu0 %v5558_v1 }
0x261e   :  { %7134 = vmatpush3.msra.mxu1 %v5558_v1  ;;  %7107 = vmatprep.subr.mxu0 %v5557_v40 }
0x261f   :  { %7135 = vmatprep.subr.mxu1 %v5557_v40  ;;  %7108 = vmatpush3.msra.mxu0 %v5557_v40 }
0x2620   :  { %7136 = vmatpush3.msra.mxu1 %v5557_v40  ;;  %7109 = vmatprep.subr.mxu0 %v5556_v49 }
0x2621   :  { %7137 = vmatprep.subr.mxu1 %v5556_v49  ;;  %7110 = vmatpush3.msra.mxu0 %v5556_v49 }
0x2622   :  { %7138 = vmatpush3.msra.mxu1 %v5556_v49  ;;  %7111 = vmatprep.subr.mxu0 %v5555_v38 }
0x2623   :  { %7139 = vmatprep.subr.mxu1 %v5555_v38  ;;  %7112 = vmatpush3.msra.mxu0 %v5555_v38 }
0x2624   :  { %7140 = vmatpush3.msra.mxu1 %v5555_v38  ;;  %7113 = vmatprep.subr.mxu0 %v5554_v29 }
0x2625   :  { %7141 = vmatprep.subr.mxu1 %v5554_v29  ;;  %7114 = vmatpush3.msra.mxu0 %v5554_v29 }
0x2626   :  { %7142 = vmatpush3.msra.mxu1 %v5554_v29  ;;  %7115 = vmatprep.subr.mxu0 %v5553_v6 }
0x2627   :  { %7143 = vmatprep.subr.mxu1 %v5553_v6  ;;  %7116 = vmatpush3.msra.mxu0 %v5553_v6 }
0x2628   :  { %7144 = vmatpush3.msra.mxu1 %v5553_v6  ;;  %7118 = vmatmul.mubr.msk.f32.vlgmr.msra.gmra.mxu0 %vm3386_vm11, %v7770_v28 }
0x2629   :  { %7146 = vmatmul.mubr.msk.f32.vlgmr.msra.gmra.mxu1 %vm3386_vm11, %v7771_v63  ;;  %7120 = vmatprep.mubr.msk.f32.mxu0 %vm3386_vm11, %v7772_v48 }
0x262a   :  { %7148 = vmatprep.mubr.msk.f32.mxu1 %vm3386_vm11, %v7773_v44  ;;  %7184 = vmatprep.subr.msk.bf16.mxu0 %vm3028_vm7, %v7500_v27 }
0x262b   :  { %7158 = vmatpush3.bf16.msra.mxu0 %v5887_v8 }
0x262c   :  { %7121 = vmatmul.mubr.msk.f32.gmra.mxu0 %vm3386_vm11, %v7774_v16  ;;  %7159 = vmatprep.subr.bf16.mxu0 %v7501_v58 }
0x262d   :  { %7149 = vmatmul.mubr.msk.f32.gmra.mxu1 %vm3386_vm11, %v7775_v32  ;;  %7123 = vmatprep.mubr.msk.f32.mxu0 %vm3386_vm11, %v7776_v13 }
0x262e   :  { %7151 = vmatprep.mubr.msk.f32.mxu1 %vm3386_vm11, %v7777_v47 }
0x262f   :  { %7160 = vmatpush3.bf16.msra.mxu0 %v7501_v58 }
0x2630   :  { %7124 = vmatmul.mubr.msk.f32.gmra.mxu0 %vm3386_vm11, %v7778_v42 }
0x2631   :  { %7152 = vmatmul.mubr.msk.f32.gmra.mxu1 %vm3386_vm11, %v7779_v17  ;;  %7126 = vmatprep.mubr.msk.f32.mxu0 %vm3386_vm11, %v7780_v23 }
0x2632   :  { %7154 = vmatprep.mubr.msk.f32.mxu1 %vm3386_vm11, %v7781_v11 }
0x2634   :  { %7127 = vmatmul.mubr.msk.f32.gmra.mxu0 %vm3386_vm11, %v7782_v41 }
0x2635   :  { %7155 = vmatmul.mubr.msk.f32.gmra.mxu1 %vm3386_vm11, %v7783_v45 }
0x2684   :  { %v7405_v10 = vpop.permute.xlu0 %7404 }
0x2685   :  { %v7407_v33 = vunpack.i.h.bf16 %v7405_v10  ;;  %v7406_v61 = vunpack.i.l.bf16 %v7405_v10 }
0x2686   :  { %v7410_v39 = vpop.permute.xlu1 %7409 }
0x2687   :  { %v7412_v52 = vunpack.i.h.bf16 %v7410_v39  ;;  %v7411_v18 = vunpack.i.l.bf16 %v7410_v39 }
0x268f   :  { %v7415_v38 = vpop.permute.xlu0 %7414 }
0x2690   :  { %v7417_v59 = vunpack.i.h.bf16 %v7415_v38  ;;  %v7416_v5 = vunpack.i.l.bf16 %v7415_v38 }
0x26e8   :  { %v7119_v57 = vpop.f32.mrf.mxu0 }
0x26e9   :  { %v7147_v2 = vpop.f32.mrf.mxu1  ;;  %v5836_v15 = vsel %vm3024_vm9, %v7119_v57, %v7412_v52 }
0x26ea   :  { %v5627_v22 = vpop.f32.mrf.mxu0 }
0x26eb   :  { %v5732_v56 = vpop.f32.mrf.mxu1  ;;  %v5835_v3 = vsel %vm3024_vm9, %v5627_v22, %v7411_v18 }
0x26ec   :  { %v7418_v24 = vpack.i.bf16 %v7147_v2, %v5732_v56  ;;  %v7122_v14 = vpop.f32.mrf.mxu0  ;;  %v6309_v2 = vld [vmem:[#allocation46] ss:$0 sm:$0xff] }
0x26ed   :  { %v7150_v25 = vpop.f32.mrf.mxu1  ;;  %v5838_v31 = vsel %vm3024_vm9, %v7122_v14, %v7407_v33 }
0x26ee   :  { %7419 = vrot.lane.b32.xlu1 %v7418_v24, %s8511_s9  ;;  %v5637_v9 = vpop.f32.mrf.mxu0 }
0x26ef   :  { %v5742_v50 = vpop.f32.mrf.mxu1  ;;  %v5837_v34 = vsel %vm3024_vm9, %v5637_v9, %v7406_v61 }
0x26f0   :  { %v7423_v26 = vpack.i.bf16 %v7150_v25, %v5742_v50  ;;  %v7125_v35 = vpop.f32.mrf.mxu0 }
0x26f1   :  { %v7153_v46 = vpop.f32.mrf.mxu1  ;;  %v5840_v63 = vsel %vm3024_vm9, %v7125_v35, %v7417_v59 }
0x26f2   :  { %7424 = vrot.lane.b32.xlu1 %v7423_v26, %s8511_s9  ;;  %v5647_v6 = vpop.f32.mrf.mxu0 }
0x26f3   :  { %v5752_v54 = vpop.f32.mrf.mxu1  ;;  %v5839_v48 = vsel %vm3024_vm9, %v5647_v6, %v7416_v5 }
0x26f4   :  { %v7433_v19 = vpack.i.bf16 %v7153_v46, %v5752_v54  ;;  %v7128_v37 = vpop.f32.mrf.mxu0 }
0x26f5   :  { %v7156_v4 = vpop.f32.mrf.mxu1 }
0x26f6   :  { %7429 = vrot.lane.b32.xlu1 %v7428_v62, %s8510_s1  ;;  %7434 = vrot.lane.b32.xlu0 %v7433_v19, %s8511_s9  ;;  %v5657_v47 = vpop.f32.mrf.mxu0 }
0x26f7   :  { %v5762_v12 = vpop.f32.mrf.mxu1 }
0x26f8   :  { %v7438_v7 = vpack.i.bf16 %v7156_v4, %v5762_v12 }
0x26fa   :  { %7439 = vrot.lane.b32.xlu1 %v7438_v7, %s8511_s9 }
0x2760   :  { %v7420_v43 = vpop.permute.xlu1 %7419 }
0x2761   :  { %v7422_v51 = vunpack.i.h.bf16 %v7420_v43  ;;  %v7421_v60 = vunpack.i.l.bf16 %v7420_v43 }
0x2763   :  { %v5843_v36 = vsel %vm1038_vm6, %v5835_v3, %v7421_v60  ;;  %v5844_v30 = vsel %vm1038_vm6, %v5836_v15, %v7422_v51 }
0x2764   :  { %v5851_v49 = vpack.c.bf16 %v5844_v30, %v5843_v36  ;;  %v7425_v53 = vpop.permute.xlu1 %7424 }
0x2765   :  { %v7427_v29 = vunpack.i.h.bf16 %v7425_v53  ;;  %v7426_v21 = vunpack.i.l.bf16 %v7425_v53 }
0x2766   :  { %7161 = vmatprep.mubr.msk.bf16.mxu0 %vm4195_vm0, %v5851_v49 }
0x2767   :  { %v5845_v20 = vsel %vm1038_vm6, %v5837_v34, %v7426_v21  ;;  %v5846_v55 = vsel %vm1038_vm6, %v5838_v31, %v7427_v29 }
0x2768   :  { %v5852_v40 = vpack.c.bf16 %v5846_v55, %v5845_v20  ;;  %v7430_v1 = vpop.permute.xlu1 %7429  ;;  %v7435_v62 = vpop.permute.xlu0 %7434 }
0x2769   :  { %v7437_v0 = vunpack.i.h.bf16 %v7435_v62  ;;  %v7436_v28 = vunpack.i.l.bf16 %v7435_v62  ;;  %v7432_v44 = vunpack.i.h.bf16 %v7430_v1  ;;  %v7431_v16 = vunpack.i.l.bf16 %v7430_v1 }
0x276a   :  { %7162 = vmatmul.mubr.msk.bf16.vlgmr.msra.gmra.mxu0 %vm4195_vm0, %v5852_v40 }
0x276b   :  { %v5847_v32 = vsel %vm1038_vm6, %v5839_v48, %v7436_v28  ;;  %v5848_v13 = vsel %vm1038_vm6, %v5840_v63, %v7437_v0  ;;  %v5842_v41 = vsel %vm3024_vm9, %v7128_v37, %v7432_v44  ;;  %v5841_v45 = vsel %vm3024_vm9, %v5657_v47, %v7431_v16 }
0x276c   :  { %v5853_v42 = vpack.c.bf16 %v5848_v13, %v5847_v32  ;;  %v7440_v17 = vpop.permute.xlu1 %7439 }
0x276d   :  { %v7442_v23 = vunpack.i.h.bf16 %v7440_v17  ;;  %v7441_v11 = vunpack.i.l.bf16 %v7440_v17 }
0x276e   :  { %7165 = vmatprep.mubr.msk.bf16.mxu0 %vm4195_vm0, %v5853_v42 }
0x276f   :  { %v5849_v27 = vsel %vm1038_vm6, %v5841_v45, %v7441_v11  ;;  %v5850_v8 = vsel %vm1038_vm6, %v5842_v41, %v7442_v23 }
0x2770   :  { %v5854_v58 = vpack.c.bf16 %v5850_v8, %v5849_v27 }
0x2772   :  { %7166 = vmatmul.mubr.msk.bf16.gmra.mxu0 %vm4195_vm0, %v5854_v58 }
0x282a   :  { %v7163_v56 = vpop.f32.mrf.mxu0 }
0x282b   :  { %v5932_v24 = vadd.f32 %v7163_v56, %v6309_v2 }
0x282c   :  { %v5923_v25 = vpop.f32.mrf.mxu0 }
0x282d   :  { %5956 = vst.msk [vmem:[%s8810_s24 + $0x10] sm:$0xff] %vm3709_vm14, %v5932_v24  ;;  %v5924_v50 = vadd.f32 %v6309_v2, %v5923_v25 }
0x282e   :  { %v7164_v26 = vpop.f32.mrf.mxu0 }
0x282f   :  { %5954 = vst.msk [vmem:[%s8810_s24] sm:$0xff] %vm3709_vm14, %v5924_v50  ;;  %v5935_v46 = vadd.f32 %v7164_v26, %v6309_v2 }
0x2830   :  { %v5926_v54 = vpop.f32.mrf.mxu0 }
0x2831   :  { %5957 = vst.msk [vmem:[%s8810_s24 + $0x18] sm:$0xff] %vm3709_vm14, %v5935_v46  ;;  %v5927_v19 = vadd.f32 %v6309_v2, %v5926_v54 }
0x2832   :  { %v7167_v4 = vpop.f32.mrf.mxu0 }
0x2833   :  { %5955 = vst.msk [vmem:[%s8810_s24 + $0x8] sm:$0xff] %vm3709_vm14, %v5927_v19  ;;  %v5948_v12 = vadd.f32 %v7167_v4, %v6309_v2 }
0x2834   :  { %v5939_v7 = vpop.f32.mrf.mxu0 }
0x2835   :  { %5960 = vst.msk [vmem:[%s8810_s24 + $0x30] sm:$0xff] %vm3709_vm14, %v5948_v12  ;;  %v5940_v57 = vadd.f32 %v6309_v2, %v5939_v7 }
0x2836   :  { %v7168_v22 = vpop.f32.mrf.mxu0 }
0x2837   :  { %5958 = vst.msk [vmem:[%s8810_s24 + $0x20] sm:$0xff] %vm3709_vm14, %v5940_v57  ;;  %v5951_v14 = vadd.f32 %v7168_v22, %v6309_v2 }
0x2838   :  { %v5942_v39 = vpop.f32.mrf.mxu0 }
0x2839   :  { %5961 = vst.msk [vmem:[%s8810_s24 + $0x38] sm:$0xff] %vm3709_vm14, %v5951_v14  ;;  %v5943_v9 = vadd.f32 %v6309_v2, %v5942_v39 }
0x283b   :  { %5959 = vst.msk [vmem:[%s8810_s24 + $0x28] sm:$0xff] %vm3709_vm14, %v5943_v9 }
0x283c   :  { %5966 = vsyncpa [#allocation3], 1 }
0x283d   :  { %5967 = vsyncpa [#allocation5], 1 }
0x283e   :  { %5968 = vsyncpa [#allocation8], 1 }
0x283f   :  { %5969 = vsyncpa [#allocation11], 1 }
0x2840   :  { %5970 = vsyncpa [#allocation14], 1 }
0x2841   :  { %5971 = vsyncpa [#allocation17], 1 }
0x2842   :  { %5972 = vsyncpa [#allocation20], 1 }
0x2843   :  { %5973 = vsyncpa [#allocation23], 1 }
0x2844   :  { %5974 = vsyncpa [#allocation26], 1 }
0x2845   :  { %5975 = vsyncpa [#allocation29], 1 }
0x2846   :  { %5976 = vsyncpa [#allocation32], 1 }
0x2847   :  { %5977 = vsyncpa [#allocation35], 1 }
0x2848   :  { %5978 = vsyncpa [#allocation38], 1 }
0x2849   :  { %5979 = vsyncpa [#allocation41], 1 }
0x284a   :  { %5980 = vsyncpa [#allocation44], 1 }
0x284b   :  { %5981 = vsyncpa [#allocation47], 1 }

</bundles_post_ra>
